<compile_context>
chip_gen: v7x
topology: tpu7x:2x2x1
jax: 0.10.0
libtpu: 0.0.40
codegen_flags: <defaults>
</compile_context>

<pallas_src>
import jax
import jax.numpy as jnp
from jax import lax
from jax.experimental import pallas as pl
from jax.experimental.pallas import tpu as pltpu

_BN_EPS = 1e-5
_LANES = 128


def _round_up(x, m):
    return ((x + m - 1) // m) * m


def _basic_block_kernel(x_ref, w1_ref, b1_ref, w2_ref, b2_ref, out_ref,
                        xpad_scr, mid_scr, patch_scr):
    """Fused BasicBlock forward for one image (one grid step).

    conv1(3x3,s1,p1) -> BN1(scale folded, shift=bias) -> ReLU
    conv2(3x3,s1,p1) -> BN2(folded) -> + residual(x) -> ReLU

    Layout: NHWC with C padded to a multiple of 128 (lane-dense).  Each conv
    is one im2col patch build (9 shifted copies into VMEM scratch) followed by
    a single MXU matmul with f32 accumulation.
    """
    _, H, W, C = x_ref.shape                 # block = (1, H, W, Cpad)
    HW = H * W

    def conv3x3(src_scr, w_ref, b_ref):
        # Build the (H*W, 9*C) im2col patch from the zero-padded source.
        for kh in range(3):
            for kw in range(3):
                tap = kh * 3 + kw
                window = src_scr[kh:kh + H, kw:kw + W, :]          # (H, W, C)
                patch_scr[:, tap * C:(tap + 1) * C] = window.reshape(HW, C)
        # Single lane-dense MXU matmul; BN shift applied as a bias (f32).
        y = jnp.dot(patch_scr[...], w_ref[...],
                    preferred_element_type=jnp.float32)            # (HW, C)
        return y + b_ref[...]                                      # (1, C) bcast

    # Zero-padded halos live in VMEM scratch.  Re-zeroed every grid step so the
    # kernel stays correct when the batch axis is sharded across TensorCores.
    xpad_scr[...] = jnp.zeros_like(xpad_scr)
    mid_scr[...] = jnp.zeros_like(mid_scr)
    xpad_scr[1:H + 1, 1:W + 1, :] = x_ref[0]

    # conv1 -> bn1 -> relu; result stays in VMEM (never touches HBM).
    h1 = jnp.maximum(conv3x3(xpad_scr, w1_ref, b1_ref), 0.0)
    mid_scr[1:H + 1, 1:W + 1, :] = h1.reshape(H, W, C).astype(mid_scr.dtype)

    # conv2 -> bn2 -> + residual -> relu  (epilogue in f32).
    h2 = conv3x3(mid_scr, w2_ref, b2_ref).reshape(H, W, C)
    h2 = h2 + x_ref[0].astype(jnp.float32)
    out_ref[0] = jnp.maximum(h2, 0.0).astype(out_ref.dtype)


def basic_block_forward(x_nchw, params, *, compute_dtype=jnp.float32):
    """Pallas implementation of BasicBlock.forward (downsample=None), NCHW I/O.

    params = (w1_hwio, bn1_scale, bn1_shift, w2_hwio, bn2_scale, bn2_shift)
    with scale = gamma/sqrt(var+eps), shift = beta - mean*scale (shape (C,)).
    Use compute_dtype=jnp.bfloat16 on v6e/v7x to halve MXU-input / VMEM bytes.
    """
    w1, scale1, shift1, w2, scale2, shift2 = params
    N, Cin, H, W = x_nchw.shape
    Cout = w1.shape[-1]
    assert Cin == Cout, "downsample=None requires in_planes == out_planes"
    Cpad = _round_up(max(Cin, Cout, _LANES), _LANES)    # lane-dense channels

    def prep_w(w_hwio, scale, shift):
        # Fold BN scale into conv weights; keep the shift as an f32 bias.
        w = (w_hwio * scale.reshape(1, 1, 1, -1)).astype(compute_dtype)
        wp = jnp.zeros((3, 3, Cpad, Cpad), compute_dtype)
        wp = wp.at[:, :, :Cin, :Cout].set(w)
        bp = jnp.zeros((1, Cpad), jnp.float32)
        bp = bp.at[0, :Cout].set(shift.reshape(-1).astype(jnp.float32))
        return wp.reshape(9 * Cpad, Cpad), bp            # im2col weight layout

    w1p, b1p = prep_w(w1, scale1, shift1)
    w2p, b2p = prep_w(w2, scale2, shift2)

    # NCHW -> NHWC and pad channels up to Cpad (zeros are exact no-ops in the
    # conv / residual; extra output channels are sliced off below).
    x = jnp.transpose(x_nchw, (0, 2, 3, 1)).astype(compute_dtype)
    x = jnp.pad(x, ((0, 0), (0, 0), (0, 0), (0, Cpad - Cin)))

    grid_spec = pltpu.PrefetchScalarGridSpec(
        num_scalar_prefetch=0,
        grid=(N,),                                       # one image per step
        in_specs=[
            pl.BlockSpec((1, H, W, Cpad), lambda n: (n, 0, 0, 0)),   # x / residual
            pl.BlockSpec((9 * Cpad, Cpad), lambda n: (0, 0)),        # w1 (folded)
            pl.BlockSpec((1, Cpad), lambda n: (0, 0)),               # bn1 shift
            pl.BlockSpec((9 * Cpad, Cpad), lambda n: (0, 0)),        # w2 (folded)
            pl.BlockSpec((1, Cpad), lambda n: (0, 0)),               # bn2 shift
        ],
        out_specs=pl.BlockSpec((1, H, W, Cpad), lambda n: (n, 0, 0, 0)),
        scratch_shapes=[
            pltpu.VMEM((H + 2, W + 2, Cpad), compute_dtype),   # padded input
            pltpu.VMEM((H + 2, W + 2, Cpad), compute_dtype),   # padded conv1 out
            pltpu.VMEM((H * W, 9 * Cpad), compute_dtype),      # im2col patch
        ],
    )

    out = pl.pallas_call(
        _basic_block_kernel,
        grid_spec=grid_spec,
        out_shape=jax.ShapeDtypeStruct((N, H, W, Cpad), x_nchw.dtype),
        compiler_params=pltpu.CompilerParams(
            # batch axis is independent work -> shards across v7x's 2 TCs.
            dimension_semantics=("parallel",),
        ),
    )(x, w1p, b1p, w2p, b2p)

    return jnp.transpose(out[..., :Cout], (0, 3, 1, 2))   # NHWC -> NCHW


def _reference(x_nchw, w1, s1, b1, w2, s2, b2):
    """Pure-JAX reference of the same forward, NCHW."""
    def conv(x, w):
        return lax.conv_general_dilated(
            x, w, window_strides=(1, 1), padding=((1, 1), (1, 1)),
            dimension_numbers=('NCHW', 'HWIO', 'NCHW'))
    y = conv(x_nchw, w1)
    y = y * s1.reshape(1, -1, 1, 1) + b1.reshape(1, -1, 1, 1)
    y = jnp.maximum(y, 0.0)
    y = conv(y, w2)
    y = y * s2.reshape(1, -1, 1, 1) + b2.reshape(1, -1, 1, 1)
    y = y + x_nchw
    return jnp.maximum(y, 0.0)


if __name__ == "__main__":
    key = jax.random.PRNGKey(0)
    (k_x, k_w1, k_w2, k_g1, k_b1, k_m1, k_v1,
     k_g2, k_b2, k_m2, k_v2) = jax.random.split(key, 11)

    in_planes = out_planes = 4                 # downsample=None => same planes
    N, H, W = 2, 16, 16
    x = jax.random.normal(k_x, (N, in_planes, H, W), jnp.float32)   # NCHW

    # Conv weights: generated in PyTorch OIHW layout, converted to HWIO.
    w1_oihw = 0.1 * jax.random.normal(k_w1, (out_planes, in_planes, 3, 3), jnp.float32)
    w2_oihw = 0.1 * jax.random.normal(k_w2, (out_planes, out_planes, 3, 3), jnp.float32)
    w1 = jnp.transpose(w1_oihw, (2, 3, 1, 0))
    w2 = jnp.transpose(w2_oihw, (2, 3, 1, 0))

    # BatchNorm params (inference mode): fold gamma/beta/mean/var -> scale/shift.
    gamma1 = 1.0 + 0.1 * jax.random.normal(k_g1, (out_planes,), jnp.float32)
    beta1 = 0.1 * jax.random.normal(k_b1, (out_planes,), jnp.float32)
    mean1 = 0.1 * jax.random.normal(k_m1, (out_planes,), jnp.float32)
    var1 = jnp.abs(jax.random.normal(k_v1, (out_planes,), jnp.float32)) + 0.5
    gamma2 = 1.0 + 0.1 * jax.random.normal(k_g2, (out_planes,), jnp.float32)
    beta2 = 0.1 * jax.random.normal(k_b2, (out_planes,), jnp.float32)
    mean2 = 0.1 * jax.random.normal(k_m2, (out_planes,), jnp.float32)
    var2 = jnp.abs(jax.random.normal(k_v2, (out_planes,), jnp.float32)) + 0.5

    scale1 = gamma1 / jnp.sqrt(var1 + _BN_EPS)
    shift1 = beta1 - mean1 * scale1
    scale2 = gamma2 / jnp.sqrt(var2 + _BN_EPS)
    shift2 = beta2 - mean2 * scale2

    out = basic_block_forward(x, (w1, scale1, shift1, w2, scale2, shift2))
    out = jax.block_until_ready(out)

    ref = _reference(x, w1, scale1, shift1, w2, scale2, shift2)
    assert out.shape == (N, out_planes, H, W)
    assert jnp.allclose(out, ref, atol=1e-3, rtol=1e-3), "Pallas/reference mismatch"
    print("KERNEL_OK")
</pallas_src>

<mosaic_0001>
module attributes {stable_mosaic.version = 11 : i64} {
  func.func @_basic_block_kernel(%arg0: i32, %arg1: memref<1x16x16x128xf32, #tpu.memory_space<vmem>>, %arg2: memref<1152x128xf32, #tpu.memory_space<vmem>>, %arg3: memref<1x128xf32, #tpu.memory_space<vmem>>, %arg4: memref<1152x128xf32, #tpu.memory_space<vmem>>, %arg5: memref<1x128xf32, #tpu.memory_space<vmem>>, %arg6: memref<1x16x16x128xf32, #tpu.memory_space<vmem>>, %arg7: memref<18x18x128xf32, #tpu.memory_space<vmem>>, %arg8: memref<18x18x128xf32, #tpu.memory_space<vmem>>, %arg9: memref<256x1152xf32, #tpu.memory_space<vmem>>) attributes {dimension_semantics = [#tpu.dimension_semantics<parallel>], iteration_bounds = array<i64: 2>, scalar_prefetch = 0 : i64, scratch_operands = 3 : i64, tpu.core_type = #tpu.core_type<tc>, window_params = [{transform_indices = @transform_0, window_bounds = array<i64: 1, 16, 16, 128>}, {pipeline_mode = #tpu.pipeline_mode<synchronous>, transform_indices = @transform_1, window_bounds = array<i64: 1152, 128>}, {pipeline_mode = #tpu.pipeline_mode<synchronous>, transform_indices = @transform_2, window_bounds = array<i64: 1, 128>}, {pipeline_mode = #tpu.pipeline_mode<synchronous>, transform_indices = @transform_3, window_bounds = array<i64: 1152, 128>}, {pipeline_mode = #tpu.pipeline_mode<synchronous>, transform_indices = @transform_4, window_bounds = array<i64: 1, 128>}, {transform_indices = @transform_5, window_bounds = array<i64: 1, 16, 16, 128>}]} {
    %cst = arith.constant 0.000000e+00 : f32
    %0 = vector.broadcast %cst : f32 to vector<18x18x128xf32>
    %c0 = arith.constant 0 : index
    %c0_0 = arith.constant 0 : index
    %c0_1 = arith.constant 0 : index
    %1 = vector.load %arg7[%c0, %c0_0, %c0_1] : memref<18x18x128xf32, #tpu.memory_space<vmem>>, vector<18x18x128xf32>
    tpu.vector_store %arg7[%c0, %c0_0, %c0_1], %0 {strides = array<i32>} : memref<18x18x128xf32, #tpu.memory_space<vmem>>, vector<18x18x128xf32>,
    %cst_2 = arith.constant 0.000000e+00 : f32
    %2 = vector.broadcast %cst_2 : f32 to vector<18x18x128xf32>
    %c0_3 = arith.constant 0 : index
    %c0_4 = arith.constant 0 : index
    %c0_5 = arith.constant 0 : index
    %3 = vector.load %arg8[%c0_3, %c0_4, %c0_5] : memref<18x18x128xf32, #tpu.memory_space<vmem>>, vector<18x18x128xf32>
    tpu.vector_store %arg8[%c0_3, %c0_4, %c0_5], %2 {strides = array<i32>} : memref<18x18x128xf32, #tpu.memory_space<vmem>>, vector<18x18x128xf32>,
    %c0_6 = arith.constant 0 : index
    %c0_7 = arith.constant 0 : index
    %c0_8 = arith.constant 0 : index
    %c0_9 = arith.constant 0 : index
    %4 = vector.load %arg1[%c0_6, %c0_7, %c0_8, %c0_9] : memref<1x16x16x128xf32, #tpu.memory_space<vmem>>, vector<1x16x16x128xf32>
    %5 = vector.shape_cast %4 : vector<1x16x16x128xf32> to vector<16x16x128xf32>
    %c1 = arith.constant 1 : index
    %c1_10 = arith.constant 1 : index
    %c0_11 = arith.constant 0 : index
    %6 = vector.load %arg7[%c1, %c1_10, %c0_11] : memref<18x18x128xf32, #tpu.memory_space<vmem>>, vector<16x16x128xf32>
    tpu.vector_store %arg7[%c1, %c1_10, %c0_11], %5 {strides = array<i32>} : memref<18x18x128xf32, #tpu.memory_space<vmem>>, vector<16x16x128xf32>,
    %c0_12 = arith.constant 0 : index
    %c0_13 = arith.constant 0 : index
    %c0_14 = arith.constant 0 : index
    %7 = vector.load %arg7[%c0_12, %c0_13, %c0_14] : memref<18x18x128xf32, #tpu.memory_space<vmem>>, vector<16x16x128xf32>
    %8 = vector.shape_cast %7 : vector<16x16x128xf32> to vector<256x128xf32>
    %c0_15 = arith.constant 0 : index
    %c0_16 = arith.constant 0 : index
    %9 = vector.load %arg9[%c0_15, %c0_16] : memref<256x1152xf32, #tpu.memory_space<vmem>>, vector<256x128xf32>
    tpu.vector_store %arg9[%c0_15, %c0_16], %8 {strides = array<i32>} : memref<256x1152xf32, #tpu.memory_space<vmem>>, vector<256x128xf32>,
    %c0_17 = arith.constant 0 : index
    %c1_18 = arith.constant 1 : index
    %c0_19 = arith.constant 0 : index
    %10 = vector.load %arg7[%c0_17, %c1_18, %c0_19] : memref<18x18x128xf32, #tpu.memory_space<vmem>>, vector<16x16x128xf32>
    %11 = vector.shape_cast %10 : vector<16x16x128xf32> to vector<256x128xf32>
    %c0_20 = arith.constant 0 : index
    %c128 = arith.constant 128 : index
    %12 = vector.load %arg9[%c0_20, %c128] : memref<256x1152xf32, #tpu.memory_space<vmem>>, vector<256x128xf32>
    tpu.vector_store %arg9[%c0_20, %c128], %11 {strides = array<i32>} : memref<256x1152xf32, #tpu.memory_space<vmem>>, vector<256x128xf32>,
    %c0_21 = arith.constant 0 : index
    %c2 = arith.constant 2 : index
    %c0_22 = arith.constant 0 : index
    %13 = vector.load %arg7[%c0_21, %c2, %c0_22] : memref<18x18x128xf32, #tpu.memory_space<vmem>>, vector<16x16x128xf32>
    %14 = vector.shape_cast %13 : vector<16x16x128xf32> to vector<256x128xf32>
    %c0_23 = arith.constant 0 : index
    %c256 = arith.constant 256 : index
    %15 = vector.load %arg9[%c0_23, %c256] : memref<256x1152xf32, #tpu.memory_space<vmem>>, vector<256x128xf32>
    tpu.vector_store %arg9[%c0_23, %c256], %14 {strides = array<i32>} : memref<256x1152xf32, #tpu.memory_space<vmem>>, vector<256x128xf32>,
    %c1_24 = arith.constant 1 : index
    %c0_25 = arith.constant 0 : index
    %c0_26 = arith.constant 0 : index
    %16 = vector.load %arg7[%c1_24, %c0_25, %c0_26] : memref<18x18x128xf32, #tpu.memory_space<vmem>>, vector<16x16x128xf32>
    %17 = vector.shape_cast %16 : vector<16x16x128xf32> to vector<256x128xf32>
    %c0_27 = arith.constant 0 : index
    %c384 = arith.constant 384 : index
    %18 = vector.load %arg9[%c0_27, %c384] : memref<256x1152xf32, #tpu.memory_space<vmem>>, vector<256x128xf32>
    tpu.vector_store %arg9[%c0_27, %c384], %17 {strides = array<i32>} : memref<256x1152xf32, #tpu.memory_space<vmem>>, vector<256x128xf32>,
    %c1_28 = arith.constant 1 : index
    %c1_29 = arith.constant 1 : index
    %c0_30 = arith.constant 0 : index
    %19 = vector.load %arg7[%c1_28, %c1_29, %c0_30] : memref<18x18x128xf32, #tpu.memory_space<vmem>>, vector<16x16x128xf32>
    %20 = vector.shape_cast %19 : vector<16x16x128xf32> to vector<256x128xf32>
    %c0_31 = arith.constant 0 : index
    %c512 = arith.constant 512 : index
    %21 = vector.load %arg9[%c0_31, %c512] : memref<256x1152xf32, #tpu.memory_space<vmem>>, vector<256x128xf32>
    tpu.vector_store %arg9[%c0_31, %c512], %20 {strides = array<i32>} : memref<256x1152xf32, #tpu.memory_space<vmem>>, vector<256x128xf32>,
    %c1_32 = arith.constant 1 : index
    %c2_33 = arith.constant 2 : index
    %c0_34 = arith.constant 0 : index
    %22 = vector.load %arg7[%c1_32, %c2_33, %c0_34] : memref<18x18x128xf32, #tpu.memory_space<vmem>>, vector<16x16x128xf32>
    %23 = vector.shape_cast %22 : vector<16x16x128xf32> to vector<256x128xf32>
    %c0_35 = arith.constant 0 : index
    %c640 = arith.constant 640 : index
    %24 = vector.load %arg9[%c0_35, %c640] : memref<256x1152xf32, #tpu.memory_space<vmem>>, vector<256x128xf32>
    tpu.vector_store %arg9[%c0_35, %c640], %23 {strides = array<i32>} : memref<256x1152xf32, #tpu.memory_space<vmem>>, vector<256x128xf32>,
    %c2_36 = arith.constant 2 : index
    %c0_37 = arith.constant 0 : index
    %c0_38 = arith.constant 0 : index
    %25 = vector.load %arg7[%c2_36, %c0_37, %c0_38] : memref<18x18x128xf32, #tpu.memory_space<vmem>>, vector<16x16x128xf32>
    %26 = vector.shape_cast %25 : vector<16x16x128xf32> to vector<256x128xf32>
    %c0_39 = arith.constant 0 : index
    %c768 = arith.constant 768 : index
    %27 = vector.load %arg9[%c0_39, %c768] : memref<256x1152xf32, #tpu.memory_space<vmem>>, vector<256x128xf32>
    tpu.vector_store %arg9[%c0_39, %c768], %26 {strides = array<i32>} : memref<256x1152xf32, #tpu.memory_space<vmem>>, vector<256x128xf32>,
    %c2_40 = arith.constant 2 : index
    %c1_41 = arith.constant 1 : index
    %c0_42 = arith.constant 0 : index
    %28 = vector.load %arg7[%c2_40, %c1_41, %c0_42] : memref<18x18x128xf32, #tpu.memory_space<vmem>>, vector<16x16x128xf32>
    %29 = vector.shape_cast %28 : vector<16x16x128xf32> to vector<256x128xf32>
    %c0_43 = arith.constant 0 : index
    %c896 = arith.constant 896 : index
    %30 = vector.load %arg9[%c0_43, %c896] : memref<256x1152xf32, #tpu.memory_space<vmem>>, vector<256x128xf32>
    tpu.vector_store %arg9[%c0_43, %c896], %29 {strides = array<i32>} : memref<256x1152xf32, #tpu.memory_space<vmem>>, vector<256x128xf32>,
    %c2_44 = arith.constant 2 : index
    %c2_45 = arith.constant 2 : index
    %c0_46 = arith.constant 0 : index
    %31 = vector.load %arg7[%c2_44, %c2_45, %c0_46] : memref<18x18x128xf32, #tpu.memory_space<vmem>>, vector<16x16x128xf32>
    %32 = vector.shape_cast %31 : vector<16x16x128xf32> to vector<256x128xf32>
    %c0_47 = arith.constant 0 : index
    %c1024 = arith.constant 1024 : index
    %33 = vector.load %arg9[%c0_47, %c1024] : memref<256x1152xf32, #tpu.memory_space<vmem>>, vector<256x128xf32>
    tpu.vector_store %arg9[%c0_47, %c1024], %32 {strides = array<i32>} : memref<256x1152xf32, #tpu.memory_space<vmem>>, vector<256x128xf32>,
    %c0_48 = arith.constant 0 : index
    %c0_49 = arith.constant 0 : index
    %34 = vector.load %arg9[%c0_48, %c0_49] : memref<256x1152xf32, #tpu.memory_space<vmem>>, vector<256x1152xf32>
    %c0_50 = arith.constant 0 : index
    %c0_51 = arith.constant 0 : index
    %35 = vector.load %arg2[%c0_50, %c0_51] : memref<1152x128xf32, #tpu.memory_space<vmem>>, vector<1152x128xf32>
    %cst_52 = arith.constant dense<0.000000e+00> : vector<256x128xf32>
    %36 = tpu.matmul %34, %35, %cst_52 {dimension_numbers = #tpu.dot_dimension_numbers<[1], [0], [0], [1], [0, 0, 1, 1], [], []>} : vector<256x1152xf32>, vector<1152x128xf32>, vector<256x128xf32> -> vector<256x128xf32>
    %c0_53 = arith.constant 0 : index
    %c0_54 = arith.constant 0 : index
    %37 = vector.load %arg3[%c0_53, %c0_54] : memref<1x128xf32, #tpu.memory_space<vmem>>, vector<1x128xf32>
    %38 = vector.broadcast %37 : vector<1x128xf32> to vector<256x128xf32>
    %39 = arith.addf %36, %38 : vector<256x128xf32>
    %cst_55 = arith.constant 0.000000e+00 : f32
    %40 = vector.broadcast %cst_55 : f32 to vector<256x128xf32>
    %41 = arith.maximumf %39, %40 : vector<256x128xf32>
    %42 = vector.shape_cast %41 : vector<256x128xf32> to vector<16x16x128xf32>
    %c1_56 = arith.constant 1 : index
    %c1_57 = arith.constant 1 : index
    %c0_58 = arith.constant 0 : index
    %43 = vector.load %arg8[%c1_56, %c1_57, %c0_58] : memref<18x18x128xf32, #tpu.memory_space<vmem>>, vector<16x16x128xf32>
    tpu.vector_store %arg8[%c1_56, %c1_57, %c0_58], %42 {strides = array<i32>} : memref<18x18x128xf32, #tpu.memory_space<vmem>>, vector<16x16x128xf32>,
    %c0_59 = arith.constant 0 : index
    %c0_60 = arith.constant 0 : index
    %c0_61 = arith.constant 0 : index
    %44 = vector.load %arg8[%c0_59, %c0_60, %c0_61] : memref<18x18x128xf32, #tpu.memory_space<vmem>>, vector<16x16x128xf32>
    %45 = vector.shape_cast %44 : vector<16x16x128xf32> to vector<256x128xf32>
    %c0_62 = arith.constant 0 : index
    %c0_63 = arith.constant 0 : index
    %46 = vector.load %arg9[%c0_62, %c0_63] : memref<256x1152xf32, #tpu.memory_space<vmem>>, vector<256x128xf32>
    tpu.vector_store %arg9[%c0_62, %c0_63], %45 {strides = array<i32>} : memref<256x1152xf32, #tpu.memory_space<vmem>>, vector<256x128xf32>,
    %c0_64 = arith.constant 0 : index
    %c1_65 = arith.constant 1 : index
    %c0_66 = arith.constant 0 : index
    %47 = vector.load %arg8[%c0_64, %c1_65, %c0_66] : memref<18x18x128xf32, #tpu.memory_space<vmem>>, vector<16x16x128xf32>
    %48 = vector.shape_cast %47 : vector<16x16x128xf32> to vector<256x128xf32>
    %c0_67 = arith.constant 0 : index
    %c128_68 = arith.constant 128 : index
    %49 = vector.load %arg9[%c0_67, %c128_68] : memref<256x1152xf32, #tpu.memory_space<vmem>>, vector<256x128xf32>
    tpu.vector_store %arg9[%c0_67, %c128_68], %48 {strides = array<i32>} : memref<256x1152xf32, #tpu.memory_space<vmem>>, vector<256x128xf32>,
    %c0_69 = arith.constant 0 : index
    %c2_70 = arith.constant 2 : index
    %c0_71 = arith.constant 0 : index
    %50 = vector.load %arg8[%c0_69, %c2_70, %c0_71] : memref<18x18x128xf32, #tpu.memory_space<vmem>>, vector<16x16x128xf32>
    %51 = vector.shape_cast %50 : vector<16x16x128xf32> to vector<256x128xf32>
    %c0_72 = arith.constant 0 : index
    %c256_73 = arith.constant 256 : index
    %52 = vector.load %arg9[%c0_72, %c256_73] : memref<256x1152xf32, #tpu.memory_space<vmem>>, vector<256x128xf32>
    tpu.vector_store %arg9[%c0_72, %c256_73], %51 {strides = array<i32>} : memref<256x1152xf32, #tpu.memory_space<vmem>>, vector<256x128xf32>,
    %c1_74 = arith.constant 1 : index
    %c0_75 = arith.constant 0 : index
    %c0_76 = arith.constant 0 : index
    %53 = vector.load %arg8[%c1_74, %c0_75, %c0_76] : memref<18x18x128xf32, #tpu.memory_space<vmem>>, vector<16x16x128xf32>
    %54 = vector.shape_cast %53 : vector<16x16x128xf32> to vector<256x128xf32>
    %c0_77 = arith.constant 0 : index
    %c384_78 = arith.constant 384 : index
    %55 = vector.load %arg9[%c0_77, %c384_78] : memref<256x1152xf32, #tpu.memory_space<vmem>>, vector<256x128xf32>
    tpu.vector_store %arg9[%c0_77, %c384_78], %54 {strides = array<i32>} : memref<256x1152xf32, #tpu.memory_space<vmem>>, vector<256x128xf32>,
    %c1_79 = arith.constant 1 : index
    %c1_80 = arith.constant 1 : index
    %c0_81 = arith.constant 0 : index
    %56 = vector.load %arg8[%c1_79, %c1_80, %c0_81] : memref<18x18x128xf32, #tpu.memory_space<vmem>>, vector<16x16x128xf32>
    %57 = vector.shape_cast %56 : vector<16x16x128xf32> to vector<256x128xf32>
    %c0_82 = arith.constant 0 : index
    %c512_83 = arith.constant 512 : index
    %58 = vector.load %arg9[%c0_82, %c512_83] : memref<256x1152xf32, #tpu.memory_space<vmem>>, vector<256x128xf32>
    tpu.vector_store %arg9[%c0_82, %c512_83], %57 {strides = array<i32>} : memref<256x1152xf32, #tpu.memory_space<vmem>>, vector<256x128xf32>,
    %c1_84 = arith.constant 1 : index
    %c2_85 = arith.constant 2 : index
    %c0_86 = arith.constant 0 : index
    %59 = vector.load %arg8[%c1_84, %c2_85, %c0_86] : memref<18x18x128xf32, #tpu.memory_space<vmem>>, vector<16x16x128xf32>
    %60 = vector.shape_cast %59 : vector<16x16x128xf32> to vector<256x128xf32>
    %c0_87 = arith.constant 0 : index
    %c640_88 = arith.constant 640 : index
    %61 = vector.load %arg9[%c0_87, %c640_88] : memref<256x1152xf32, #tpu.memory_space<vmem>>, vector<256x128xf32>
    tpu.vector_store %arg9[%c0_87, %c640_88], %60 {strides = array<i32>} : memref<256x1152xf32, #tpu.memory_space<vmem>>, vector<256x128xf32>,
    %c2_89 = arith.constant 2 : index
    %c0_90 = arith.constant 0 : index
    %c0_91 = arith.constant 0 : index
    %62 = vector.load %arg8[%c2_89, %c0_90, %c0_91] : memref<18x18x128xf32, #tpu.memory_space<vmem>>, vector<16x16x128xf32>
    %63 = vector.shape_cast %62 : vector<16x16x128xf32> to vector<256x128xf32>
    %c0_92 = arith.constant 0 : index
    %c768_93 = arith.constant 768 : index
    %64 = vector.load %arg9[%c0_92, %c768_93] : memref<256x1152xf32, #tpu.memory_space<vmem>>, vector<256x128xf32>
    tpu.vector_store %arg9[%c0_92, %c768_93], %63 {strides = array<i32>} : memref<256x1152xf32, #tpu.memory_space<vmem>>, vector<256x128xf32>,
    %c2_94 = arith.constant 2 : index
    %c1_95 = arith.constant 1 : index
    %c0_96 = arith.constant 0 : index
    %65 = vector.load %arg8[%c2_94, %c1_95, %c0_96] : memref<18x18x128xf32, #tpu.memory_space<vmem>>, vector<16x16x128xf32>
    %66 = vector.shape_cast %65 : vector<16x16x128xf32> to vector<256x128xf32>
    %c0_97 = arith.constant 0 : index
    %c896_98 = arith.constant 896 : index
    %67 = vector.load %arg9[%c0_97, %c896_98] : memref<256x1152xf32, #tpu.memory_space<vmem>>, vector<256x128xf32>
    tpu.vector_store %arg9[%c0_97, %c896_98], %66 {strides = array<i32>} : memref<256x1152xf32, #tpu.memory_space<vmem>>, vector<256x128xf32>,
    %c2_99 = arith.constant 2 : index
    %c2_100 = arith.constant 2 : index
    %c0_101 = arith.constant 0 : index
    %68 = vector.load %arg8[%c2_99, %c2_100, %c0_101] : memref<18x18x128xf32, #tpu.memory_space<vmem>>, vector<16x16x128xf32>
    %69 = vector.shape_cast %68 : vector<16x16x128xf32> to vector<256x128xf32>
    %c0_102 = arith.constant 0 : index
    %c1024_103 = arith.constant 1024 : index
    %70 = vector.load %arg9[%c0_102, %c1024_103] : memref<256x1152xf32, #tpu.memory_space<vmem>>, vector<256x128xf32>
    tpu.vector_store %arg9[%c0_102, %c1024_103], %69 {strides = array<i32>} : memref<256x1152xf32, #tpu.memory_space<vmem>>, vector<256x128xf32>,
    %c0_104 = arith.constant 0 : index
    %c0_105 = arith.constant 0 : index
    %71 = vector.load %arg9[%c0_104, %c0_105] : memref<256x1152xf32, #tpu.memory_space<vmem>>, vector<256x1152xf32>
    %c0_106 = arith.constant 0 : index
    %c0_107 = arith.constant 0 : index
    %72 = vector.load %arg4[%c0_106, %c0_107] : memref<1152x128xf32, #tpu.memory_space<vmem>>, vector<1152x128xf32>
    %cst_108 = arith.constant dense<0.000000e+00> : vector<256x128xf32>
    %73 = tpu.matmul %71, %72, %cst_108 {dimension_numbers = #tpu.dot_dimension_numbers<[1], [0], [0], [1], [0, 0, 1, 1], [], []>} : vector<256x1152xf32>, vector<1152x128xf32>, vector<256x128xf32> -> vector<256x128xf32>
    %c0_109 = arith.constant 0 : index
    %c0_110 = arith.constant 0 : index
    %74 = vector.load %arg5[%c0_109, %c0_110] : memref<1x128xf32, #tpu.memory_space<vmem>>, vector<1x128xf32>
    %75 = vector.broadcast %74 : vector<1x128xf32> to vector<256x128xf32>
    %76 = arith.addf %73, %75 : vector<256x128xf32>
    %77 = vector.shape_cast %76 : vector<256x128xf32> to vector<16x16x128xf32>
    %c0_111 = arith.constant 0 : index
    %c0_112 = arith.constant 0 : index
    %c0_113 = arith.constant 0 : index
    %c0_114 = arith.constant 0 : index
    %78 = vector.load %arg1[%c0_111, %c0_112, %c0_113, %c0_114] : memref<1x16x16x128xf32, #tpu.memory_space<vmem>>, vector<1x16x16x128xf32>
    %79 = vector.shape_cast %78 : vector<1x16x16x128xf32> to vector<16x16x128xf32>
    %80 = arith.addf %77, %79 : vector<16x16x128xf32>
    %cst_115 = arith.constant 0.000000e+00 : f32
    %81 = vector.broadcast %cst_115 : f32 to vector<16x16x128xf32>
    %82 = arith.maximumf %80, %81 : vector<16x16x128xf32>
    %c0_116 = arith.constant 0 : index
    %c0_117 = arith.constant 0 : index
    %c0_118 = arith.constant 0 : index
    %c0_119 = arith.constant 0 : index
    %83 = vector.load %arg6[%c0_116, %c0_117, %c0_118, %c0_119] : memref<1x16x16x128xf32, #tpu.memory_space<vmem>>, vector<1x16x16x128xf32>
    %84 = vector.shape_cast %83 : vector<1x16x16x128xf32> to vector<16x16x128xf32>
    %85 = vector.shape_cast %82 : vector<16x16x128xf32> to vector<1x16x16x128xf32>
    tpu.vector_store %arg6[%c0_116, %c0_117, %c0_118, %c0_119], %85 {strides = array<i32>} : memref<1x16x16x128xf32, #tpu.memory_space<vmem>>, vector<1x16x16x128xf32>,
    return
  }
  func.func @transform_0(%arg0: i32) -> (i32, i32, i32, i32) {
    %c0_i32 = arith.constant 0 : i32
    %c0_i32_0 = arith.constant 0 : i32
    %c0_i32_1 = arith.constant 0 : i32
    %c0_i32_2 = arith.constant 0 : i32
    return %arg0, %c0_i32, %c0_i32_0, %c0_i32_1 : i32, i32, i32, i32
  }
  func.func @transform_1(%arg0: i32) -> (i32, i32) {
    %c0_i32 = arith.constant 0 : i32
    %c0_i32_0 = arith.constant 0 : i32
    %c0_i32_1 = arith.constant 0 : i32
    return %c0_i32, %c0_i32_0 : i32, i32
  }
  func.func @transform_2(%arg0: i32) -> (i32, i32) {
    %c0_i32 = arith.constant 0 : i32
    %c0_i32_0 = arith.constant 0 : i32
    %c0_i32_1 = arith.constant 0 : i32
    return %c0_i32, %c0_i32_0 : i32, i32
  }
  func.func @transform_3(%arg0: i32) -> (i32, i32) {
    %c0_i32 = arith.constant 0 : i32
    %c0_i32_0 = arith.constant 0 : i32
    %c0_i32_1 = arith.constant 0 : i32
    return %c0_i32, %c0_i32_0 : i32, i32
  }
  func.func @transform_4(%arg0: i32) -> (i32, i32) {
    %c0_i32 = arith.constant 0 : i32
    %c0_i32_0 = arith.constant 0 : i32
    %c0_i32_1 = arith.constant 0 : i32
    return %c0_i32, %c0_i32_0 : i32, i32
  }
  func.func @transform_5(%arg0: i32) -> (i32, i32, i32, i32) {
    %c0_i32 = arith.constant 0 : i32
    %c0_i32_0 = arith.constant 0 : i32
    %c0_i32_1 = arith.constant 0 : i32
    %c0_i32_2 = arith.constant 0 : i32
    return %arg0, %c0_i32, %c0_i32_0, %c0_i32_1 : i32, i32, i32, i32
  }
}

</mosaic_0001>

<bundles_post_ra>
// kernel: tpu_custom_call.1
= control target key start
LH: loop header
LB: loop body
LE: loop exit
PB: predicated region body
PF: predicated region fallthrough
CT: control target
= control target key end

     0   :  { %10 = vsyncpa [#allocation6], 0  ;;  %s8209_s0 = inlined_call_operand.hbm [shape: f32[2,16,16,128], index: 0, kind: input, shape index: {}]   ;;  %s8210_s1 = inlined_call_operand.hbm [shape: f32[1152,128], index: 1, kind: input, shape index: {}]   ;;  %s8211_s2 = inlined_call_operand.vmem [shape: f32[1,128], index: 2, kind: input, shape index: {}]   ;;  %s8212_s3 = inlined_call_operand.hbm [shape: f32[1152,128], index: 3, kind: input, shape index: {}]   ;;  %s8213_s4 = inlined_call_operand.vmem [shape: f32[1,128], index: 4, kind: input, shape index: {}]   ;;  %s8214_s5 = inlined_call_operand.hbm [shape: f32[2,16,16,128], index: 5, kind: output, shape index: {}]  }
   0x1   :  { %12 = vsyncpa [#allocation6 + $0x1], 0 }
   0x2   :  { %13 = vsyncpa [#allocation9], 0 }
   0x3   :  { %14 = vsyncpa [#allocation7], 0 }
   0x4   :  { %16 = vsyncpa [#allocation7 + $0x1], 0  ;;  %s6521_s18 = smov 0   ;;  %s6523_s19 = smov 0  }
   0x5   :  { %s6525_s20 = smov 0   ;;  %s6527_s21 = smov 0  }
   0x6 LB: > { %s6542_s22 = sadd.s32 4294967295, %s6479_s21   ;;  %s5026_s23 = sadd.s32 4294967294, %s6479_s21   ;;  %s6479_s21 = sphi %s6527_s21, %s8305_s21   ;;  %s6475_s20 = sphi %s6525_s20, %s8304_s20   ;;  %s6471_s19 = sphi %s6523_s19, %s8303_s19   ;;  %s6467_s18 = sphi %s6521_s18, %s8302_s18  }
   0x7   : > { %p42_p0 = scmp.ne.s32.totalorder %s6471_s19, %s6467_s18  ;;  %p8215_p1 = scmp.eq.s32.totalorder %s6542_s22, 0 }
   0x8   : > { %p156_p3 = scmp.eq.s32.totalorder %s5026_s23, 1  ;;  %p5027_p5 = scmp.ge.s32.totalorder %s6479_s21, 1 }
   0x9   : > { %p6551_p4 = por %p8215_p1, %p42_p0  ;;  %p163_p7 = scmp.lt.s32.totalorder %s6479_s21, 3 }
   0xa   : > { %p6556_p6 = por %p156_p3, %p42_p0  ;;  %s6481_s27 = smov [#allocation8]  }
   0xb   : > { %s8250_s24 = scalar_select %p6551_p4, 1, 0 }
   0xc   : > { %s8251_s25 = scalar_select %p6556_p6, 1, 0 }
   0xd   : > { %p6561_p8 = pnand %p5027_p5, %p163_p7  ;;  %s175_s28 = sshll.u32 %s6481_s27, 4  ;;  %s6565_s28 = int_to_ptr.vmem [resolvable:$true] %s175_s28 }
   0xe   : > { %s6482_s30 = smov [#allocation10]   ;;  %s6323_s9 = scalar_lea.hbm %s8210_s1, 18432 }
   0xf   : > { %p6228_p9 = pneg %p6561_p8  ;;  %s191_s6 = sshll.u32 %s6482_s30, 4  ;;  %s6576_s6 = int_to_ptr.vmem [resolvable:$true] %s191_s6 }
  0x10   : > { %p6324_p12 = scmp.ne.s32.totalorder %s8210_s1, %s6323_s9  ;;  %p6330_p5 = scmp.lt.u32.totalorder %s6323_s9, %s8210_s1 }
  0x11   : > { %p6572_p11 = pnand %p6228_p9, %p8215_p1 }
  0x13   : > { %p6325_p13 = pneg %p6572_p11 }
  0x15   : > { %p6326_p0 = pnand %p6325_p13, %p6324_p12 }
  0x17   : > { %p6327_p3 = pneg %p6326_p0 }
  0x19   : > { %p6332_p7 = pnand %p6330_p5, %p6327_p3 }
  0x1b   : > { %6335 = shalt.err (!%p6332_p7)
}
  0x1c   : > { %s6336_s14 = scalar_lea.vmem %s6565_s28, 18432  ;;  %p6344_p2 = scmp.lt.s32.totalorder %s6565_s28, %s6565_s28 }
  0x1d   : > { %p6337_p9 = scmp.ne.s32.totalorder %s6565_s28, %s6336_s14  ;;  %p6345_p12 = scmp.lt.s32.totalorder %s6336_s14, %s6336_s14 }
  0x1f   : > { %p6339_p10 = pnand %p6337_p9, %p6325_p13  ;;  %p6346_p0 = por %p6345_p12, %p6344_p2 }
  0x21   : > { %p6340_p1 = pneg %p6339_p10 }
  0x23   : > { %p6347_p6 = pnand %p6346_p0, %p6340_p1 }
  0x25   : > { %6350 = shalt.err (!%p6347_p6)
}
  0x26   : > { %s6483_s15 = smov 128   ;;  %s6484_s16 = smov 8  }
  0x27   : > { %6231 = dma.hbm_to_vmem [thread:$0]  (!%p6572_p11), %s8210_s1, 18432, %s6565_s28, [#allocation9], %s6483_s15, %s6483_s15, %s6484_s16  }
  0x28   : > { %s6351_s7 = scalar_lea.hbm %s8212_s3, 18432 }
  0x29   : > { %p6352_p1 = scmp.ne.s32.totalorder %s8212_s3, %s6351_s7  ;;  %p6358_p10 = scmp.lt.u32.totalorder %s6351_s7, %s8212_s3 }
  0x2b   : > { %p6354_p2 = pnand %p6352_p1, %p6325_p13 }
  0x2d   : > { %p6355_p6 = pneg %p6354_p2 }
  0x2f   : > { %p6360_p3 = pnand %p6358_p10, %p6355_p6 }
  0x31   : > { %6363 = shalt.err (!%p6360_p3)
}
  0x32   : > { %s6364_s28 = scalar_lea.vmem %s6576_s6, 18432  ;;  %p6372_p12 = scmp.lt.s32.totalorder %s6576_s6, %s6576_s6 }
  0x33   : > { %p6365_p5 = scmp.ne.s32.totalorder %s6576_s6, %s6364_s28  ;;  %p6373_p0 = scmp.lt.s32.totalorder %s6364_s28, %s6364_s28 }
  0x35   : > { %p6367_p7 = pnand %p6365_p5, %p6325_p13  ;;  %p6374_p1 = por %p6373_p0, %p6372_p12 }
  0x37   : > { %p6368_p9 = pneg %p6367_p7 }
  0x39   : > { %p6375_p2 = pnand %p6374_p1, %p6368_p9 }
  0x3b   : > { %6378 = shalt.err (!%p6375_p2)
}
  0x3c   : > { %6234 = dma.hbm_to_vmem [thread:$0]  (!%p6572_p11), %s8212_s3, 18432, %s6576_s6, [#allocation9], %s6483_s15, %s6483_s15, %s6484_s16  }
  0x3d   : > { %s6637_s29 = sadd.s32 1, %s6479_s21   ;;  %s29_s14 = sadd.s32 1, %s6475_s20 }
  0x3e   : > { %s26_s17 = ssub.s32 %s6479_s21, %s6637_s29  ;;  %p36_p13 = scmp.ne.s32.totalorder %s6475_s20, %s6471_s19 }
  0x3f   : > { %p27_p6 = scmp.eq.s32.totalorder %s26_s17, 0  ;;  %p37_p10 = scmp.eq.s32.totalorder %s6479_s21, 0 }
  0x40   : > { %p8254_p3 = scmp.eq.s32.totalorder %s6542_s22, 1  ;;  %p6245_p7 = scmp.lt.s32.totalorder %s6479_s21, 2 }
  0x41   : > { %s6653_s27 = scalar_select %p27_p6, %s6475_s20, %s29_s14  }
  0x42   : > { %p6647_p5 = por %p8254_p3, %p36_p13  ;;  %p38_p9 = por %p37_p10, %p36_p13 }
  0x43   : > { %s208_s30 = sand.u32 1, %s6475_s20   ;;  %s5046_s6 = sshll.u32 %s6479_s21, 12 }
  0x44   : > { %s8255_s23 = scalar_select %p6647_p5, 1, 0 }
  0x45   : > { %s5031_s7 = sshll.u32 %s208_s30, 8  ;;  %s6660_s10 = scalar_lea.hbm %s8209_s0, %s5046_s6 }
  0x46   : > { %s212_s11 = scalar_lea.vmem [#allocation5], %s5031_s7  ;;  %p6664_p11 = pnand %p6245_p7, %p38_p9 }
  0x47   : > { %s219_s28 = sshll.u32 %s212_s11, 4  ;;  %s6668_s13 = scalar_lea.sflag [#allocation6], %s208_s30  ;;  %s6662_s28 = int_to_ptr.vmem [resolvable:$true] %s219_s28 }
  0x48   : > { %s6379_s14 = scalar_lea.hbm %s6660_s10, 4096  ;;  %p6381_p0 = pneg %p6664_p11 }
  0x49   : > { %p6380_p12 = scmp.ne.s32.totalorder %s6660_s10, %s6379_s14  ;;  %s6384_s6 = scalar_lea.hbm %s8209_s0, 8192 }
  0x4a   : > { %p6385_p13 = scmp.lt.u32.totalorder %s6660_s10, %s8209_s0  ;;  %p6386_p6 = scmp.lt.u32.totalorder %s6384_s6, %s6379_s14 }
  0x4b   : > { %p6382_p1 = pnand %p6381_p0, %p6380_p12  ;;  %p6388_p3 = scmp.lt.u32.totalorder %s6379_s14, %s6660_s10 }
  0x4c   : > { %p6387_p10 = por %p6386_p6, %p6385_p13 }
  0x4d   : > { %p6383_p2 = pneg %p6382_p1 }
  0x4e   : > { %p6389_p7 = por %p6388_p3, %p6387_p10 }
  0x50   : > { %p6390_p9 = pnand %p6389_p7, %p6383_p2 }
  0x52   : > { %6393 = shalt.err (!%p6390_p9)
}
  0x53   : > { %s6394_s30 = scalar_lea.vmem %s6662_s28, 4096  ;;  %s6485_s11 = smov [#allocation5]  }
  0x54   : > { %p6395_p12 = scmp.ne.s32.totalorder %s6662_s28, %s6394_s30  ;;  %s6399_s17 = sshll.u32 %s6485_s11, 4  ;;  %s6400_s17 = int_to_ptr.vmem [resolvable:$false] %s6399_s17 }
  0x55   : > { %s6401_s7 = scalar_lea.vmem %s6400_s17, 8192  ;;  %p6402_p4 = scmp.lt.s32.totalorder %s6662_s28, %s6400_s17 }
  0x56   : > { %p6397_p1 = pnand %p6395_p12, %p6381_p0  ;;  %p6403_p13 = scmp.lt.s32.totalorder %s6401_s7, %s6394_s30 }
  0x58   : > { %p6398_p5 = pneg %p6397_p1  ;;  %p6404_p6 = por %p6403_p13, %p6402_p4 }
  0x5a   : > { %p6405_p10 = pnand %p6404_p6, %p6398_p5 }
  0x5c   : > { %6408 = shalt.err (!%p6405_p10)
}
  0x5d   : > { %6238 = dma.hbm_to_vmem [thread:$0]  (!%p6664_p11), %s6660_s10, 4096, %s6662_s28, %s6668_s13, %s6483_s15, %s6483_s15, %s6484_s16  }
  0x5e   : > { %231 = sbr.rel (%p6561_p8) target bundleno = 1535 (0x5ff), region = 40 }
  0x65   : > { %s6702_s14 = sand.u32 1, %s6471_s19   ;;  %p8257_p4 = scmp.ne.s32.totalorder %s8250_s24, 0 }
  0x66   : > { %s5035_s6 = sshll.u32 %s6702_s14, 8  ;;  %s234_s8 = scalar_lea.sflag [#allocation6], %s6702_s14 }
  0x67   : > { %s6708_s12 = scalar_lea.vmem [#allocation5], %s5035_s6 }
  0x68   : > { %6454 = dma.done.wait (%p8257_p4), %s234_s8, 4096  }
  0x69   : > { %6456 = vsyncadd (%p8257_p4), %s234_s8, 4294963200  ;;  %p8258_p5 = scmp.eq.s32.totalorder %s6542_s22, 0 }
  0x6b   : > { %6458 = dma.done.wait (%p8258_p5), [#allocation9], 36864   ;;  %p8259_p8 = pmov %p8258_p5 }
  0x6c   : > { %v8218_v0 = vmov 0.0|0.0   ;;  %v6487_v1 = vmov 0.0   ;;  %v1310_v2 = vld [vmem:[#allocation8] sm:$0xff]  ;;  %v1311_v3 = vld [vmem:[#allocation8 + $0x8] sm:$0xff]  ;;  %v1312_v4 = vld [vmem:[#allocation8 + $0x10] sm:$0xff]  ;;  %s8042_s10 = scalar_lea.vmem [#allocation11], %s5035_s6 }
  0x6d   : > { %6460 = vsyncadd (%p8259_p8), [#allocation9], 4294930432  ;;  %5304 = vmatprep.subr.bf16.mxu0 %v8218_v0  ;;  %272 = vst [vmem:[#allocation2] sm:$0xff] %v6487_v1  ;;  %v5305_v5 = vpack.c.bf16 %v1311_v3, %v1310_v2  ;;  %v1313_v6 = vld [vmem:[#allocation8 + $0x18] sm:$0xff]  ;;  %v1314_v8 = vld [vmem:[#allocation8 + $0x20] sm:$0xff]  ;;  %s5047_s28 = sshll.u32 %s6542_s22, 12 }
  0x6e   : > { %273 = vst [vmem:[#allocation2 + $0x8] sm:$0xff] %v6487_v1  ;;  %274 = vst [vmem:[#allocation2 + $0x10] sm:$0x3] %v6487_v1  ;;  %v5308_v7 = vpack.c.bf16 %v1313_v6, %v1312_v4  ;;  %v1315_v9 = vld [vmem:[#allocation8 + $0x28] sm:$0xff]  ;;  %v1316_v11 = vld [vmem:[#allocation8 + $0x30] sm:$0xff]  ;;  %s4934_s13 = sshll.u32 %s8042_s10, 4  ;;  %s8161_s11 = scalar_lea.hbm %s8214_s5, %s5047_s28  ;;  %s8163_s13 = int_to_ptr.vmem [resolvable:$true] %s4934_s13 }
  0x6f   : > { %275 = vst [vmem:[#allocation2 + $0x18] sm:$0xff] %v6487_v1  ;;  %276 = vst [vmem:[#allocation2 + $0x20] sm:$0xff] %v6487_v1  ;;  %5306 = vmatpush1.bf16.msra.mxu0 %v5305_v5  ;;  %v5311_v10 = vpack.c.bf16 %v1315_v9, %v1314_v8  ;;  %v1317_v12 = vld [vmem:[#allocation8 + $0x38] sm:$0xff]  ;;  %v1318_v15 = vld [vmem:[#allocation8 + $0x40] sm:$0xff]  ;;  %s4921_s22 = scalar_lea.sflag [#allocation7], %s6702_s14  ;;  %s6409_s17 = scalar_lea.vmem %s8163_s13, 4096 }
  0x70   : > { %277 = vst [vmem:[#allocation2 + $0x28] sm:$0x3] %v6487_v1  ;;  %278 = vst [vmem:[#allocation2 + $0x30] sm:$0xff] %v6487_v1  ;;  %5307 = vmatprep.subr.bf16.mxu0 %v8218_v0  ;;  %v5314_v14 = vpack.c.bf16 %v1317_v12, %v1316_v11  ;;  %v1319_v16 = vld [vmem:[#allocation8 + $0x48] sm:$0xff]  ;;  %v6831_v17 = vld [vmem:[%s6708_s12] sm:$0xff]  ;;  %p6410_p11 = scmp.ne.s32.totalorder %s8163_s13, %s6409_s17  ;;  %p8299_p0 = scmp.ne.s32.totalorder %s8255_s23, 0 }
  0x71   : > { %279 = vst [vmem:[#allocation2 + $0x38] sm:$0xff] %v6487_v1  ;;  %280 = vst [vmem:[#allocation2 + $0x40] sm:$0x3] %v6487_v1  ;;  %v6835_v18 = vld [vmem:[%s6708_s12 + $0x8] sm:$0xff]  ;;  %v6838_v19 = vld [vmem:[%s6708_s12 + $0x10] sm:$0xff]  ;;  %v5317_v22 = vpack.c.bf16 %v1319_v16, %v1318_v15  ;;  %s6488_s7 = smov [#allocation11]  }
  0x72   : > { %281 = vst [vmem:[#allocation2 + $0x48] sm:$0xff] %v6487_v1  ;;  %282 = vst [vmem:[#allocation2 + $0x50] sm:$0xff] %v6487_v1  ;;  %v6843_v20 = vld [vmem:[%s6708_s12 + $0x18] sm:$0xff]  ;;  %v6846_v21 = vld [vmem:[%s6708_s12 + $0x20] sm:$0xff]  ;;  %p6411_p2 = pnand %p6410_p11, %p8299_p0  ;;  %s6413_s6 = sshll.u32 %s6488_s7, 4  ;;  %s6414_s6 = int_to_ptr.vmem [resolvable:$false] %s6413_s6 }
  0x73   : > { %283 = vst [vmem:[#allocation2 + $0x58] sm:$0x3] %v6487_v1  ;;  %284 = vst [vmem:[#allocation2 + $0x60] sm:$0xff] %v6487_v1  ;;  %5309 = vmatpush1.bf16.msra.mxu0 %v5308_v7  ;;  %v6851_v23 = vld [vmem:[%s6708_s12 + $0x28] sm:$0xff]  ;;  %v1320_v24 = vld [vmem:[#allocation8 + $0x50] sm:$0xff]  ;;  %s6415_s8 = scalar_lea.vmem %s6414_s6, 8192  ;;  %p6416_p7 = scmp.lt.s32.totalorder %s8163_s13, %s6414_s6 }
  0x74   : > { %285 = vst [vmem:[#allocation2 + $0x68] sm:$0xff] %v6487_v1  ;;  %286 = vst [vmem:[#allocation2 + $0x70] sm:$0x3] %v6487_v1  ;;  %5310 = vmatprep.subr.bf16.mxu0 %v8218_v0  ;;  %v1321_v25 = vld [vmem:[#allocation8 + $0x58] sm:$0xff]  ;;  %v6856_v26 = vld [vmem:[%s6708_s12 + $0x30] sm:$0xff]  ;;  %p6412_p3 = pneg %p6411_p2  ;;  %p6417_p9 = scmp.lt.s32.totalorder %s6415_s8, %s6409_s17 }
  0x75   : > { %287 = vst [vmem:[#allocation2 + $0x78] sm:$0xff] %v6487_v1  ;;  %288 = vst [vmem:[#allocation2 + $0x80] sm:$0xff] %v6487_v1  ;;  %v509_v13 = vld [vmem:[#allocation2 + $0x1] sm:$0xff]  ;;  %v6860_v27 = vld [vmem:[%s6708_s12 + $0x38] sm:$0xff]  ;;  %v5320_v31 = vpack.c.bf16 %v1321_v25, %v1320_v24 }
  0x76   : > { %289 = vst [vmem:[#allocation2 + $0x88] sm:$0x3] %v6487_v1  ;;  %290 = vst [vmem:[#allocation2 + $0x90] sm:$0xff] %v6487_v1  ;;  %1525 = vmatprep.mubr.f32.mxu0 %v509_v13  ;;  %v6863_v28 = vld [vmem:[%s6708_s12 + $0x40] sm:$0xff]  ;;  %v6868_v29 = vld [vmem:[%s6708_s12 + $0x48] sm:$0xff]  ;;  %p6418_p12 = por %p6417_p9, %p6416_p7 }
  0x77   : > { %291 = vst [vmem:[#allocation2 + $0x98] sm:$0xff] %v6487_v1  ;;  %292 = vst [vmem:[#allocation2 + $0xa0] sm:$0x3] %v6487_v1  ;;  %5312 = vmatpush1.bf16.msra.mxu0 %v5311_v10  ;;  %v6871_v30 = vld [vmem:[%s6708_s12 + $0x50] sm:$0xff]  ;;  %v6876_v32 = vld [vmem:[%s6708_s12 + $0x58] sm:$0xff] }
  0x78   : > { %293 = vst [vmem:[#allocation2 + $0xa8] sm:$0xff] %v6487_v1  ;;  %294 = vst [vmem:[#allocation2 + $0xb0] sm:$0xff] %v6487_v1  ;;  %5313 = vmatprep.subr.bf16.mxu0 %v8218_v0  ;;  %v1322_v33 = vld [vmem:[#allocation8 + $0x60] sm:$0xff]  ;;  %v1323_v34 = vld [vmem:[#allocation8 + $0x68] sm:$0xff]  ;;  %p6419_p1 = pnand %p6418_p12, %p6412_p3 }
  0x79   : > { %295 = vst [vmem:[#allocation2 + $0xb8] sm:$0x3] %v6487_v1  ;;  %296 = vst [vmem:[#allocation2 + $0xc0] sm:$0xff] %v6487_v1  ;;  %v6881_v35 = vld [vmem:[%s6708_s12 + $0x60] sm:$0xff]  ;;  %v6885_v36 = vld [vmem:[%s6708_s12 + $0x68] sm:$0xff]  ;;  %v5323_v37 = vpack.c.bf16 %v1323_v34, %v1322_v33 }
  0x7a   : > { %297 = vst [vmem:[#allocation2 + $0xc8] sm:$0xff] %v6487_v1  ;;  %298 = vst [vmem:[#allocation2 + $0xd0] sm:$0x3] %v6487_v1  ;;  %v6889_v38 = vld [vmem:[%s6708_s12 + $0x70] sm:$0xff]  ;;  %v1325_v40 = vld [vmem:[#allocation8 + $0x78] sm:$0xff] }
  0x7b   : > { %299 = vst [vmem:[#allocation2 + $0xd8] sm:$0xff] %v6487_v1  ;;  %300 = vst [vmem:[#allocation2 + $0xe0] sm:$0xff] %v6487_v1  ;;  %5315 = vmatpush1.bf16.msra.mxu0 %v5314_v14  ;;  %v1324_v39 = vld [vmem:[#allocation8 + $0x70] sm:$0xff]  ;;  %v6894_v41 = vld [vmem:[%s6708_s12 + $0x78] sm:$0xff] }
  0x7c   : > { %301 = vst [vmem:[#allocation2 + $0xe8] sm:$0x3] %v6487_v1  ;;  %302 = vst [vmem:[#allocation2 + $0xf0] sm:$0xff] %v6487_v1  ;;  %5316 = vmatprep.subr.bf16.mxu0 %v8218_v0  ;;  %v6898_v42 = vld [vmem:[%s6708_s12 + $0x80] sm:$0xff]  ;;  %v5326_v43 = vpack.c.bf16 %v1325_v40, %v1324_v39  ;;  %v6902_v44 = vld [vmem:[%s6708_s12 + $0x88] sm:$0xff] }
  0x7d   : > { %303 = vst [vmem:[#allocation2 + $0xf8] sm:$0xff] %v6487_v1  ;;  %304 = vst [vmem:[#allocation2 + $0x100] sm:$0x3] %v6487_v1  ;;  %v1326_v45 = vld [vmem:[#allocation8 + $0x80] sm:$0xff]  ;;  %v1327_v46 = vld [vmem:[#allocation8 + $0x88] sm:$0xff] }
  0x7e   : > { %305 = vst [vmem:[#allocation2 + $0x108] sm:$0xff] %v6487_v1  ;;  %306 = vst [vmem:[#allocation2 + $0x110] sm:$0xff] %v6487_v1  ;;  %v6907_v47 = vld [vmem:[%s6708_s12 + $0x90] sm:$0xff]  ;;  %v6911_v48 = vld [vmem:[%s6708_s12 + $0x98] sm:$0xff]  ;;  %v5329_v50 = vpack.c.bf16 %v1327_v46, %v1326_v45 }
  0x7f   : > { %307 = vst [vmem:[#allocation2 + $0x118] sm:$0x3] %v6487_v1  ;;  %308 = vst [vmem:[#allocation2 + $0x120] sm:$0xff] %v6487_v1  ;;  %5318 = vmatpush1.bf16.msra.mxu0 %v5317_v22  ;;  %v6914_v49 = vld [vmem:[%s6708_s12 + $0xa0] sm:$0xff]  ;;  %v6919_v51 = vld [vmem:[%s6708_s12 + $0xa8] sm:$0xff] }
  0x80   : > { %309 = vst [vmem:[#allocation2 + $0x128] sm:$0xff] %v6487_v1  ;;  %310 = vst [vmem:[#allocation2 + $0x130] sm:$0x3] %v6487_v1  ;;  %5319 = vmatprep.subr.bf16.mxu0 %v8218_v0  ;;  %v6922_v52 = vld [vmem:[%s6708_s12 + $0xb0] sm:$0xff]  ;;  %v1329_v54 = vld [vmem:[#allocation8 + $0x98] sm:$0xff] }
  0x81   : > { %311 = vst [vmem:[#allocation2 + $0x138] sm:$0xff] %v6487_v1  ;;  %312 = vst [vmem:[#allocation2 + $0x140] sm:$0xff] %v6487_v1  ;;  %v1328_v53 = vld [vmem:[#allocation8 + $0x90] sm:$0xff]  ;;  %v6928_v55 = vld [vmem:[%s6708_s12 + $0xb8] sm:$0xff] }
  0x82   : > { %313 = vst [vmem:[#allocation2 + $0x148] sm:$0x3] %v6487_v1  ;;  %314 = vst [vmem:[#allocation2 + $0x150] sm:$0xff] %v6487_v1  ;;  %v6932_v56 = vld [vmem:[%s6708_s12 + $0xc0] sm:$0xff]  ;;  %v5332_v57 = vpack.c.bf16 %v1329_v54, %v1328_v53  ;;  %v1331_v59 = vld [vmem:[#allocation8 + $0xa8] sm:$0xff] }
  0x83   : > { %315 = vst [vmem:[#allocation2 + $0x158] sm:$0xff] %v6487_v1  ;;  %316 = vst [vmem:[#allocation2 + $0x160] sm:$0x3] %v6487_v1  ;;  %5321 = vmatpush1.bf16.msra.mxu0 %v5320_v31  ;;  %v1330_v58 = vld [vmem:[#allocation8 + $0xa0] sm:$0xff]  ;;  %v6937_v60 = vld [vmem:[%s6708_s12 + $0xc8] sm:$0xff] }
  0x84   : > { %317 = vst [vmem:[#allocation2 + $0x168] sm:$0xff] %v6487_v1  ;;  %318 = vst [vmem:[#allocation2 + $0x170] sm:$0xff] %v6487_v1  ;;  %5322 = vmatprep.subr.bf16.mxu0 %v8218_v0  ;;  %v5335_v61 = vpack.c.bf16 %v1331_v59, %v1330_v58  ;;  %v1332_v62 = vld [vmem:[#allocation8 + $0xb0] sm:$0xff]  ;;  %v1333_v63 = vld [vmem:[#allocation8 + $0xb8] sm:$0xff] }
  0x85   : > { %319 = vst [vmem:[#allocation2 + $0x178] sm:$0x3] %v6487_v1  ;;  %320 = vst [vmem:[#allocation2 + $0x180] sm:$0xff] %v6487_v1  ;;  %v6942_v2 = vld [vmem:[%s6708_s12 + $0xd0] sm:$0xff]  ;;  %v5338_v3 = vpack.c.bf16 %v1333_v63, %v1332_v62  ;;  %v1334_v4 = vld [vmem:[#allocation8 + $0xc0] sm:$0xff] }
  0x86   : > { %321 = vst [vmem:[#allocation2 + $0x188] sm:$0xff] %v6487_v1  ;;  %322 = vst [vmem:[#allocation2 + $0x190] sm:$0x3] %v6487_v1  ;;  %v1335_v5 = vld [vmem:[#allocation8 + $0xc8] sm:$0xff]  ;;  %v6947_v6 = vld [vmem:[%s6708_s12 + $0xd8] sm:$0xff] }
  0x87   : > { %323 = vst [vmem:[#allocation2 + $0x198] sm:$0xff] %v6487_v1  ;;  %324 = vst [vmem:[#allocation2 + $0x1a0] sm:$0xff] %v6487_v1  ;;  %5324 = vmatpush1.bf16.msra.mxu0 %v5323_v37  ;;  %v5341_v7 = vpack.c.bf16 %v1335_v5, %v1334_v4  ;;  %v1336_v8 = vld [vmem:[#allocation8 + $0xd0] sm:$0xff]  ;;  %v1337_v9 = vld [vmem:[#allocation8 + $0xd8] sm:$0xff] }
  0x88   : > { %325 = vst [vmem:[#allocation2 + $0x1a8] sm:$0x3] %v6487_v1  ;;  %326 = vst [vmem:[#allocation3] sm:$0xff] %v6487_v1  ;;  %5325 = vmatprep.subr.bf16.mxu0 %v8218_v0  ;;  %v6952_v10 = vld [vmem:[%s6708_s12 + $0xe0] sm:$0xff]  ;;  %v5344_v11 = vpack.c.bf16 %v1337_v9, %v1336_v8  ;;  %v1339_v13 = vld [vmem:[#allocation8 + $0xe8] sm:$0xff] }
  0x89   : > { %327 = vst [vmem:[#allocation3 + $0x8] sm:$0xff] %v6487_v1  ;;  %328 = vst [vmem:[#allocation3 + $0x10] sm:$0x3] %v6487_v1  ;;  %v1338_v12 = vld [vmem:[#allocation8 + $0xe0] sm:$0xff]  ;;  %v6957_v14 = vld [vmem:[%s6708_s12 + $0xe8] sm:$0xff] }
  0x8a   : > { %329 = vst [vmem:[#allocation3 + $0x18] sm:$0xff] %v6487_v1  ;;  %330 = vst [vmem:[#allocation3 + $0x20] sm:$0xff] %v6487_v1  ;;  %v5347_v15 = vpack.c.bf16 %v1339_v13, %v1338_v12  ;;  %v1340_v16 = vld [vmem:[#allocation8 + $0xf0] sm:$0xff]  ;;  %v1341_v22 = vld [vmem:[#allocation8 + $0xf8] sm:$0xff] }
  0x8b   : > { %331 = vst [vmem:[#allocation3 + $0x28] sm:$0x3] %v6487_v1  ;;  %332 = vst [vmem:[#allocation3 + $0x30] sm:$0xff] %v6487_v1  ;;  %5327 = vmatpush1.bf16.msra.mxu0 %v5326_v43  ;;  %v5350_v24 = vpack.c.bf16 %v1341_v22, %v1340_v16  ;;  %v1342_v25 = vld [vmem:[#allocation8 + $0x100] sm:$0xff]  ;;  %v1343_v31 = vld [vmem:[#allocation8 + $0x108] sm:$0xff] }
  0x8c   : > { %333 = vst [vmem:[#allocation3 + $0x38] sm:$0xff] %v6487_v1  ;;  %334 = vst [vmem:[#allocation3 + $0x40] sm:$0x3] %v6487_v1  ;;  %5328 = vmatprep.subr.bf16.mxu0 %v8218_v0  ;;  %v5353_v33 = vpack.c.bf16 %v1343_v31, %v1342_v25  ;;  %v510_v34 = vld [vmem:[#allocation2 + $0x9] sm:$0xff]  ;;  %v1345_v39 = vld [vmem:[#allocation8 + $0x118] sm:$0xff] }
  0x8d   : > { %335 = vst [vmem:[#allocation3 + $0x48] sm:$0xff] %v6487_v1  ;;  %336 = vst [vmem:[#allocation3 + $0x50] sm:$0xff] %v6487_v1  ;;  %v1344_v37 = vld [vmem:[#allocation8 + $0x110] sm:$0xff]  ;;  %v1346_v43 = vld [vmem:[#allocation8 + $0x120] sm:$0xff] }
  0x8e   : > { %337 = vst [vmem:[#allocation3 + $0x58] sm:$0x3] %v6487_v1  ;;  %338 = vst [vmem:[#allocation3 + $0x60] sm:$0xff] %v6487_v1  ;;  %v5356_v40 = vpack.c.bf16 %v1345_v39, %v1344_v37  ;;  %v1347_v45 = vld [vmem:[#allocation8 + $0x128] sm:$0xff]  ;;  %v1348_v53 = vld [vmem:[#allocation8 + $0x130] sm:$0xff] }
  0x8f   : > { %339 = vst [vmem:[#allocation3 + $0x68] sm:$0xff] %v6487_v1  ;;  %340 = vst [vmem:[#allocation3 + $0x70] sm:$0x3] %v6487_v1  ;;  %5330 = vmatpush1.bf16.msra.mxu0 %v5329_v50  ;;  %v5359_v50 = vpack.c.bf16 %v1347_v45, %v1346_v43  ;;  %v1349_v54 = vld [vmem:[#allocation8 + $0x138] sm:$0xff]  ;;  %v1354_v4 = vld [vmem:[#allocation8 + $0x160] sm:$0xff] }
  0x90   : > { %341 = vst [vmem:[#allocation3 + $0x78] sm:$0xff] %v6487_v1  ;;  %342 = vst [vmem:[#allocation3 + $0x80] sm:$0xff] %v6487_v1  ;;  %5331 = vmatprep.subr.bf16.mxu0 %v8218_v0  ;;  %v5362_v58 = vpack.c.bf16 %v1349_v54, %v1348_v53  ;;  %v1353_v63 = vld [vmem:[#allocation8 + $0x158] sm:$0xff]  ;;  %v1355_v5 = vld [vmem:[#allocation8 + $0x168] sm:$0xff] }
  0x91   : > { %343 = vst [vmem:[#allocation3 + $0x88] sm:$0x3] %v6487_v1  ;;  %344 = vst [vmem:[#allocation3 + $0x90] sm:$0xff] %v6487_v1  ;;  %v5371_v8 = vpack.c.bf16 %v1355_v5, %v1354_v4  ;;  %v1356_v9 = vld [vmem:[#allocation8 + $0x170] sm:$0xff]  ;;  %v1358_v13 = vld [vmem:[#allocation8 + $0x180] sm:$0xff] }
  0x92   : > { %345 = vst [vmem:[#allocation3 + $0x98] sm:$0xff] %v6487_v1  ;;  %346 = vst [vmem:[#allocation3 + $0xa0] sm:$0x3] %v6487_v1  ;;  %v1360_v22 = vld [vmem:[#allocation8 + $0x190] sm:$0xff]  ;;  %v1362_v31 = vld [vmem:[#allocation8 + $0x1a0] sm:$0xff] }
  0x93   : > { %347 = vst [vmem:[#allocation3 + $0xa8] sm:$0xff] %v6487_v1  ;;  %348 = vst [vmem:[#allocation3 + $0xb0] sm:$0xff] %v6487_v1  ;;  %5333 = vmatpush1.bf16.msra.mxu0 %v5332_v57  ;;  %v1364_v37 = vld [vmem:[#allocation8 + $0x1b0] sm:$0xff]  ;;  %v1366_v43 = vld [vmem:[#allocation8 + $0x1c0] sm:$0xff] }
  0x94   : > { %349 = vst [vmem:[#allocation3 + $0xb8] sm:$0x3] %v6487_v1  ;;  %350 = vst [vmem:[#allocation3 + $0xc0] sm:$0xff] %v6487_v1  ;;  %5334 = vmatprep.subr.bf16.mxu0 %v8218_v0  ;;  %v1368_v53 = vld [vmem:[#allocation8 + $0x1d0] sm:$0xff] }
  0x95   : > { %351 = vst [vmem:[#allocation3 + $0xc8] sm:$0xff] %v6487_v1  ;;  %352 = vst [vmem:[#allocation3 + $0xd0] sm:$0x3] %v6487_v1 }
  0x96   : > { %353 = vst [vmem:[#allocation3 + $0xd8] sm:$0xff] %v6487_v1  ;;  %354 = vst [vmem:[#allocation3 + $0xe0] sm:$0xff] %v6487_v1 }
  0x97   : > { %355 = vst [vmem:[#allocation3 + $0xe8] sm:$0x3] %v6487_v1  ;;  %356 = vst [vmem:[#allocation3 + $0xf0] sm:$0xff] %v6487_v1  ;;  %5336 = vmatpush1.bf16.msra.mxu0 %v5335_v61 }
  0x98   : > { %357 = vst [vmem:[#allocation3 + $0xf8] sm:$0xff] %v6487_v1  ;;  %358 = vst [vmem:[#allocation3 + $0x100] sm:$0x3] %v6487_v1  ;;  %5337 = vmatprep.subr.bf16.mxu0 %v8218_v0 }
  0x99   : > { %359 = vst [vmem:[#allocation3 + $0x108] sm:$0xff] %v6487_v1  ;;  %360 = vst [vmem:[#allocation3 + $0x110] sm:$0xff] %v6487_v1 }
  0x9a   : > { %361 = vst [vmem:[#allocation3 + $0x118] sm:$0x3] %v6487_v1  ;;  %362 = vst [vmem:[#allocation3 + $0x120] sm:$0xff] %v6487_v1 }
  0x9b   : > { %363 = vst [vmem:[#allocation3 + $0x128] sm:$0xff] %v6487_v1  ;;  %364 = vst [vmem:[#allocation3 + $0x130] sm:$0x3] %v6487_v1  ;;  %5339 = vmatpush1.bf16.msra.mxu0 %v5338_v3 }
  0x9c   : > { %365 = vst [vmem:[#allocation3 + $0x138] sm:$0xff] %v6487_v1  ;;  %366 = vst [vmem:[#allocation3 + $0x140] sm:$0xff] %v6487_v1  ;;  %5340 = vmatprep.subr.bf16.mxu0 %v8218_v0 }
  0x9d   : > { %367 = vst [vmem:[#allocation3 + $0x148] sm:$0x3] %v6487_v1  ;;  %368 = vst [vmem:[#allocation3 + $0x150] sm:$0xff] %v6487_v1 }
  0x9e   : > { %369 = vst [vmem:[#allocation3 + $0x158] sm:$0xff] %v6487_v1  ;;  %370 = vst [vmem:[#allocation3 + $0x160] sm:$0x3] %v6487_v1 }
  0x9f   : > { %371 = vst [vmem:[#allocation3 + $0x168] sm:$0xff] %v6487_v1  ;;  %372 = vst [vmem:[#allocation3 + $0x170] sm:$0xff] %v6487_v1  ;;  %5342 = vmatpush1.bf16.msra.mxu0 %v5341_v7 }
  0xa0   : > { %373 = vst [vmem:[#allocation3 + $0x178] sm:$0x3] %v6487_v1  ;;  %374 = vst [vmem:[#allocation3 + $0x180] sm:$0xff] %v6487_v1  ;;  %5343 = vmatprep.subr.bf16.mxu0 %v8218_v0 }
  0xa1   : > { %375 = vst [vmem:[#allocation3 + $0x188] sm:$0xff] %v6487_v1  ;;  %376 = vst [vmem:[#allocation3 + $0x190] sm:$0x3] %v6487_v1 }
  0xa2   : > { %377 = vst [vmem:[#allocation3 + $0x198] sm:$0xff] %v6487_v1  ;;  %378 = vst [vmem:[#allocation3 + $0x1a0] sm:$0xff] %v6487_v1 }
  0xa3   : > { %379 = vst [vmem:[#allocation3 + $0x1a8] sm:$0x3] %v6487_v1  ;;  %413 = vst [vmem:[#allocation2 + $0x19] sm:$0xff] %v6831_v17  ;;  %5345 = vmatpush1.bf16.msra.mxu0 %v5344_v11 }
  0xa4   : > { %414 = vst [vmem:[#allocation2 + $0x21] sm:$0xff] %v6835_v18  ;;  %415 = vst [vmem:[#allocation2 + $0x31] sm:$0xff] %v6838_v19  ;;  %5346 = vmatprep.subr.bf16.mxu0 %v8218_v0 }
  0xa5   : > { %416 = vst [vmem:[#allocation2 + $0x39] sm:$0xff] %v6843_v20  ;;  %417 = vst [vmem:[#allocation2 + $0x49] sm:$0xff] %v6846_v21 }
  0xa6   : > { %418 = vst [vmem:[#allocation2 + $0x51] sm:$0xff] %v6851_v23  ;;  %419 = vst [vmem:[#allocation2 + $0x61] sm:$0xff] %v6856_v26 }
  0xa7   : > { %420 = vst [vmem:[#allocation2 + $0x69] sm:$0xff] %v6860_v27  ;;  %421 = vst [vmem:[#allocation2 + $0x79] sm:$0xff] %v6863_v28  ;;  %5348 = vmatpush1.bf16.msra.mxu0 %v5347_v15 }
  0xa8   : > { %422 = vst [vmem:[#allocation2 + $0x81] sm:$0xff] %v6868_v29  ;;  %423 = vst [vmem:[#allocation2 + $0x91] sm:$0xff] %v6871_v30  ;;  %5349 = vmatprep.subr.bf16.mxu0 %v8218_v0 }
  0xa9   : > { %424 = vst [vmem:[#allocation2 + $0x99] sm:$0xff] %v6876_v32  ;;  %425 = vst [vmem:[#allocation2 + $0xa9] sm:$0xff] %v6881_v35 }
  0xaa   : > { %426 = vst [vmem:[#allocation2 + $0xb1] sm:$0xff] %v6885_v36  ;;  %427 = vst [vmem:[#allocation2 + $0xc1] sm:$0xff] %v6889_v38  ;;  %v6967_v46 = vld [vmem:[#allocation2 + $0x18] sm:$0xff] }
  0xab   : > { %428 = vst [vmem:[#allocation2 + $0xc9] sm:$0xff] %v6894_v41  ;;  %429 = vst [vmem:[#allocation2 + $0xd9] sm:$0xff] %v6898_v42  ;;  %5351 = vmatpush1.bf16.msra.mxu0 %v5350_v24  ;;  %v6972_v57 = vld [vmem:[#allocation2 + $0x20] sm:$0xff]  ;;  %v6977_v59 = vld [vmem:[#allocation2 + $0x30] sm:$0xff] }
  0xac   : > { %430 = vst [vmem:[#allocation2 + $0xe1] sm:$0xff] %v6902_v44  ;;  %431 = vst [vmem:[#allocation2 + $0xf1] sm:$0xff] %v6907_v47  ;;  %5352 = vmatprep.subr.bf16.mxu0 %v8218_v0  ;;  %v6979_v62 = vld [vmem:[#allocation2 + $0x32] sm:$0xff]  ;;  %v6990_v7 = vld [vmem:[#allocation2 + $0x48] sm:$0xff] }
  0xad   : > { %432 = vst [vmem:[#allocation2 + $0xf9] sm:$0xff] %v6911_v48  ;;  %433 = vst [vmem:[#allocation2 + $0x109] sm:$0xff] %v6914_v49  ;;  %5176 = vmatprep.mubr.f32.mxu1 %v6979_v62  ;;  %v6985_v3 = vld [vmem:[#allocation2 + $0x38] sm:$0xff]  ;;  %v6995_v11 = vld [vmem:[#allocation2 + $0x50] sm:$0xff] }
  0xae   : > { %434 = vst [vmem:[#allocation2 + $0x111] sm:$0xff] %v6919_v51  ;;  %435 = vst [vmem:[#allocation2 + $0x121] sm:$0xff] %v6922_v52  ;;  %1526 = vmatmul.mubr.f32.vlgmr.msra.gmra.mrb[0].mxu0 %v6487_v1  ;;  %v7000_v15 = vld [vmem:[#allocation2 + $0x60] sm:$0xff]  ;;  %v7005_v24 = vld [vmem:[#allocation2 + $0x68] sm:$0xff] }
  0xaf   : > { %436 = vst [vmem:[#allocation2 + $0x129] sm:$0xff] %v6928_v55  ;;  %437 = vst [vmem:[#allocation2 + $0x139] sm:$0xff] %v6932_v56  ;;  %5354 = vmatpush1.bf16.msra.mxu0 %v5353_v33  ;;  %1530 = vmatprep.mubr.f32.mxu0 %v510_v34  ;;  %v7010_v33 = vld [vmem:[#allocation2 + $0x78] sm:$0xff]  ;;  %v7015_v39 = vld [vmem:[#allocation2 + $0x80] sm:$0xff] }
  0xb0   : > { %438 = vst [vmem:[#allocation2 + $0x141] sm:$0xff] %v6937_v60  ;;  %439 = vst [vmem:[#allocation2 + $0x151] sm:$0xff] %v6942_v2  ;;  %5355 = vmatprep.subr.bf16.mxu0 %v8218_v0  ;;  %v7020_v45 = vld [vmem:[#allocation2 + $0x90] sm:$0xff]  ;;  %v7025_v54 = vld [vmem:[#allocation2 + $0x98] sm:$0xff] }
  0xb1   : > { %440 = vst [vmem:[#allocation2 + $0x159] sm:$0xff] %v6947_v6  ;;  %441 = vst [vmem:[#allocation2 + $0x169] sm:$0xff] %v6952_v10 }
  0xb2   : > { %442 = vst [vmem:[#allocation2 + $0x171] sm:$0xff] %v6957_v14  ;;  %1531 = vmatmul.mubr.f32.gmra.mrb[2].mxu0 %v6487_v1  ;;  %v1350_v1 = vld [vmem:[#allocation8 + $0x140] sm:$0xff]  ;;  %v7049_v4 = vld [vmem:[#allocation2 + $0xd8] sm:$0xff] }
  0xb3   : > { %1535 = vmatprep.mubr.f32.mxu0 %v6831_v17  ;;  %5357 = vmatpush1.bf16.msra.mxu0 %v5356_v40  ;;  %v1351_v17 = vld [vmem:[#allocation8 + $0x148] sm:$0xff]  ;;  %v7057_v5 = vld [vmem:[#allocation2 + $0xf0] sm:$0xff] }
  0xb4   : > { %5358 = vmatprep.subr.bf16.mxu0 %v8218_v0  ;;  %v5365_v61 = vpack.c.bf16 %v1351_v17, %v1350_v1  ;;  %v1370_v1 = vld [vmem:[#allocation8 + $0x1e0] sm:$0xff]  ;;  %v7030_v17 = vld [vmem:[#allocation2 + $0xa8] sm:$0xff] }
  0xb6   : > { %1536 = vmatmul.mubr.f32.gmra.mrb[4].mxu0 %v6967_v46 }
  0xb7   : > { %1540 = vmatprep.mubr.f32.mxu0 %v6835_v18  ;;  %5360 = vmatpush1.bf16.msra.mxu0 %v5359_v50  ;;  %v1352_v18 = vld [vmem:[#allocation8 + $0x150] sm:$0xff] }
  0xb8   : > { %5361 = vmatprep.subr.bf16.mxu0 %v8218_v0 }
  0xba   : > { %1541 = vmatmul.mubr.f32.gmra.mrb[6].mxu0 %v6972_v57 }
  0xbb   : > { %1545 = vmatprep.mubr.f32.mxu0 %v6838_v19  ;;  %5363 = vmatpush1.bf16.msra.mxu0 %v5362_v58  ;;  %v5368_v19 = vpack.c.bf16 %v1353_v63, %v1352_v18  ;;  %v1372_v18 = vld [vmem:[#allocation8 + $0x1f0] sm:$0xff] }
  0xbc   : > { %5364 = vmatprep.subr.bf16.mxu0 %v8218_v0  ;;  %v7035_v63 = vld [vmem:[#allocation2 + $0xb0] sm:$0xff] }
  0xbe   : > { %1546 = vmatmul.mubr.f32.gmra.mrb[8].mxu0 %v6977_v59 }
  0xbf   : > { %1550 = vmatprep.mubr.f32.mxu0 %v6843_v20  ;;  %5366 = vmatpush1.bf16.msra.mxu0 %v5365_v61  ;;  %v1357_v20 = vld [vmem:[#allocation8 + $0x178] sm:$0xff] }
  0xc0   : > { %5367 = vmatprep.subr.bf16.mxu0 %v8218_v0  ;;  %v5374_v12 = vpack.c.bf16 %v1357_v20, %v1356_v9  ;;  %v1374_v9 = vld [vmem:[#allocation8 + $0x200] sm:$0xff] }
  0xc1   : > { %v573_v20 = vld [vmem:[#allocation2 + $0x2] sm:$0xff] }
  0xc2   : > { %1551 = vmatmul.mubr.f32.gmra.mrb[10].mxu0 %v6985_v3 }
  0xc3   : > { %1555 = vmatprep.mubr.f32.mxu0 %v6846_v21  ;;  %5369 = vmatpush1.bf16.msra.mxu0 %v5368_v19  ;;  %v1359_v21 = vld [vmem:[#allocation8 + $0x188] sm:$0xff] }
  0xc4   : > { %5370 = vmatprep.subr.bf16.mxu0 %v8218_v0  ;;  %v5377_v16 = vpack.c.bf16 %v1359_v21, %v1358_v13  ;;  %v1376_v13 = vld [vmem:[#allocation8 + $0x210] sm:$0xff]  ;;  %v1377_v21 = vld [vmem:[#allocation8 + $0x218] sm:$0xff] }
  0xc6   : > { %1556 = vmatmul.mubr.f32.gmra.mrb[12].mxu0 %v6990_v7 }
  0xc7   : > { %1560 = vmatprep.mubr.f32.mxu0 %v6851_v23  ;;  %5372 = vmatpush1.bf16.msra.mxu0 %v5371_v8  ;;  %v1361_v23 = vld [vmem:[#allocation8 + $0x198] sm:$0xff] }
  0xc8   : > { %5373 = vmatprep.subr.bf16.mxu0 %v8218_v0  ;;  %v5380_v25 = vpack.c.bf16 %v1361_v23, %v1360_v22  ;;  %v7100_v8 = vld [vmem:[%s6708_s12 + $0xf8] sm:$0xff]  ;;  %v1379_v22 = vld [vmem:[#allocation8 + $0x228] sm:$0xff] }
  0xc9   : > { %444 = vst [vmem:[#allocation2 + $0x189] sm:$0xff] %v7100_v8  ;;  %v7116_v23 = vld [vmem:[#allocation2 + $0x1a] sm:$0xff] }
  0xca   : > { %1561 = vmatmul.mubr.f32.gmra.mrb[14].mxu0 %v6995_v11 }
  0xcb   : > { %1565 = vmatprep.mubr.f32.mxu0 %v6856_v26  ;;  %5375 = vmatpush1.bf16.msra.mxu0 %v5374_v12  ;;  %v1363_v26 = vld [vmem:[#allocation8 + $0x1a8] sm:$0xff] }
  0xcc   : > { %5376 = vmatprep.subr.bf16.mxu0 %v8218_v0  ;;  %v5383_v34 = vpack.c.bf16 %v1363_v26, %v1362_v31  ;;  %v1381_v31 = vld [vmem:[#allocation8 + $0x238] sm:$0xff] }
  0xce   : > { %1566 = vmatmul.mubr.f32.gmra.mrb[16].mxu0 %v7000_v15 }
  0xcf   : > { %1570 = vmatprep.mubr.f32.mxu0 %v6860_v27  ;;  %5378 = vmatpush1.bf16.msra.mxu0 %v5377_v16  ;;  %v1365_v27 = vld [vmem:[#allocation8 + $0x1b8] sm:$0xff]  ;;  %v5404_v16 = vpack.c.bf16 %v1377_v21, %v1376_v13  ;;  %v1396_v13 = vld [vmem:[#allocation8 + $0x2b0] sm:$0xff]  ;;  %v7159_v21 = vld [vmem:[#allocation2 + $0x82] sm:$0xff] }
  0xd0   : > { %5379 = vmatprep.subr.bf16.mxu0 %v8218_v0  ;;  %v5386_v40 = vpack.c.bf16 %v1365_v27, %v1364_v37  ;;  %v1384_v27 = vld [vmem:[#allocation8 + $0x250] sm:$0xff] }
  0xd2   : > { %1571 = vmatmul.mubr.f32.gmra.mrb[18].mxu0 %v7005_v24 }
  0xd3   : > { %1575 = vmatprep.mubr.f32.mxu0 %v6863_v28  ;;  %5381 = vmatpush1.bf16.msra.mxu0 %v5380_v25  ;;  %v1367_v28 = vld [vmem:[#allocation8 + $0x1c8] sm:$0xff]  ;;  %v1380_v25 = vld [vmem:[#allocation8 + $0x230] sm:$0xff] }
  0xd4   : > { %5382 = vmatprep.subr.bf16.mxu0 %v8218_v0  ;;  %v5389_v50 = vpack.c.bf16 %v1367_v28, %v1366_v43  ;;  %v5410_v26 = vpack.c.bf16 %v1381_v31, %v1380_v25  ;;  %v1386_v28 = vld [vmem:[#allocation8 + $0x260] sm:$0xff] }
  0xd5   : > { %v7169_v25 = vld [vmem:[#allocation2 + $0x9a] sm:$0xff] }
  0xd6   : > { %1576 = vmatmul.mubr.f32.gmra.mrb[20].mxu0 %v7010_v33 }
  0xd7   : > { %1580 = vmatprep.mubr.f32.mxu0 %v6868_v29  ;;  %5384 = vmatpush1.bf16.msra.mxu0 %v5383_v34  ;;  %v1369_v29 = vld [vmem:[#allocation8 + $0x1d8] sm:$0xff]  ;;  %v1382_v34 = vld [vmem:[#allocation8 + $0x240] sm:$0xff] }
  0xd8   : > { %5385 = vmatprep.subr.bf16.mxu0 %v8218_v0  ;;  %v5392_v58 = vpack.c.bf16 %v1369_v29, %v1368_v53  ;;  %v1388_v29 = vld [vmem:[#allocation8 + $0x270] sm:$0xff] }
  0xda   : > { %1581 = vmatmul.mubr.f32.gmra.mrb[22].mxu0 %v7015_v39 }
  0xdb   : > { %1585 = vmatprep.mubr.f32.mxu0 %v6871_v30  ;;  %5387 = vmatpush1.bf16.msra.mxu0 %v5386_v40  ;;  %v1371_v30 = vld [vmem:[#allocation8 + $0x1e8] sm:$0xff]  ;;  %v1385_v40 = vld [vmem:[#allocation8 + $0x258] sm:$0xff] }
  0xdc   : > { %5388 = vmatprep.subr.bf16.mxu0 %v8218_v0  ;;  %v5395_v61 = vpack.c.bf16 %v1371_v30, %v1370_v1  ;;  %v5416_v43 = vpack.c.bf16 %v1385_v40, %v1384_v27  ;;  %v1390_v30 = vld [vmem:[#allocation8 + $0x280] sm:$0xff]  ;;  %v7179_v27 = vld [vmem:[#allocation2 + $0xb2] sm:$0xff] }
  0xde   : > { %1586 = vmatmul.mubr.f32.gmra.mrb[24].mxu0 %v7020_v45 }
  0xdf   : > { %1590 = vmatprep.mubr.f32.mxu0 %v6876_v32  ;;  %5390 = vmatpush1.bf16.msra.mxu0 %v5389_v50  ;;  %v1373_v32 = vld [vmem:[#allocation8 + $0x1f8] sm:$0xff]  ;;  %v1387_v50 = vld [vmem:[#allocation8 + $0x268] sm:$0xff] }
  0xe0   : > { %5391 = vmatprep.subr.bf16.mxu0 %v8218_v0  ;;  %v5398_v19 = vpack.c.bf16 %v1373_v32, %v1372_v18  ;;  %v5419_v53 = vpack.c.bf16 %v1387_v50, %v1386_v28  ;;  %v1392_v32 = vld [vmem:[#allocation8 + $0x290] sm:$0xff]  ;;  %v1439_v50 = vld [vmem:[#allocation8 + $0x408] sm:$0xff] }
  0xe1   : > { %v7201_v28 = vld [vmem:[#allocation2 + $0xf2] sm:$0xff] }
  0xe2   : > { %1591 = vmatmul.mubr.f32.gmra.mrb[26].mxu0 %v7025_v54 }
  0xe3   : > { %1595 = vmatprep.mubr.f32.mxu0 %v6881_v35  ;;  %5393 = vmatpush1.bf16.msra.mxu0 %v5392_v58  ;;  %v7040_v35 = vld [vmem:[#allocation2 + $0xc0] sm:$0xff]  ;;  %v7139_v58 = vld [vmem:[#allocation2 + $0x52] sm:$0xff] }
  0xe4   : > { %5394 = vmatprep.subr.bf16.mxu0 %v8218_v0 }
  0xe6   : > { %1596 = vmatmul.mubr.f32.gmra.mrb[28].mxu0 %v7030_v17 }
  0xe7   : > { %1600 = vmatprep.mubr.f32.mxu0 %v6885_v36  ;;  %5396 = vmatpush1.bf16.msra.mxu0 %v5395_v61  ;;  %v7045_v36 = vld [vmem:[#allocation2 + $0xc8] sm:$0xff] }
  0xe8   : > { %5397 = vmatprep.subr.bf16.mxu0 %v8218_v0  ;;  %v7144_v61 = vld [vmem:[#allocation2 + $0x62] sm:$0xff] }
  0xea   : > { %1601 = vmatmul.mubr.f32.gmra.mrb[30].mxu0 %v7035_v63 }
  0xeb   : > { %1605 = vmatprep.mubr.f32.mxu0 %v6889_v38  ;;  %5399 = vmatpush1.bf16.msra.mxu0 %v5398_v19  ;;  %v7053_v38 = vld [vmem:[#allocation2 + $0xe0] sm:$0xff]  ;;  %v7149_v19 = vld [vmem:[#allocation2 + $0x6a] sm:$0xff] }
  0xec   : > { %5400 = vmatprep.subr.bf16.mxu0 %v8218_v0 }
  0xee   : > { %1606 = vmatmul.mubr.f32.gmra.mrb[32].mxu0 %v7040_v35 }
  0xef   : > { %1610 = vmatprep.mubr.f32.mxu0 %v6894_v41  ;;  %v7061_v41 = vld [vmem:[#allocation2 + $0xf8] sm:$0xff] }
  0xf2   : > { %1611 = vmatmul.mubr.f32.gmra.mrb[34].mxu0 %v7045_v36 }
  0xf3   : > { %1615 = vmatprep.mubr.f32.mxu0 %v6898_v42  ;;  %v7065_v42 = vld [vmem:[#allocation2 + $0x108] sm:$0xff] }
  0xf6   : > { %1616 = vmatmul.mubr.f32.gmra.mrb[36].mxu0 %v7049_v4 }
  0xf7   : > { %1620 = vmatprep.mubr.f32.mxu0 %v6902_v44  ;;  %v7069_v44 = vld [vmem:[#allocation2 + $0x110] sm:$0xff] }
  0xfa   : > { %1621 = vmatmul.mubr.f32.gmra.mrb[38].mxu0 %v7053_v38 }
  0xfb   : > { %1625 = vmatprep.mubr.f32.mxu0 %v6907_v47  ;;  %v7073_v47 = vld [vmem:[#allocation2 + $0x120] sm:$0xff] }
  0xfe   : > { %1626 = vmatmul.mubr.f32.gmra.mrb[40].mxu0 %v7057_v5 }
  0xff   : > { %1630 = vmatprep.mubr.f32.mxu0 %v6911_v48  ;;  %v7077_v48 = vld [vmem:[#allocation2 + $0x128] sm:$0xff] }
 0x102   : > { %1631 = vmatmul.mubr.f32.gmra.mrb[42].mxu0 %v7061_v41 }
 0x103   : > { %1635 = vmatprep.mubr.f32.mxu0 %v6914_v49  ;;  %v7081_v49 = vld [vmem:[#allocation2 + $0x138] sm:$0xff] }
 0x106   : > { %1636 = vmatmul.mubr.f32.gmra.mrb[44].mxu0 %v7065_v42 }
 0x107   : > { %1640 = vmatprep.mubr.f32.mxu0 %v6919_v51  ;;  %v7085_v51 = vld [vmem:[#allocation2 + $0x140] sm:$0xff] }
 0x10a   : > { %1641 = vmatmul.mubr.f32.gmra.mrb[46].mxu0 %v7069_v44 }
 0x10b   : > { %1645 = vmatprep.mubr.f32.mxu0 %v6922_v52  ;;  %v7089_v52 = vld [vmem:[#allocation2 + $0x150] sm:$0xff] }
 0x10e   : > { %1646 = vmatmul.mubr.f32.gmra.mrb[48].mxu0 %v7073_v47 }
 0x10f   : > { %1650 = vmatprep.mubr.f32.mxu0 %v6928_v55  ;;  %v7092_v55 = vld [vmem:[%s6708_s12 + $0xf0] sm:$0xff] }
 0x110   : > { %443 = vst [vmem:[#allocation2 + $0x181] sm:$0xff] %v7092_v55 }
 0x112   : > { %1651 = vmatmul.mubr.f32.gmra.mrb[50].mxu0 %v7077_v48 }
 0x113   : > { %1655 = vmatprep.mubr.f32.mxu0 %v6932_v56  ;;  %v7097_v56 = vld [vmem:[#allocation2 + $0x158] sm:$0xff] }
 0x116   : > { %1656 = vmatmul.mubr.f32.gmra.mrb[52].mxu0 %v7081_v49 }
 0x117   : > { %1660 = vmatprep.mubr.f32.mxu0 %v6937_v60  ;;  %v7105_v60 = vld [vmem:[#allocation2 + $0x168] sm:$0xff] }
 0x11a   : > { %1661 = vmatmul.mubr.f32.gmra.mrb[54].mxu0 %v7085_v51 }
 0x11b   : > { %1665 = vmatprep.mubr.f32.mxu0 %v6942_v2  ;;  %v7109_v2 = vld [vmem:[#allocation2 + $0x170] sm:$0xff] }
 0x11e   : > { %1666 = vmatmul.mubr.f32.gmra.mrb[56].mxu0 %v7089_v52 }
 0x11f   : > { %1670 = vmatprep.mubr.f32.mxu0 %v6947_v6  ;;  %v1375_v6 = vld [vmem:[#allocation8 + $0x208] sm:$0xff] }
 0x120   : > { %v5401_v12 = vpack.c.bf16 %v1375_v6, %v1374_v9  ;;  %v1394_v6 = vld [vmem:[#allocation8 + $0x2a0] sm:$0xff] }
 0x122   : > { %1671 = vmatmul.mubr.f32.gmra.mrb[58].mxu0 %v7097_v56 }
 0x123   : > { %1675 = vmatprep.mubr.f32.mxu0 %v6952_v10  ;;  %v574_v10 = vld [vmem:[#allocation2 + $0xa] sm:$0xff] }
 0x126   : > { %1676 = vmatmul.mubr.f32.gmra.mrb[60].mxu0 %v7105_v60 }
 0x127   : > { %1680 = vmatprep.mubr.f32.mxu0 %v6957_v14  ;;  %v1378_v14 = vld [vmem:[#allocation8 + $0x220] sm:$0xff] }
 0x12a   : > { %1681 = vmatmul.mubr.f32.gmra.mrb[62].mxu0 %v7109_v2 }
 0x12b   : > { %1750 = vmatprep.mubr.f32.mxu0 %v6967_v46  ;;  %v5407_v46 = vpack.c.bf16 %v1379_v22, %v1378_v14  ;;  %v7164_v14 = vld [vmem:[#allocation2 + $0x92] sm:$0xff] }
 0x12e   : > { %1751 = vmatmul.mubr.f32.vlgmr.msra.gmra.mrb[0].mxu0 %v573_v20  ;;  %v7154_v20 = vld [vmem:[#allocation2 + $0x7a] sm:$0xff] }
 0x12f   : > { %5402 = vmatpush1.bf16.msra.mxu0 %v5401_v12  ;;  %1755 = vmatprep.mubr.f32.mxu0 %v6972_v57  ;;  %v7121_v57 = vld [vmem:[#allocation2 + $0x22] sm:$0xff] }
 0x130   : > { %5403 = vmatprep.subr.bf16.mxu0 %v8218_v0 }
 0x132   : > { %1756 = vmatmul.mubr.f32.gmra.mrb[2].mxu0 %v574_v10 }
 0x133   : > { %1760 = vmatprep.mubr.f32.mxu0 %v6977_v59  ;;  %5405 = vmatpush1.bf16.msra.mxu0 %v5404_v16  ;;  %v1383_v59 = vld [vmem:[#allocation8 + $0x248] sm:$0xff]  ;;  %v1398_v16 = vld [vmem:[#allocation8 + $0x2c0] sm:$0xff] }
 0x134   : > { %5406 = vmatprep.subr.bf16.mxu0 %v8218_v0  ;;  %v5413_v37 = vpack.c.bf16 %v1383_v59, %v1382_v34  ;;  %v7174_v34 = vld [vmem:[#allocation2 + $0xaa] sm:$0xff] }
 0x136   : > { %1761 = vmatmul.mubr.f32.gmra.mrb[4].mxu0 %v7116_v23 }
 0x137   : > { %1765 = vmatprep.mubr.f32.mxu0 %v6985_v3  ;;  %5408 = vmatpush1.bf16.msra.mxu0 %v5407_v46  ;;  %v7129_v3 = vld [vmem:[#allocation2 + $0x3a] sm:$0xff]  ;;  %v1400_v46 = vld [vmem:[#allocation8 + $0x2d0] sm:$0xff] }
 0x138   : > { %5409 = vmatprep.subr.bf16.mxu0 %v8218_v0 }
 0x13a   : > { %1766 = vmatmul.mubr.f32.gmra.mrb[6].mxu0 %v7121_v57 }
 0x13b   : > { %1770 = vmatprep.mubr.f32.mxu0 %v6990_v7  ;;  %5411 = vmatpush1.bf16.msra.mxu0 %v5410_v26  ;;  %v7134_v7 = vld [vmem:[#allocation2 + $0x4a] sm:$0xff]  ;;  %v1402_v26 = vld [vmem:[#allocation8 + $0x2e0] sm:$0xff] }
 0x13c   : > { %5412 = vmatprep.subr.bf16.mxu0 %v8218_v0 }
 0x13e   : > { %1771 = vmatmul.mubr.f32.gmra.mrb[8].mxu0 %v6979_v62 }
 0x13f   : > { %1775 = vmatprep.mubr.f32.mxu0 %v6995_v11  ;;  %5414 = vmatpush1.bf16.msra.mxu0 %v5413_v37  ;;  %v1389_v11 = vld [vmem:[#allocation8 + $0x278] sm:$0xff]  ;;  %v1404_v37 = vld [vmem:[#allocation8 + $0x2f0] sm:$0xff] }
 0x140   : > { %5415 = vmatprep.subr.bf16.mxu0 %v8218_v0  ;;  %v5422_v1 = vpack.c.bf16 %v1389_v11, %v1388_v29  ;;  %v1441_v29 = vld [vmem:[#allocation8 + $0x418] sm:$0xff] }
 0x142   : > { %1776 = vmatmul.mubr.f32.gmra.mrb[10].mxu0 %v7129_v3 }
 0x143   : > { %1780 = vmatprep.mubr.f32.mxu0 %v7000_v15  ;;  %5417 = vmatpush1.bf16.msra.mxu0 %v5416_v43  ;;  %v1391_v15 = vld [vmem:[#allocation8 + $0x288] sm:$0xff]  ;;  %v7193_v43 = vld [vmem:[#allocation2 + $0xda] sm:$0xff] }
 0x144   : > { %5418 = vmatprep.subr.bf16.mxu0 %v8218_v0  ;;  %v5425_v18 = vpack.c.bf16 %v1391_v15, %v1390_v30  ;;  %v1443_v30 = vld [vmem:[#allocation8 + $0x428] sm:$0xff] }
 0x146   : > { %1781 = vmatmul.mubr.f32.gmra.mrb[12].mxu0 %v7134_v7 }
 0x147   : > { %1785 = vmatprep.mubr.f32.mxu0 %v7005_v24  ;;  %5420 = vmatpush1.bf16.msra.mxu0 %v5419_v53  ;;  %v1393_v24 = vld [vmem:[#allocation8 + $0x298] sm:$0xff] }
 0x148   : > { %5421 = vmatprep.subr.bf16.mxu0 %v8218_v0  ;;  %v5428_v9 = vpack.c.bf16 %v1393_v24, %v1392_v32  ;;  %v1445_v32 = vld [vmem:[#allocation8 + $0x438] sm:$0xff] }
 0x14a   : > { %1786 = vmatmul.mubr.f32.gmra.mrb[14].mxu0 %v7139_v58 }
 0x14b   : > { %1790 = vmatprep.mubr.f32.mxu0 %v7010_v33  ;;  %5423 = vmatpush1.bf16.msra.mxu0 %v5422_v1  ;;  %v1395_v33 = vld [vmem:[#allocation8 + $0x2a8] sm:$0xff]  ;;  %v1442_v1 = vld [vmem:[#allocation8 + $0x420] sm:$0xff] }
 0x14c   : > { %5424 = vmatprep.subr.bf16.mxu0 %v8218_v0  ;;  %v5431_v12 = vpack.c.bf16 %v1395_v33, %v1394_v6  ;;  %v5504_v15 = vpack.c.bf16 %v1443_v30, %v1442_v1  ;;  %v1447_v6 = vld [vmem:[#allocation8 + $0x448] sm:$0xff]  ;;  %v1413_v1 = vld [vmem:[#allocation8 + $0x338] sm:$0xff] }
 0x14e   : > { %1791 = vmatmul.mubr.f32.gmra.mrb[16].mxu0 %v7144_v61 }
 0x14f   : > { %1795 = vmatprep.mubr.f32.mxu0 %v7015_v39  ;;  %5426 = vmatpush1.bf16.msra.mxu0 %v5425_v18  ;;  %v1397_v39 = vld [vmem:[#allocation8 + $0x2b8] sm:$0xff]  ;;  %v1444_v18 = vld [vmem:[#allocation8 + $0x430] sm:$0xff] }
 0x150   : > { %5427 = vmatprep.subr.bf16.mxu0 %v8218_v0  ;;  %v5434_v10 = vpack.c.bf16 %v1397_v39, %v1396_v13  ;;  %v5508_v24 = vpack.c.bf16 %v1445_v32, %v1444_v18  ;;  %v1449_v13 = vld [vmem:[#allocation8 + $0x458] sm:$0xff]  ;;  %v7239_v39 = vld [vmem:[#allocation2 + $0x180] sm:$0xff] }
 0x151   : > { %v6292_v18 = vld [vmem:[#allocation2 + $0x39] sm:$0xff] }
 0x152   : > { %1796 = vmatmul.mubr.f32.gmra.mrb[18].mxu0 %v7149_v19 }
 0x153   : > { %1800 = vmatprep.mubr.f32.mxu0 %v7020_v45  ;;  %5429 = vmatpush1.bf16.msra.mxu0 %v5428_v9  ;;  %v1399_v45 = vld [vmem:[#allocation8 + $0x2c8] sm:$0xff]  ;;  %v1446_v9 = vld [vmem:[#allocation8 + $0x440] sm:$0xff] }
 0x154   : > { %5430 = vmatprep.subr.bf16.mxu0 %v8218_v0  ;;  %v5437_v22 = vpack.c.bf16 %v1399_v45, %v1398_v16  ;;  %v5512_v33 = vpack.c.bf16 %v1447_v6, %v1446_v9  ;;  %v1450_v16 = vld [vmem:[#allocation8 + $0x460] sm:$0xff]  ;;  %v1451_v45 = vld [vmem:[#allocation8 + $0x468] sm:$0xff] }
 0x155   : > { %v6293_v9 = vld [vmem:[#allocation2 + $0x49] sm:$0xff] }
 0x156   : > { %1801 = vmatmul.mubr.f32.gmra.mrb[20].mxu0 %v7154_v20 }
 0x157   : > { %1805 = vmatprep.mubr.f32.mxu0 %v7025_v54  ;;  %5432 = vmatpush1.bf16.msra.mxu0 %v5431_v12  ;;  %v1401_v54 = vld [vmem:[#allocation8 + $0x2d8] sm:$0xff]  ;;  %v1448_v12 = vld [vmem:[#allocation8 + $0x450] sm:$0xff] }
 0x158   : > { %5433 = vmatprep.subr.bf16.mxu0 %v8218_v0  ;;  %v5440_v31 = vpack.c.bf16 %v1401_v54, %v1400_v46  ;;  %v7249_v46 = vld [vmem:[#allocation2 + $0x172] sm:$0xff] }
 0x159   : > { %v1452_v54 = vld [vmem:[#allocation8 + $0x470] sm:$0xff] }
 0x15a   : > { %1806 = vmatmul.mubr.f32.gmra.mrb[22].mxu0 %v7159_v21 }
 0x15b   : > { %1810 = vmatprep.mubr.f32.mxu0 %v7030_v17  ;;  %5435 = vmatpush1.bf16.msra.mxu0 %v5434_v10  ;;  %v1403_v17 = vld [vmem:[#allocation8 + $0x2e8] sm:$0xff]  ;;  %v5516_v10 = vpack.c.bf16 %v1449_v13, %v1448_v12  ;;  %v6294_v12 = vld [vmem:[#allocation2 + $0x51] sm:$0xff] }
 0x15c   : > { %5436 = vmatprep.subr.bf16.mxu0 %v8218_v0  ;;  %v5443_v59 = vpack.c.bf16 %v1403_v17, %v1402_v26  ;;  %v1406_v26 = vld [vmem:[#allocation8 + $0x300] sm:$0xff]  ;;  %v1407_v17 = vld [vmem:[#allocation8 + $0x308] sm:$0xff] }
 0x15e   : > { %1811 = vmatmul.mubr.f32.gmra.mrb[24].mxu0 %v7164_v14 }
 0x15f   : > { %1815 = vmatprep.mubr.f32.mxu0 %v7035_v63  ;;  %5438 = vmatpush1.bf16.msra.mxu0 %v5437_v22  ;;  %v1405_v63 = vld [vmem:[#allocation8 + $0x2f8] sm:$0xff]  ;;  %v7245_v22 = vld [vmem:[#allocation2 + $0x188] sm:$0xff] }
 0x160   : > { %5439 = vmatprep.subr.bf16.mxu0 %v8218_v0  ;;  %v5446_v40 = vpack.c.bf16 %v1405_v63, %v1404_v37  ;;  %v5449_v37 = vpack.c.bf16 %v1407_v17, %v1406_v26  ;;  %v1408_v63 = vld [vmem:[#allocation8 + $0x310] sm:$0xff]  ;;  %v6297_v17 = vld [vmem:[#allocation2 + $0x79] sm:$0xff] }
 0x161   : > { %v1424_v26 = vld [vmem:[#allocation8 + $0x390] sm:$0xff] }
 0x162   : > { %1816 = vmatmul.mubr.f32.gmra.mrb[26].mxu0 %v7169_v25 }
 0x163   : > { %1820 = vmatprep.mubr.f32.mxu0 %v7040_v35  ;;  %5441 = vmatpush1.bf16.msra.mxu0 %v5440_v31  ;;  %v7184_v35 = vld [vmem:[#allocation2 + $0xc2] sm:$0xff]  ;;  %v1453_v31 = vld [vmem:[#allocation8 + $0x478] sm:$0xff] }
 0x164   : > { %5442 = vmatprep.subr.bf16.mxu0 %v8218_v0 }
 0x166   : > { %1821 = vmatmul.mubr.f32.gmra.mrb[28].mxu0 %v7174_v34 }
 0x167   : > { %1825 = vmatprep.mubr.f32.mxu0 %v7045_v36  ;;  %5444 = vmatpush1.bf16.msra.mxu0 %v5443_v59  ;;  %v7189_v36 = vld [vmem:[#allocation2 + $0xca] sm:$0xff]  ;;  %v5524_v59 = vpack.c.bf16 %v1453_v31, %v1452_v54 }
 0x168   : > { %5445 = vmatprep.subr.bf16.mxu0 %v8218_v0  ;;  %v6296_v54 = vld [vmem:[#allocation2 + $0x69] sm:$0xff] }
 0x16a   : > { %1826 = vmatmul.mubr.f32.gmra.mrb[30].mxu0 %v7179_v27 }
 0x16b   : > { %1830 = vmatprep.mubr.f32.mxu0 %v7049_v4  ;;  %5447 = vmatpush1.bf16.msra.mxu0 %v5446_v40  ;;  %v7197_v4 = vld [vmem:[#allocation2 + $0xe2] sm:$0xff]  ;;  %v1409_v40 = vld [vmem:[#allocation8 + $0x318] sm:$0xff] }
 0x16c   : > { %5448 = vmatprep.subr.bf16.mxu0 %v8218_v0 }
 0x16e   : > { %1831 = vmatmul.mubr.f32.gmra.mrb[32].mxu0 %v7184_v35 }
 0x16f   : > { %1835 = vmatprep.mubr.f32.mxu0 %v7053_v38  ;;  %v7205_v38 = vld [vmem:[#allocation2 + $0xfa] sm:$0xff] }
 0x172   : > { %1836 = vmatmul.mubr.f32.gmra.mrb[34].mxu0 %v7189_v36 }
 0x173   : > { %1840 = vmatprep.mubr.f32.mxu0 %v7057_v5  ;;  %v7209_v5 = vld [vmem:[#allocation2 + $0x10a] sm:$0xff] }
 0x176   : > { %1841 = vmatmul.mubr.f32.gmra.mrb[36].mxu0 %v7193_v43 }
 0x177   : > { %1845 = vmatprep.mubr.f32.mxu0 %v7061_v41  ;;  %v7213_v41 = vld [vmem:[#allocation2 + $0x112] sm:$0xff] }
 0x17a   : > { %1846 = vmatmul.mubr.f32.gmra.mrb[38].mxu0 %v7197_v4 }
 0x17b   : > { %1850 = vmatprep.mubr.f32.mxu0 %v7065_v42  ;;  %v7217_v42 = vld [vmem:[#allocation2 + $0x122] sm:$0xff] }
 0x17e   : > { %1851 = vmatmul.mubr.f32.gmra.mrb[40].mxu0 %v7201_v28 }
 0x17f   : > { %1855 = vmatprep.mubr.f32.mxu0 %v7069_v44  ;;  %v1438_v44 = vld [vmem:[#allocation8 + $0x400] sm:$0xff] }
 0x180   : > { %v5496_v53 = vpack.c.bf16 %v1439_v50, %v1438_v44  ;;  %v6289_v44 = vld [vmem:[#allocation2 + $0x19] sm:$0xff]  ;;  %v5452_v50 = vpack.c.bf16 %v1409_v40, %v1408_v63  ;;  %v6298_v63 = vld [vmem:[#allocation2 + $0x81] sm:$0xff] }
 0x182   : > { %1856 = vmatmul.mubr.f32.gmra.mrb[42].mxu0 %v7205_v38  ;;  %5497 = vmatprep.subr.bf16.mxu1 %v5496_v53 }
 0x183   : > { %1860 = vmatprep.mubr.f32.mxu0 %v7073_v47  ;;  %v7221_v47 = vld [vmem:[#allocation2 + $0x12a] sm:$0xff]  ;;  %5499 = vmatpush3.bf16.msra.mxu1 %v5496_v53  ;;  %v1410_v53 = vld [vmem:[#allocation8 + $0x320] sm:$0xff] }
 0x186   : > { %1861 = vmatmul.mubr.f32.gmra.mrb[44].mxu0 %v7209_v5 }
 0x187   : > { %1865 = vmatprep.mubr.f32.mxu0 %v7077_v48  ;;  %v1440_v48 = vld [vmem:[#allocation8 + $0x410] sm:$0xff] }
 0x188   : > { %v5500_v11 = vpack.c.bf16 %v1441_v29, %v1440_v48  ;;  %v1411_v48 = vld [vmem:[#allocation8 + $0x328] sm:$0xff] }
 0x189   : > { %v5455_v29 = vpack.c.bf16 %v1411_v48, %v1410_v53  ;;  %v1430_v48 = vld [vmem:[#allocation8 + $0x3c0] sm:$0xff] }
 0x18a   : > { %1866 = vmatmul.mubr.f32.gmra.mrb[46].mxu0 %v7213_v41  ;;  %5501 = vmatprep.subr.bf16.mxu1 %v5500_v11 }
 0x18b   : > { %1870 = vmatprep.mubr.f32.mxu0 %v7081_v49  ;;  %v7225_v49 = vld [vmem:[#allocation2 + $0x13a] sm:$0xff]  ;;  %5503 = vmatpush3.bf16.msra.mxu1 %v5500_v11  ;;  %v1412_v11 = vld [vmem:[#allocation8 + $0x330] sm:$0xff] }
 0x18c   : > { %5505 = vmatprep.subr.bf16.mxu1 %v5504_v15  ;;  %v5458_v30 = vpack.c.bf16 %v1413_v1, %v1412_v11  ;;  %v1432_v11 = vld [vmem:[#allocation8 + $0x3d0] sm:$0xff] }
 0x18d   : > { %v6301_v1 = vld [vmem:[#allocation2 + $0xa9] sm:$0xff] }
 0x18e   : > { %1871 = vmatmul.mubr.f32.gmra.mrb[48].mxu0 %v7217_v42 }
 0x18f   : > { %1875 = vmatprep.mubr.f32.mxu0 %v7085_v51  ;;  %v7229_v51 = vld [vmem:[#allocation2 + $0x142] sm:$0xff]  ;;  %5507 = vmatpush3.bf16.msra.mxu1 %v5504_v15 }
 0x190   : > { %5509 = vmatprep.subr.bf16.mxu1 %v5508_v24  ;;  %v1414_v15 = vld [vmem:[#allocation8 + $0x340] sm:$0xff] }
 0x192   : > { %1876 = vmatmul.mubr.f32.gmra.mrb[50].mxu0 %v7221_v47 }
 0x193   : > { %1880 = vmatprep.mubr.f32.mxu0 %v7089_v52  ;;  %v7233_v52 = vld [vmem:[#allocation2 + $0x152] sm:$0xff]  ;;  %5511 = vmatpush3.bf16.msra.mxu1 %v5508_v24 }
 0x194   : > { %5513 = vmatprep.subr.bf16.mxu1 %v5512_v33  ;;  %v1416_v24 = vld [vmem:[#allocation8 + $0x350] sm:$0xff] }
 0x196   : > { %1881 = vmatmul.mubr.f32.gmra.mrb[52].mxu0 %v7225_v49 }
 0x197   : > { %1885 = vmatprep.mubr.f32.mxu0 %v7097_v56  ;;  %v7237_v56 = vld [vmem:[#allocation2 + $0x15a] sm:$0xff]  ;;  %5515 = vmatpush3.bf16.msra.mxu1 %v5512_v33 }
 0x198   : > { %5517 = vmatprep.subr.bf16.mxu1 %v5516_v10  ;;  %v1418_v33 = vld [vmem:[#allocation8 + $0x360] sm:$0xff] }
 0x19a   : > { %1886 = vmatmul.mubr.f32.gmra.mrb[54].mxu0 %v7229_v51 }
 0x19b   : > { %1890 = vmatprep.mubr.f32.mxu0 %v7105_v60  ;;  %v7243_v60 = vld [vmem:[#allocation2 + $0x16a] sm:$0xff]  ;;  %5519 = vmatpush3.bf16.msra.mxu1 %v5516_v10 }
 0x19c   : > { %v1420_v10 = vld [vmem:[#allocation8 + $0x370] sm:$0xff] }
 0x19e   : > { %1891 = vmatmul.mubr.f32.gmra.mrb[56].mxu0 %v7233_v52 }
 0x19f   : > { %1895 = vmatprep.mubr.f32.mxu0 %v7109_v2  ;;  %v5520_v2 = vpack.c.bf16 %v1451_v45, %v1450_v16  ;;  %v6295_v16 = vld [vmem:[#allocation2 + $0x61] sm:$0xff] }
 0x1a1   : > { %5521 = vmatprep.subr.bf16.mxu1 %v5520_v2 }
 0x1a2   : > { %1896 = vmatmul.mubr.f32.gmra.mrb[58].mxu0 %v7237_v56  ;;  %5523 = vmatpush3.bf16.msra.mxu1 %v5520_v2  ;;  %v1422_v2 = vld [vmem:[#allocation8 + $0x380] sm:$0xff] }
 0x1a3   : > { %1900 = vmatprep.mubr.f32.mxu0 %v7239_v39  ;;  %5525 = vmatprep.subr.bf16.mxu1 %v5524_v59 }
 0x1a6   : > { %1901 = vmatmul.mubr.f32.gmra.mrb[60].mxu0 %v7243_v60  ;;  %5527 = vmatpush3.bf16.msra.mxu1 %v5524_v59 }
 0x1a7   : > { %1905 = vmatprep.mubr.f32.mxu0 %v7245_v22  ;;  %5528 = vmatprep.subr.bf16.mxu1 %v8218_v0 }
 0x1a9   : > { %5177 = vmatmul.mubr.f32.vlgmr.msra.gmra.mrb[0].mxu1 %v7129_v3 }
 0x1aa   : > { %1906 = vmatmul.mubr.f32.gmra.mrb[62].mxu0 %v7249_v46  ;;  %5179 = vmatprep.mubr.f32.mxu1 %v7134_v7 }
 0x1ab   : > { %1975 = vmatprep.mubr.f32.mxu0 %v7116_v23  ;;  %v6290_v23 = vld [vmem:[#allocation2 + $0x21] sm:$0xff] }
 0x1ad   : > { %5180 = vmatmul.mubr.f32.gmra.mrb[2].mxu1 %v7139_v58 }
 0x1ae   : > { %1976 = vmatmul.mubr.f32.vlgmr.msra.gmra.mrb[0].mxu0 %v6289_v44  ;;  %5182 = vmatprep.mubr.f32.mxu1 %v7144_v61  ;;  %v1428_v44 = vld [vmem:[#allocation8 + $0x3b0] sm:$0xff] }
 0x1af   : > { %5450 = vmatpush1.bf16.msra.mxu0 %v5449_v37  ;;  %1980 = vmatprep.mubr.f32.mxu0 %v7121_v57  ;;  %v6291_v57 = vld [vmem:[#allocation2 + $0x31] sm:$0xff]  ;;  %v1426_v37 = vld [vmem:[#allocation8 + $0x3a0] sm:$0xff] }
 0x1b0   : > { %5451 = vmatprep.subr.bf16.mxu0 %v8218_v0 }
 0x1b1   : > { %5183 = vmatmul.mubr.f32.gmra.mrb[4].mxu1 %v7149_v19 }
 0x1b2   : > { %1981 = vmatmul.mubr.f32.gmra.mrb[2].mxu0 %v6290_v23  ;;  %5185 = vmatprep.mubr.f32.mxu1 %v7154_v20  ;;  %v6300_v23 = vld [vmem:[#allocation2 + $0x99] sm:$0xff] }
 0x1b3   : > { %1985 = vmatprep.mubr.f32.mxu0 %v6979_v62  ;;  %5453 = vmatpush1.bf16.msra.mxu0 %v5452_v50  ;;  %v1415_v62 = vld [vmem:[#allocation8 + $0x348] sm:$0xff]  ;;  %v6299_v50 = vld [vmem:[#allocation2 + $0x91] sm:$0xff] }
 0x1b4   : > { %5454 = vmatprep.subr.bf16.mxu0 %v8218_v0  ;;  %v5461_v32 = vpack.c.bf16 %v1415_v62, %v1414_v15  ;;  %v6302_v15 = vld [vmem:[#allocation2 + $0xb1] sm:$0xff] }
 0x1b5   : > { %5186 = vmatmul.mubr.f32.gmra.mrb[6].mxu1 %v7159_v21 }
 0x1b6   : > { %1986 = vmatmul.mubr.f32.gmra.mrb[4].mxu0 %v6291_v57  ;;  %5188 = vmatprep.mubr.f32.mxu1 %v7164_v14 }
 0x1b7   : > { %1990 = vmatprep.mubr.f32.mxu0 %v7129_v3  ;;  %5456 = vmatpush1.bf16.msra.mxu0 %v5455_v29  ;;  %v1417_v3 = vld [vmem:[#allocation8 + $0x358] sm:$0xff] }
 0x1b8   : > { %5457 = vmatprep.subr.bf16.mxu0 %v8218_v0  ;;  %v5464_v6 = vpack.c.bf16 %v1417_v3, %v1416_v24  ;;  %v796_v24 = vld [vmem:[#allocation2 + $0x18a] sm:$0xff]  ;;  %v6303_v3 = vld [vmem:[#allocation2 + $0xc1] sm:$0xff] }
 0x1b9   : > { %5189 = vmatmul.mubr.f32.gmra.mrb[8].mxu1 %v7169_v25 }
 0x1ba   : > { %1991 = vmatmul.mubr.f32.gmra.mrb[6].mxu0 %v6292_v18  ;;  %5191 = vmatprep.mubr.f32.mxu1 %v7174_v34  ;;  %v795_v18 = vld [vmem:[#allocation2 + $0x182] sm:$0xff] }
 0x1bb   : > { %1995 = vmatprep.mubr.f32.mxu0 %v7134_v7  ;;  %5459 = vmatpush1.bf16.msra.mxu0 %v5458_v30  ;;  %v1419_v7 = vld [vmem:[#allocation8 + $0x368] sm:$0xff]  ;;  %v1434_v30 = vld [vmem:[#allocation8 + $0x3e0] sm:$0xff] }
 0x1bc   : > { %5460 = vmatprep.subr.bf16.mxu0 %v8218_v0  ;;  %v5467_v13 = vpack.c.bf16 %v1419_v7, %v1418_v33  ;;  %v6306_v33 = vld [vmem:[#allocation2 + $0xe1] sm:$0xff]  ;;  %v6307_v7 = vld [vmem:[#allocation2 + $0xf1] sm:$0xff] }
 0x1bd   : > { %5192 = vmatmul.mubr.f32.gmra.mrb[10].mxu1 %v7179_v27 }
 0x1be   : > { %1996 = vmatmul.mubr.f32.gmra.mrb[8].mxu0 %v6293_v9  ;;  %5194 = vmatprep.mubr.f32.mxu1 %v7184_v35 }
 0x1bf   : > { %2000 = vmatprep.mubr.f32.mxu0 %v7139_v58  ;;  %5462 = vmatpush1.bf16.msra.mxu0 %v5461_v32  ;;  %v1421_v58 = vld [vmem:[#allocation8 + $0x378] sm:$0xff] }
 0x1c0   : > { %5463 = vmatprep.subr.bf16.mxu0 %v8218_v0  ;;  %v5470_v45 = vpack.c.bf16 %v1421_v58, %v1420_v10  ;;  %v1437_v32 = vld [vmem:[#allocation8 + $0x3f8] sm:$0xff]  ;;  %v3517_v10 = vld [vmem:[#allocation10 + $0x8] sm:$0xff]  ;;  %v830_v58 = vld [vmem:[#allocation2 + $0x30] sm:$0xff] }
 0x1c1   : > { %5195 = vmatmul.mubr.f32.gmra.mrb[12].mxu1 %v7189_v36 }
 0x1c2   : > { %2001 = vmatmul.mubr.f32.gmra.mrb[10].mxu0 %v6294_v12  ;;  %5197 = vmatprep.mubr.f32.mxu1 %v7193_v43  ;;  %v6309_v12 = vld [vmem:[#allocation2 + $0x109] sm:$0xff] }
 0x1c3   : > { %2005 = vmatprep.mubr.f32.mxu0 %v7144_v61  ;;  %5465 = vmatpush1.bf16.msra.mxu0 %v5464_v6  ;;  %v1423_v61 = vld [vmem:[#allocation8 + $0x388] sm:$0xff] }
 0x1c4   : > { %5466 = vmatprep.subr.bf16.mxu0 %v8218_v0  ;;  %v5473_v31 = vpack.c.bf16 %v1423_v61, %v1422_v2  ;;  %v6304_v6 = vld [vmem:[#allocation2 + $0xc9] sm:$0xff] }
 0x1c5   : > { %5198 = vmatmul.mubr.f32.gmra.mrb[14].mxu1 %v7197_v4  ;;  %v3521_v61 = vld [vmem:[#allocation10 + $0x28] sm:$0xff] }
 0x1c6   : > { %2006 = vmatmul.mubr.f32.gmra.mrb[12].mxu0 %v6295_v16  ;;  %5200 = vmatprep.mubr.f32.mxu1 %v7201_v28 }
 0x1c7   : > { %2010 = vmatprep.mubr.f32.mxu0 %v7149_v19  ;;  %5468 = vmatpush1.bf16.msra.mxu0 %v5467_v13  ;;  %v1425_v19 = vld [vmem:[#allocation8 + $0x398] sm:$0xff] }
 0x1c8   : > { %5469 = vmatprep.subr.bf16.mxu0 %v8218_v0  ;;  %v5476_v59 = vpack.c.bf16 %v1425_v19, %v1424_v26  ;;  %v894_v13 = vld [vmem:[#allocation2 + $0x31] sm:$0xff] }
 0x1c9   : > { %5201 = vmatmul.mubr.f32.gmra.mrb[16].mxu1 %v7205_v38  ;;  %v3522_v26 = vld [vmem:[#allocation10 + $0x30] sm:$0xff]  ;;  %v3523_v19 = vld [vmem:[#allocation10 + $0x38] sm:$0xff] }
 0x1ca   : > { %2011 = vmatmul.mubr.f32.gmra.mrb[14].mxu0 %v6296_v54  ;;  %5203 = vmatprep.mubr.f32.mxu1 %v7209_v5  ;;  %v831_v54 = vld [vmem:[#allocation2 + $0x38] sm:$0xff] }
 0x1cb   : > { %2015 = vmatprep.mubr.f32.mxu0 %v7154_v20  ;;  %5471 = vmatpush1.bf16.msra.mxu0 %v5470_v45  ;;  %v1427_v20 = vld [vmem:[#allocation8 + $0x3a8] sm:$0xff]  ;;  %v895_v45 = vld [vmem:[#allocation2 + $0x39] sm:$0xff] }
 0x1cc   : > { %5472 = vmatprep.subr.bf16.mxu0 %v8218_v0  ;;  %v5479_v40 = vpack.c.bf16 %v1427_v20, %v1426_v37  ;;  %v3645_v37 = vld [vmem:[#allocation10 + $0x408] sm:$0xff]  ;;  %v897_v20 = vld [vmem:[#allocation2 + $0x51] sm:$0xff] }
 0x1cd   : > { %5204 = vmatmul.mubr.f32.gmra.mrb[18].mxu1 %v7213_v41 }
 0x1ce   : > { %2016 = vmatmul.mubr.f32.gmra.mrb[16].mxu0 %v6297_v17  ;;  %5206 = vmatprep.mubr.f32.mxu1 %v7217_v42  ;;  %v3644_v17 = vld [vmem:[#allocation10 + $0x400] sm:$0xff] }
 0x1cf   : > { %2020 = vmatprep.mubr.f32.mxu0 %v7159_v21  ;;  %5474 = vmatpush1.bf16.msra.mxu0 %v5473_v31  ;;  %v1429_v21 = vld [vmem:[#allocation8 + $0x3b8] sm:$0xff]  ;;  %v896_v31 = vld [vmem:[#allocation2 + $0x49] sm:$0xff] }
 0x1d0   : > { %5475 = vmatprep.subr.bf16.mxu0 %v8218_v0  ;;  %v5482_v53 = vpack.c.bf16 %v1429_v21, %v1428_v44  ;;  %v3524_v44 = vld [vmem:[#allocation10 + $0x40] sm:$0xff]  ;;  %v3525_v21 = vld [vmem:[#allocation10 + $0x48] sm:$0xff] }
 0x1d1   : > { %5207 = vmatmul.mubr.f32.gmra.mrb[20].mxu1 %v7221_v47 }
 0x1d2   : > { %2021 = vmatmul.mubr.f32.gmra.mrb[18].mxu0 %v6298_v63  ;;  %5209 = vmatprep.mubr.f32.mxu1 %v7225_v49  ;;  %v7329_v63 = vpack.c.bf16 %v3645_v37, %v3644_v17  ;;  %v910_v17 = vld [vmem:[#allocation2 + $0xf1] sm:$0xff]  ;;  %v911_v37 = vld [vmem:[#allocation2 + $0xf9] sm:$0xff] }
 0x1d3   : > { %2025 = vmatprep.mubr.f32.mxu0 %v7164_v14  ;;  %5477 = vmatpush1.bf16.msra.mxu0 %v5476_v59  ;;  %v1431_v14 = vld [vmem:[#allocation8 + $0x3c8] sm:$0xff] }
 0x1d4   : > { %5478 = vmatprep.subr.bf16.mxu0 %v8218_v0  ;;  %v5485_v29 = vpack.c.bf16 %v1431_v14, %v1430_v48  ;;  %v832_v59 = vld [vmem:[#allocation2 + $0x48] sm:$0xff]  ;;  %8260 = vst [vmem:[#allocation15_spill] sm:$0xff] %v7329_v63  ;;  %v5541_v48 = vpack.c.bf16 %v3525_v21, %v3524_v44  ;;  %v3526_v14 = vld [vmem:[#allocation10 + $0x50] sm:$0xff] }
 0x1d5   : > { %5210 = vmatmul.mubr.f32.gmra.mrb[22].mxu1 %v7229_v51  ;;  %v848_v44 = vld [vmem:[#allocation2 + $0x108] sm:$0xff]  ;;  %v913_v21 = vld [vmem:[#allocation2 + $0x111] sm:$0xff] }
 0x1d6   : > { %2026 = vmatmul.mubr.f32.gmra.mrb[20].mxu0 %v6299_v50  ;;  %5212 = vmatprep.mubr.f32.mxu1 %v7233_v52  ;;  %v833_v50 = vld [vmem:[#allocation2 + $0x50] sm:$0xff] }
 0x1d7   : > { %2030 = vmatprep.mubr.f32.mxu0 %v7169_v25  ;;  %5480 = vmatpush1.bf16.msra.mxu0 %v5479_v40  ;;  %v1433_v25 = vld [vmem:[#allocation8 + $0x3d8] sm:$0xff]  ;;  %v5538_v40 = vpack.c.bf16 %v3523_v19, %v3522_v26  ;;  %v909_v26 = vld [vmem:[#allocation2 + $0xe1] sm:$0xff] }
 0x1d8   : > { %5481 = vmatprep.subr.bf16.mxu0 %v8218_v0  ;;  %v5488_v57 = vpack.c.bf16 %v1433_v25, %v1432_v11  ;;  %v899_v11 = vld [vmem:[#allocation2 + $0x69] sm:$0xff]  ;;  %v845_v19 = vld [vmem:[#allocation2 + $0xe0] sm:$0xff] }
 0x1d9   : > { %5213 = vmatmul.mubr.f32.gmra.mrb[24].mxu1 %v7237_v56 }
 0x1da   : > { %2031 = vmatmul.mubr.f32.gmra.mrb[22].mxu0 %v6300_v23  ;;  %5215 = vmatprep.mubr.f32.mxu1 %v7243_v60  ;;  %v3527_v23 = vld [vmem:[#allocation10 + $0x58] sm:$0xff] }
 0x1db   : > { %2035 = vmatprep.mubr.f32.mxu0 %v7174_v34  ;;  %5483 = vmatpush1.bf16.msra.mxu0 %v5482_v53  ;;  %v1435_v34 = vld [vmem:[#allocation8 + $0x3e8] sm:$0xff]  ;;  %v5544_v25 = vpack.c.bf16 %v3527_v23, %v3526_v14 }
 0x1dc   : > { %5484 = vmatprep.subr.bf16.mxu0 %v8218_v0  ;;  %v5491_v62 = vpack.c.bf16 %v1435_v34, %v1434_v30  ;;  %v898_v53 = vld [vmem:[#allocation2 + $0x61] sm:$0xff]  ;;  %v900_v34 = vld [vmem:[#allocation2 + $0x79] sm:$0xff] }
 0x1dd   : > { %5216 = vmatmul.mubr.f32.gmra.mrb[26].mxu1 %v7249_v46  ;;  %v835_v30 = vld [vmem:[#allocation2 + $0x68] sm:$0xff] }
 0x1de   : > { %2036 = vmatmul.mubr.f32.gmra.mrb[24].mxu0 %v6301_v1  ;;  %5218 = vmatprep.mubr.f32.mxu1 %v795_v18  ;;  %v3528_v1 = vld [vmem:[#allocation10 + $0x60] sm:$0xff]  ;;  %v3545_v14 = vld [vmem:[#allocation10 + $0xe8] sm:$0xff] }
 0x1df   : > { %2040 = vmatprep.mubr.f32.mxu0 %v7179_v27  ;;  %5486 = vmatpush1.bf16.msra.mxu0 %v5485_v29  ;;  %v1436_v27 = vld [vmem:[#allocation8 + $0x3f0] sm:$0xff]  ;;  %v834_v29 = vld [vmem:[#allocation2 + $0x60] sm:$0xff] }
 0x1e0   : > { %5487 = vmatprep.subr.bf16.mxu0 %v8218_v0  ;;  %v5494_v9 = vpack.c.bf16 %v1437_v32, %v1436_v27  ;;  %v836_v27 = vld [vmem:[#allocation2 + $0x78] sm:$0xff]  ;;  %v901_v32 = vld [vmem:[#allocation2 + $0x81] sm:$0xff] }
 0x1e1   : > { %5219 = vmatmul.mubr.f32.gmra.mrb[28].mxu1 %v796_v24 }
 0x1e2   : > { %2041 = vmatmul.mubr.f32.gmra.mrb[26].mxu0 %v6302_v15 }
 0x1e3   : > { %2045 = vmatprep.mubr.f32.mxu0 %v7184_v35  ;;  %5489 = vmatpush1.bf16.msra.mxu0 %v5488_v57  ;;  %v6305_v35 = vld [vmem:[#allocation2 + $0xd9] sm:$0xff]  ;;  %v3529_v57 = vld [vmem:[#allocation10 + $0x68] sm:$0xff] }
 0x1e4   : > { %5490 = vmatprep.subr.bf16.mxu0 %v8218_v0  ;;  %v5547_v15 = vpack.c.bf16 %v3529_v57, %v3528_v1  ;;  %v3547_v1 = vld [vmem:[#allocation10 + $0xf8] sm:$0xff]  ;;  %v3646_v57 = vld [vmem:[#allocation10 + $0x410] sm:$0xff] }
 0x1e6   : > { %2046 = vmatmul.mubr.f32.gmra.mrb[28].mxu0 %v6303_v3  ;;  %v3532_v3 = vld [vmem:[#allocation10 + $0x80] sm:$0xff] }
 0x1e7   : > { %2050 = vmatprep.mubr.f32.mxu0 %v7189_v36  ;;  %5492 = vmatpush1.bf16.msra.mxu0 %v5491_v62  ;;  %v6308_v36 = vld [vmem:[#allocation2 + $0xf9] sm:$0xff]  ;;  %v3530_v62 = vld [vmem:[#allocation10 + $0x70] sm:$0xff] }
 0x1e8   : > { %5493 = vmatprep.subr.bf16.mxu0 %v8218_v0 }
 0x1ea   : > { %2051 = vmatmul.mubr.f32.gmra.mrb[30].mxu0 %v6304_v6  ;;  %v837_v6 = vld [vmem:[#allocation2 + $0x80] sm:$0xff] }
 0x1eb   : > { %2055 = vmatprep.mubr.f32.mxu0 %v7193_v43  ;;  %5495 = vmatpush1.bf16.msra.mxu0 %v5494_v9  ;;  %v6310_v43 = vld [vmem:[#allocation2 + $0x111] sm:$0xff]  ;;  %v3533_v9 = vld [vmem:[#allocation10 + $0x88] sm:$0xff] }
 0x1ec   : > { %5721 = vmatprep.subr.bf16.mxu0 %v7329_v63 }
 0x1ee   : > { %2056 = vmatmul.mubr.f32.gmra.mrb[32].mxu0 %v6305_v35  ;;  %v902_v35 = vld [vmem:[#allocation2 + $0x91] sm:$0xff] }
 0x1ef   : > { %2060 = vmatprep.mubr.f32.mxu0 %v7197_v4  ;;  %v6311_v4 = vld [vmem:[#allocation2 + $0x121] sm:$0xff] }
 0x1f2   : > { %2061 = vmatmul.mubr.f32.gmra.mrb[34].mxu0 %v6306_v33  ;;  %v5553_v33 = vpack.c.bf16 %v3533_v9, %v3532_v3  ;;  %v3648_v3 = vld [vmem:[#allocation10 + $0x420] sm:$0xff]  ;;  %v3649_v9 = vld [vmem:[#allocation10 + $0x428] sm:$0xff] }
 0x1f3   : > { %2065 = vmatprep.mubr.f32.mxu0 %v7201_v28  ;;  %v6312_v28 = vld [vmem:[#allocation2 + $0x129] sm:$0xff] }
 0x1f6   : > { %2066 = vmatmul.mubr.f32.gmra.mrb[36].mxu0 %v6307_v7  ;;  %v3534_v7 = vld [vmem:[#allocation10 + $0x90] sm:$0xff] }
 0x1f7   : > { %2070 = vmatprep.mubr.f32.mxu0 %v7205_v38  ;;  %v6313_v38 = vld [vmem:[#allocation2 + $0x139] sm:$0xff] }
 0x1fa   : > { %2071 = vmatmul.mubr.f32.gmra.mrb[38].mxu0 %v6308_v36  ;;  %v3535_v36 = vld [vmem:[#allocation10 + $0x98] sm:$0xff] }
 0x1fb   : > { %2075 = vmatprep.mubr.f32.mxu0 %v7209_v5  ;;  %v6314_v5 = vld [vmem:[#allocation2 + $0x141] sm:$0xff] }
 0x1fe   : > { %2076 = vmatmul.mubr.f32.gmra.mrb[40].mxu0 %v6309_v12  ;;  %v838_v12 = vld [vmem:[#allocation2 + $0x90] sm:$0xff] }
 0x1ff   : > { %2080 = vmatprep.mubr.f32.mxu0 %v7213_v41  ;;  %v6315_v41 = vld [vmem:[#allocation2 + $0x151] sm:$0xff] }
 0x202   : > { %2081 = vmatmul.mubr.f32.gmra.mrb[42].mxu0 %v6310_v43  ;;  %v903_v43 = vld [vmem:[#allocation2 + $0x99] sm:$0xff] }
 0x203   : > { %2085 = vmatprep.mubr.f32.mxu0 %v7217_v42  ;;  %v6316_v42 = vld [vmem:[#allocation2 + $0x159] sm:$0xff] }
 0x206   : > { %2086 = vmatmul.mubr.f32.gmra.mrb[44].mxu0 %v6311_v4  ;;  %v5556_v4 = vpack.c.bf16 %v3535_v36, %v3534_v7  ;;  %v7357_v7 = vld [vmem:[#allocation2] sm:$0xff] }
 0x207   : > { %2090 = vmatprep.mubr.f32.mxu0 %v7221_v47  ;;  %v6317_v47 = vld [vmem:[#allocation2 + $0x169] sm:$0xff]  ;;  %v2716_v36 = vld [vmem:[#allocation3 + $0x9] sm:$0xff] }
 0x20a   : > { %2091 = vmatmul.mubr.f32.gmra.mrb[46].mxu0 %v6312_v28  ;;  %v3536_v28 = vld [vmem:[#allocation10 + $0xa0] sm:$0xff] }
 0x20b   : > { %2095 = vmatprep.mubr.f32.mxu0 %v7225_v49  ;;  %v6318_v49 = vld [vmem:[#allocation2 + $0x171] sm:$0xff] }
 0x20e   : > { %2096 = vmatmul.mubr.f32.gmra.mrb[48].mxu0 %v6313_v38  ;;  %v3537_v38 = vld [vmem:[#allocation10 + $0xa8] sm:$0xff] }
 0x20f   : > { %2100 = vmatprep.mubr.f32.mxu0 %v7229_v51  ;;  %v988_v51 = vld [vmem:[#allocation2 + $0x19a] sm:$0xff] }
 0x210   : > { %5221 = vmatprep.mubr.f32.mxu1 %v988_v51  ;;  %v840_v51 = vld [vmem:[#allocation2 + $0xa8] sm:$0xff] }
 0x212   : > { %2101 = vmatmul.mubr.f32.gmra.mrb[50].mxu0 %v6314_v5  ;;  %v839_v5 = vld [vmem:[#allocation2 + $0x98] sm:$0xff] }
 0x213   : > { %2105 = vmatprep.mubr.f32.mxu0 %v7233_v52  ;;  %v989_v52 = vld [vmem:[#allocation2 + $0x1a2] sm:$0xff] }
 0x214   : > { %5222 = vmatmul.mubr.f32.gmra.mrb[30].mxu1 %v989_v52  ;;  %v905_v52 = vld [vmem:[#allocation2 + $0xb1] sm:$0xff] }
 0x216   : > { %2106 = vmatmul.mubr.f32.gmra.mrb[52].mxu0 %v6315_v41  ;;  %v904_v41 = vld [vmem:[#allocation2 + $0xa9] sm:$0xff] }
 0x217   : > { %2110 = vmatprep.mubr.f32.mxu0 %v7237_v56  ;;  %v3516_v56 = vld [vmem:[#allocation10] sm:$0xff] }
 0x218   : > { %v5529_v16 = vpack.c.bf16 %v3517_v10, %v3516_v56  ;;  %v3540_v56 = vld [vmem:[#allocation10 + $0xc0] sm:$0xff]  ;;  %v3541_v10 = vld [vmem:[#allocation10 + $0xc8] sm:$0xff] }
 0x21a   : > { %2111 = vmatmul.mubr.f32.gmra.mrb[54].mxu0 %v6316_v42  ;;  %5530 = vmatpush1.bf16.msra.mxu1 %v5529_v16  ;;  %v5559_v42 = vpack.c.bf16 %v3537_v38, %v3536_v28  ;;  %v5565_v16 = vpack.c.bf16 %v3541_v10, %v3540_v56  ;;  %v918_v38 = vld [vmem:[#allocation2 + $0x151] sm:$0xff]  ;;  %v3549_v56 = vld [vmem:[#allocation10 + $0x108] sm:$0xff] }
 0x21b   : > { %2115 = vmatprep.mubr.f32.mxu0 %v7243_v60  ;;  %v3518_v60 = vld [vmem:[#allocation10 + $0x10] sm:$0xff]  ;;  %5531 = vmatprep.subr.bf16.mxu1 %v8218_v0 }
 0x21e   : > { %2116 = vmatmul.mubr.f32.gmra.mrb[56].mxu0 %v6317_v47  ;;  %v3538_v47 = vld [vmem:[#allocation10 + $0xb0] sm:$0xff] }
 0x21f   : > { %2120 = vmatprep.mubr.f32.mxu0 %v7249_v46  ;;  %v3519_v46 = vld [vmem:[#allocation10 + $0x18] sm:$0xff] }
 0x220   : > { %v5532_v2 = vpack.c.bf16 %v3519_v46, %v3518_v60  ;;  %v841_v60 = vld [vmem:[#allocation2 + $0xb0] sm:$0xff] }
 0x221   : > { %v3542_v46 = vld [vmem:[#allocation10 + $0xd0] sm:$0xff] }
 0x222   : > { %2121 = vmatmul.mubr.f32.gmra.mrb[58].mxu0 %v6318_v49  ;;  %5533 = vmatpush1.bf16.msra.mxu1 %v5532_v2  ;;  %v3539_v49 = vld [vmem:[#allocation10 + $0xb8] sm:$0xff]  ;;  %v842_v2 = vld [vmem:[#allocation2 + $0xc0] sm:$0xff] }
 0x223   : > { %2125 = vmatprep.mubr.f32.mxu0 %v795_v18  ;;  %5534 = vmatprep.subr.bf16.mxu1 %v8218_v0  ;;  %v3531_v18 = vld [vmem:[#allocation10 + $0x78] sm:$0xff] }
 0x226   : > { %2126 = vmatmul.mubr.f32.gmra.mrb[60].mxu0 %v7092_v55  ;;  %v3520_v55 = vld [vmem:[#allocation10 + $0x20] sm:$0xff] }
 0x227   : > { %2130 = vmatprep.mubr.f32.mxu0 %v796_v24  ;;  %v5550_v24 = vpack.c.bf16 %v3531_v18, %v3530_v62  ;;  %v916_v18 = vld [vmem:[#allocation2 + $0x139] sm:$0xff] }
 0x22a   : > { %2131 = vmatmul.mubr.f32.gmra.mrb[62].mxu0 %v7100_v8  ;;  %v5535_v8 = vpack.c.bf16 %v3521_v61, %v3520_v55  ;;  %v907_v55 = vld [vmem:[#allocation2 + $0xc9] sm:$0xff] }
 0x22b   : > { %2200 = vmatprep.mubr.f32.mxu0 %v894_v13  ;;  %v5562_v13 = vpack.c.bf16 %v3539_v49, %v3538_v47  ;;  %v3653_v47 = vld [vmem:[#allocation10 + $0x448] sm:$0xff]  ;;  %v854_v49 = vld [vmem:[#allocation2 + $0x150] sm:$0xff] }
 0x22c   : > { %5536 = vmatpush1.bf16.msra.mxu1 %v5535_v8  ;;  %v844_v8 = vld [vmem:[#allocation2 + $0xd8] sm:$0xff] }
 0x22d   : > { %5537 = vmatprep.subr.bf16.mxu1 %v8218_v0 }
 0x22e   : > { %2201 = vmatmul.mubr.f32.vlgmr.msra.gmra.mrb[0].mxu0 %v830_v58  ;;  %v906_v58 = vld [vmem:[#allocation2 + $0xc1] sm:$0xff] }
 0x22f   : > { %2205 = vmatprep.mubr.f32.mxu0 %v895_v45  ;;  %5723 = vmatpush3.bf16.msra.mxu0 %v7329_v63  ;;  %v3543_v45 = vld [vmem:[#allocation10 + $0xd8] sm:$0xff] }
 0x230   : > { %5539 = vmatpush1.bf16.msra.mxu1 %v5538_v40  ;;  %v5568_v61 = vpack.c.bf16 %v3543_v45, %v3542_v46  ;;  %v912_v40 = vld [vmem:[#allocation2 + $0x109] sm:$0xff] }
 0x231   : > { %5540 = vmatprep.subr.bf16.mxu1 %v8218_v0  ;;  %v920_v45 = vld [vmem:[#allocation2 + $0x169] sm:$0xff] }
 0x232   : > { %2206 = vmatmul.mubr.f32.gmra.mrb[2].mxu0 %v831_v54  ;;  %v843_v54 = vld [vmem:[#allocation2 + $0xc8] sm:$0xff] }
 0x233   : > { %2210 = vmatprep.mubr.f32.mxu0 %v896_v31  ;;  %v908_v31 = vld [vmem:[#allocation2 + $0xd9] sm:$0xff] }
 0x234   : > { %5542 = vmatpush1.bf16.msra.mxu1 %v5541_v48  ;;  %v3544_v48 = vld [vmem:[#allocation10 + $0xe0] sm:$0xff] }
 0x235   : > { %5543 = vmatprep.subr.bf16.mxu1 %v8218_v0  ;;  %v5571_v23 = vpack.c.bf16 %v3545_v14, %v3544_v48  ;;  %v3552_v48 = vld [vmem:[#allocation10 + $0x120] sm:$0xff]  ;;  %v3553_v14 = vld [vmem:[#allocation10 + $0x128] sm:$0xff] }
 0x236   : > { %2211 = vmatmul.mubr.f32.gmra.mrb[4].mxu0 %v832_v59  ;;  %v846_v59 = vld [vmem:[#allocation2 + $0xf0] sm:$0xff] }
 0x237   : > { %2215 = vmatprep.mubr.f32.mxu0 %v897_v20  ;;  %v847_v20 = vld [vmem:[#allocation2 + $0xf8] sm:$0xff] }
 0x238   : > { %5545 = vmatpush1.bf16.msra.mxu1 %v5544_v25  ;;  %v3546_v25 = vld [vmem:[#allocation10 + $0xf0] sm:$0xff] }
 0x239   : > { %5546 = vmatprep.subr.bf16.mxu1 %v8218_v0 }
 0x23a   : > { %2216 = vmatmul.mubr.f32.gmra.mrb[6].mxu0 %v833_v50  ;;  %v849_v50 = vld [vmem:[#allocation2 + $0x110] sm:$0xff] }
 0x23b   : > { %2220 = vmatprep.mubr.f32.mxu0 %v898_v53  ;;  %v914_v53 = vld [vmem:[#allocation2 + $0x121] sm:$0xff] }
 0x23c   : > { %5548 = vmatpush1.bf16.msra.mxu1 %v5547_v15  ;;  %v851_v15 = vld [vmem:[#allocation2 + $0x128] sm:$0xff] }
 0x23d   : > { %5549 = vmatprep.subr.bf16.mxu1 %v8218_v0 }
 0x23e   : > { %2221 = vmatmul.mubr.f32.gmra.mrb[8].mxu0 %v834_v29  ;;  %v850_v29 = vld [vmem:[#allocation2 + $0x120] sm:$0xff] }
 0x23f   : > { %2225 = vmatprep.mubr.f32.mxu0 %v899_v11  ;;  %v915_v11 = vld [vmem:[#allocation2 + $0x129] sm:$0xff] }
 0x240   : > { %5551 = vmatpush1.bf16.msra.mxu1 %v5550_v24 }
 0x241   : > { %5552 = vmatprep.subr.bf16.mxu1 %v8218_v0 }
 0x242   : > { %2226 = vmatmul.mubr.f32.gmra.mrb[10].mxu0 %v835_v30  ;;  %v3647_v30 = vld [vmem:[#allocation10 + $0x418] sm:$0xff] }
 0x243   : > { %2230 = vmatprep.mubr.f32.mxu0 %v900_v34  ;;  %v5574_v34 = vpack.c.bf16 %v3547_v1, %v3546_v25  ;;  %v7346_v62 = vpack.c.bf16 %v3647_v30, %v3646_v57  ;;  %v925_v57 = vld [vmem:[#allocation2 + $0x1a1] sm:$0xff]  ;;  %v3554_v30 = vld [vmem:[#allocation10 + $0x130] sm:$0xff] }
 0x244   : > { %5554 = vmatpush1.bf16.msra.mxu1 %v5553_v33  ;;  %v917_v33 = vld [vmem:[#allocation2 + $0x141] sm:$0xff] }
 0x245   : > { %5555 = vmatprep.subr.bf16.mxu1 %v8218_v0  ;;  %8261 = vst [vmem:[#allocation16_spill] sm:$0xff] %v7346_v62  ;;  %5725 = vmatprep.subr.bf16.mxu0 %v7346_v62 }
 0x246   : > { %2231 = vmatmul.mubr.f32.gmra.mrb[12].mxu0 %v836_v27 }
 0x247   : > { %2235 = vmatprep.mubr.f32.mxu0 %v901_v32  ;;  %v2715_v32 = vld [vmem:[#allocation3 + $0x1] sm:$0xff]  ;;  %5727 = vmatpush3.bf16.msra.mxu0 %v7346_v62 }
 0x248   : > { %5557 = vmatpush1.bf16.msra.mxu1 %v5556_v4  ;;  %3731 = vmatprep.mubr.f32.mxu1 %v2715_v32  ;;  %v853_v4 = vld [vmem:[#allocation2 + $0x140] sm:$0xff]  ;;  %v3557_v32 = vld [vmem:[#allocation10 + $0x148] sm:$0xff] }
 0x249   : > { %5558 = vmatprep.subr.bf16.mxu1 %v8218_v0 }
 0x24a   : > { %2236 = vmatmul.mubr.f32.gmra.mrb[14].mxu0 %v837_v6  ;;  %v852_v6 = vld [vmem:[#allocation2 + $0x138] sm:$0xff] }
 0x24b   : > { %2240 = vmatprep.mubr.f32.mxu0 %v902_v35  ;;  %v7355_v35 = vpack.c.bf16 %v3649_v9, %v3648_v3 }
 0x24c   : > { %5560 = vmatpush1.bf16.msra.mxu1 %v5559_v42  ;;  %v3652_v42 = vld [vmem:[#allocation10 + $0x440] sm:$0xff] }
 0x24d   : > { %5561 = vmatprep.subr.bf16.mxu1 %v8218_v0  ;;  %8262 = vst [vmem:[#allocation17_spill] sm:$0xff] %v7355_v35  ;;  %5729 = vmatprep.subr.bf16.mxu0 %v7355_v35 }
 0x24e   : > { %2241 = vmatmul.mubr.f32.gmra.mrb[16].mxu0 %v838_v12  ;;  %v3650_v12 = vld [vmem:[#allocation10 + $0x430] sm:$0xff] }
 0x24f   : > { %2245 = vmatprep.mubr.f32.mxu0 %v903_v43  ;;  %v3651_v43 = vld [vmem:[#allocation10 + $0x438] sm:$0xff]  ;;  %5731 = vmatpush3.bf16.msra.mxu0 %v7355_v35 }
 0x250   : > { %5563 = vmatpush1.bf16.msra.mxu1 %v5562_v13  ;;  %v7362_v28 = vpack.c.bf16 %v3651_v43, %v3650_v12  ;;  %v3548_v13 = vld [vmem:[#allocation10 + $0x100] sm:$0xff] }
 0x251   : > { %5564 = vmatprep.subr.bf16.mxu1 %v8218_v0  ;;  %v5577_v10 = vpack.c.bf16 %v3549_v56, %v3548_v13  ;;  %v3563_v13 = vld [vmem:[#allocation10 + $0x178] sm:$0xff] }
 0x252   : > { %2246 = vmatmul.mubr.f32.gmra.mrb[18].mxu0 %v839_v5  ;;  %8263 = vst [vmem:[#allocation18_spill] sm:$0xff] %v7362_v28  ;;  %5733 = vmatprep.subr.bf16.mxu0 %v7362_v28 }
 0x253   : > { %2250 = vmatprep.mubr.f32.mxu0 %v904_v41  ;;  %5735 = vmatpush3.bf16.msra.mxu0 %v7362_v28 }
 0x254   : > { %5566 = vmatpush1.bf16.msra.mxu1 %v5565_v16  ;;  %v855_v16 = vld [vmem:[#allocation2 + $0x158] sm:$0xff] }
 0x255   : > { %5567 = vmatprep.subr.bf16.mxu1 %v8218_v0 }
 0x256   : > { %2251 = vmatmul.mubr.f32.gmra.mrb[20].mxu0 %v840_v51  ;;  %v7371_v51 = vpack.c.bf16 %v3653_v47, %v3652_v42 }
 0x257   : > { %2255 = vmatprep.mubr.f32.mxu0 %v905_v52  ;;  %v919_v52 = vld [vmem:[#allocation2 + $0x159] sm:$0xff] }
 0x258   : > { %5569 = vmatpush1.bf16.msra.mxu1 %v5568_v61  ;;  %8264 = vst [vmem:[#allocation19_spill] sm:$0xff] %v7371_v51  ;;  %5737 = vmatprep.subr.bf16.mxu0 %v7371_v51  ;;  %v3656_v61 = vld [vmem:[#allocation10 + $0x460] sm:$0xff] }
 0x259   : > { %5570 = vmatprep.subr.bf16.mxu1 %v8218_v0  ;;  %5739 = vmatpush3.bf16.msra.mxu0 %v7371_v51 }
 0x25a   : > { %2256 = vmatmul.mubr.f32.gmra.mrb[22].mxu0 %v841_v60  ;;  %v3654_v60 = vld [vmem:[#allocation10 + $0x450] sm:$0xff] }
 0x25b   : > { %2260 = vmatprep.mubr.f32.mxu0 %v906_v58  ;;  %v3655_v58 = vld [vmem:[#allocation10 + $0x458] sm:$0xff] }
 0x25c   : > { %5572 = vmatpush1.bf16.msra.mxu1 %v5571_v23  ;;  %v7374_v46 = vpack.c.bf16 %v3655_v58, %v3654_v60  ;;  %v5583_v23 = vpack.c.bf16 %v3553_v14, %v3552_v48  ;;  %v3564_v58 = vld [vmem:[#allocation10 + $0x180] sm:$0xff]  ;;  %v3570_v14 = vld [vmem:[#allocation10 + $0x1b0] sm:$0xff] }
 0x25d   : > { %5573 = vmatprep.subr.bf16.mxu1 %v8218_v0 }
 0x25e   : > { %2261 = vmatmul.mubr.f32.gmra.mrb[24].mxu0 %v842_v2  ;;  %8265 = vst [vmem:[#allocation20_spill] sm:$0xff] %v7374_v46  ;;  %5741 = vmatprep.subr.bf16.mxu0 %v7374_v46 }
 0x25f   : > { %2265 = vmatprep.mubr.f32.mxu0 %v907_v55  ;;  %5743 = vmatpush3.bf16.msra.mxu0 %v7374_v46 }
 0x260   : > { %5575 = vmatpush1.bf16.msra.mxu1 %v5574_v34  ;;  %v3555_v34 = vld [vmem:[#allocation10 + $0x138] sm:$0xff] }
 0x261   : > { %5576 = vmatprep.subr.bf16.mxu1 %v8218_v0 }
 0x262   : > { %2266 = vmatmul.mubr.f32.gmra.mrb[26].mxu0 %v843_v54  ;;  %v3657_v54 = vld [vmem:[#allocation10 + $0x468] sm:$0xff] }
 0x263   : > { %2270 = vmatprep.mubr.f32.mxu0 %v908_v31  ;;  %3732 = vmatmul.mubr.f32.vlgmr.msra.gmra.mrb[32].mxu1 %v7357_v7  ;;  %v856_v31 = vld [vmem:[#allocation2 + $0x168] sm:$0xff] }
 0x264   : > { %3736 = vmatprep.mubr.f32.mxu1 %v2716_v36  ;;  %5578 = vmatpush1.bf16.msra.mxu1 %v5577_v10  ;;  %v3559_v36 = vld [vmem:[#allocation10 + $0x158] sm:$0xff] }
 0x265   : > { %5579 = vmatprep.subr.bf16.mxu1 %v8218_v0 }
 0x266   : > { %2271 = vmatmul.mubr.f32.gmra.mrb[28].mxu0 %v844_v8  ;;  %v7383_v8 = vpack.c.bf16 %v3657_v54, %v3656_v61 }
 0x267   : > { %2275 = vmatprep.mubr.f32.mxu0 %v909_v26  ;;  %3737 = vmatmul.mubr.f32.gmra.mrb[34].mxu1 %v7357_v7  ;;  %v921_v26 = vld [vmem:[#allocation2 + $0x171] sm:$0xff] }
 0x268   : > { %8266 = vst [vmem:[#allocation21_spill] sm:$0xff] %v7383_v8  ;;  %5745 = vmatprep.subr.bf16.mxu0 %v7383_v8 }
 0x269   : > { %5747 = vmatpush3.bf16.msra.mxu0 %v7383_v8 }
 0x26a   : > { %2276 = vmatmul.mubr.f32.gmra.mrb[30].mxu0 %v845_v19  ;;  %v3550_v19 = vld [vmem:[#allocation10 + $0x110] sm:$0xff] }
 0x26b   : > { %2280 = vmatprep.mubr.f32.mxu0 %v910_v17  ;;  %v3551_v17 = vld [vmem:[#allocation10 + $0x118] sm:$0xff] }
 0x26e   : > { %2281 = vmatmul.mubr.f32.gmra.mrb[32].mxu0 %v846_v59  ;;  %v5580_v59 = vpack.c.bf16 %v3551_v17, %v3550_v19 }
 0x26f   : > { %2285 = vmatprep.mubr.f32.mxu0 %v911_v37  ;;  %v3658_v37 = vld [vmem:[#allocation10 + $0x470] sm:$0xff] }
 0x270   : > { %5581 = vmatpush1.bf16.msra.mxu1 %v5580_v59 }
 0x271   : > { %5582 = vmatprep.subr.bf16.mxu1 %v8218_v0 }
 0x272   : > { %2286 = vmatmul.mubr.f32.gmra.mrb[34].mxu0 %v847_v20  ;;  %v3659_v20 = vld [vmem:[#allocation10 + $0x478] sm:$0xff] }
 0x273   : > { %2290 = vmatprep.mubr.f32.mxu0 %v912_v40  ;;  %v857_v40 = vld [vmem:[#allocation2 + $0x170] sm:$0xff] }
 0x274   : > { %5584 = vmatpush1.bf16.msra.mxu1 %v5583_v23  ;;  %v3571_v23 = vld [vmem:[#allocation10 + $0x1b8] sm:$0xff] }
 0x275   : > { %5585 = vmatprep.subr.bf16.mxu1 %v8218_v0 }
 0x276   : > { %2291 = vmatmul.mubr.f32.gmra.mrb[36].mxu0 %v848_v44  ;;  %v7387_v44 = vpack.c.bf16 %v3659_v20, %v3658_v37  ;;  %v3568_v37 = vld [vmem:[#allocation10 + $0x1a0] sm:$0xff]  ;;  %v3569_v20 = vld [vmem:[#allocation10 + $0x1a8] sm:$0xff] }
 0x277   : > { %2295 = vmatprep.mubr.f32.mxu0 %v913_v21 }
 0x278   : > { %8267 = vst [vmem:[#allocation22_spill] sm:$0xff] %v7387_v44  ;;  %5749 = vmatprep.subr.bf16.mxu0 %v7387_v44 }
 0x279   : > { %5751 = vmatpush3.bf16.msra.mxu0 %v7387_v44 }
 0x27a   : > { %2296 = vmatmul.mubr.f32.gmra.mrb[38].mxu0 %v849_v50 }
 0x27b   : > { %2300 = vmatprep.mubr.f32.mxu0 %v914_v53  ;;  %v6320_v53 = vld [vmem:[#allocation2 + $0x181] sm:$0xff] }
 0x27c   : > { %v7349_v27 = vpop.f32.mrb[0].mxu1 }
 0x27d   : > { %v7352_v24 = vpop.f32.mrb[1].mxu1 }
 0x27e   : > { %2301 = vmatmul.mubr.f32.gmra.mrb[40].mxu0 %v850_v29  ;;  %v6321_v29 = vld [vmem:[#allocation2 + $0x189] sm:$0xff] }
 0x27f   : > { %2305 = vmatprep.mubr.f32.mxu0 %v915_v11  ;;  %v924_v11 = vld [vmem:[#allocation2 + $0x199] sm:$0xff] }
 0x280   : > { %v7366_v5 = vpop.f32.mrb[2].mxu1 }
 0x281   : > { %v7368_v41 = vpop.f32.mrb[3].mxu1 }
 0x282   : > { %2306 = vmatmul.mubr.f32.gmra.mrb[42].mxu0 %v851_v15  ;;  %v5586_v15 = vpack.c.bf16 %v3555_v34, %v3554_v30  ;;  %v3572_v30 = vld [vmem:[#allocation10 + $0x1c0] sm:$0xff]  ;;  %v3573_v34 = vld [vmem:[#allocation10 + $0x1c8] sm:$0xff] }
 0x283   : > { %2310 = vmatprep.mubr.f32.mxu0 %v916_v18 }
 0x284   : > { %v7379_v2 = vpop.f32.mrb[4].mxu1  ;;  %5587 = vmatpush1.bf16.msra.mxu1 %v5586_v15  ;;  %v5613_v15 = vpack.c.bf16 %v3573_v34, %v3572_v30 }
 0x285   : > { %v7381_v55 = vpop.f32.mrb[5].mxu1  ;;  %5588 = vmatprep.subr.bf16.mxu1 %v8218_v0 }
 0x286   : > { %2311 = vmatmul.mubr.f32.gmra.mrb[44].mxu0 %v852_v6 }
 0x287   : > { %2315 = vmatprep.mubr.f32.mxu0 %v917_v33  ;;  %v3558_v33 = vld [vmem:[#allocation10 + $0x150] sm:$0xff] }
 0x288   : > { %v7392_v21 = vpop.f32.mrb[6].mxu1  ;;  %v5592_v12 = vpack.c.bf16 %v3559_v36, %v3558_v33  ;;  %v3575_v33 = vld [vmem:[#allocation10 + $0x1d8] sm:$0xff] }
 0x289   : > { %v7394_v50 = vpop.f32.mrb[7].mxu1 }
 0x28a   : > { %2316 = vmatmul.mubr.f32.gmra.mrb[46].mxu0 %v853_v4  ;;  %v3560_v4 = vld [vmem:[#allocation10 + $0x160] sm:$0xff] }
 0x28b   : > { %2320 = vmatprep.mubr.f32.mxu0 %v918_v38  ;;  %v3561_v38 = vld [vmem:[#allocation10 + $0x168] sm:$0xff] }
 0x28c   : > { %v7399_v25 = vpop.f32.mrb[8].mxu1  ;;  %v5595_v42 = vpack.c.bf16 %v3561_v38, %v3560_v4  ;;  %v3576_v38 = vld [vmem:[#allocation10 + $0x1e0] sm:$0xff] }
 0x28d   : > { %v7402_v1 = vpop.f32.mrb[9].mxu1 }
 0x28e   : > { %2321 = vmatmul.mubr.f32.gmra.mrb[48].mxu0 %v854_v49 }
 0x28f   : > { %2325 = vmatprep.mubr.f32.mxu0 %v919_v52  ;;  %v3562_v52 = vld [vmem:[#allocation10 + $0x170] sm:$0xff] }
 0x290   : > { %v5598_v56 = vpack.c.bf16 %v3563_v13, %v3562_v52  ;;  %v7464_v13 = vld [vmem:[%s8211_s2] ss:$0 sm:$0xff] }
 0x292   : > { %2326 = vmatmul.mubr.f32.gmra.mrb[50].mxu0 %v855_v16  ;;  %v3565_v16 = vld [vmem:[#allocation10 + $0x188] sm:$0xff] }
 0x293   : > { %2330 = vmatprep.mubr.f32.mxu0 %v920_v45  ;;  %v5601_v45 = vpack.c.bf16 %v3565_v16, %v3564_v58 }
 0x296   : > { %2331 = vmatmul.mubr.f32.gmra.mrb[52].mxu0 %v856_v31  ;;  %v3566_v31 = vld [vmem:[#allocation10 + $0x190] sm:$0xff] }
 0x297   : > { %2335 = vmatprep.mubr.f32.mxu0 %v921_v26  ;;  %v3567_v26 = vld [vmem:[#allocation10 + $0x198] sm:$0xff] }
 0x298   : > { %v5604_v19 = vpack.c.bf16 %v3567_v26, %v3566_v31  ;;  %v3579_v31 = vld [vmem:[#allocation10 + $0x1f8] sm:$0xff] }
 0x29a   : > { %2336 = vmatmul.mubr.f32.gmra.mrb[54].mxu0 %v857_v40  ;;  %v5607_v40 = vpack.c.bf16 %v3569_v20, %v3568_v37 }
 0x29b   : > { %2340 = vmatprep.mubr.f32.mxu0 %v6320_v53 }
 0x29e   : > { %2341 = vmatmul.mubr.f32.gmra.mrb[56].mxu0 %v7239_v39  ;;  %v7406_v39 = vpop.f32.mrb[10].mxu1 }
 0x29f   : > { %2345 = vmatprep.mubr.f32.mxu0 %v6321_v29  ;;  %v7409_v18 = vpop.f32.mrb[11].mxu1  ;;  %v5610_v29 = vpack.c.bf16 %v3571_v23, %v3570_v14 }
 0x2a0   : > { %v7412_v9 = vpop.f32.mrb[12].mxu1 }
 0x2a1   : > { %v7414_v6 = vpop.f32.mrb[13].mxu1 }
 0x2a2   : > { %2346 = vmatmul.mubr.f32.gmra.mrb[58].mxu0 %v7245_v22  ;;  %v3556_v22 = vld [vmem:[#allocation10 + $0x140] sm:$0xff]  ;;  %v7417_v43 = vpop.f32.mrb[14].mxu1 }
 0x2a3   : > { %2350 = vmatprep.mubr.f32.mxu0 %v924_v11  ;;  %v5589_v3 = vpack.c.bf16 %v3557_v32, %v3556_v22 }
 0x2a5   : > { %5590 = vmatpush1.bf16.msra.mxu1 %v5589_v3  ;;  %v3574_v3 = vld [vmem:[#allocation10 + $0x1d0] sm:$0xff] }
 0x2a6   : > { %2351 = vmatmul.mubr.f32.gmra.mrb[60].mxu0 %v7357_v7  ;;  %5591 = vmatprep.subr.bf16.mxu1 %v8218_v0  ;;  %v5616_v36 = vpack.c.bf16 %v3575_v33, %v3574_v3 }
 0x2a7   : > { %2355 = vmatprep.mubr.f32.mxu0 %v925_v57 }
 0x2a9   : > { %5593 = vmatpush1.bf16.msra.mxu1 %v5592_v12 }
 0x2aa   : > { %2356 = vmatmul.mubr.f32.gmra.mrb[62].mxu0 %v7357_v7  ;;  %5594 = vmatprep.subr.bf16.mxu1 %v8218_v0  ;;  %v7419_v7 = vpop.f32.mrb[15].mxu1 }
 0x2ab   : > { %v7422_v47 = vpop.f32.mrb[16].mxu1 }
 0x2ac   : > { %v7424_v49 = vpop.f32.mrb[17].mxu1 }
 0x2ad   : > { %5596 = vmatpush1.bf16.msra.mxu1 %v5595_v42  ;;  %v7427_v10 = vpop.f32.mrb[18].mxu1  ;;  %v3577_v42 = vld [vmem:[#allocation10 + $0x1e8] sm:$0xff] }
 0x2ae   : > { %5597 = vmatprep.subr.bf16.mxu1 %v8218_v0  ;;  %v7429_v60 = vpop.f32.mrb[19].mxu1  ;;  %v5619_v52 = vpack.c.bf16 %v3577_v42, %v3576_v38 }
 0x2af   : > { %v7432_v61 = vpop.f32.mrb[20].mxu1 }
 0x2b0   : > { %v7434_v54 = vpop.f32.mrb[21].mxu1 }
 0x2b1   : > { %5599 = vmatpush1.bf16.msra.mxu1 %v5598_v56  ;;  %v7437_v17 = vpop.f32.mrb[22].mxu1 }
 0x2b2   : > { %5600 = vmatprep.subr.bf16.mxu1 %v8218_v0  ;;  %v7439_v59 = vpop.f32.mrb[23].mxu1 }
 0x2b3   : > { %v7442_v53 = vpop.f32.mrb[24].mxu1 }
 0x2b4   : > { %v7444_v48 = vpop.f32.mrb[25].mxu1 }
 0x2b5   : > { %5602 = vmatpush1.bf16.msra.mxu1 %v5601_v45  ;;  %v7447_v11 = vpop.f32.mrb[26].mxu1  ;;  %v3578_v45 = vld [vmem:[#allocation10 + $0x1f0] sm:$0xff] }
 0x2b6   : > { %5603 = vmatprep.subr.bf16.mxu1 %v8218_v0  ;;  %v7449_v57 = vpop.f32.mrb[27].mxu1  ;;  %v5622_v26 = vpack.c.bf16 %v3579_v31, %v3578_v45 }
 0x2b7   : > { %v7452_v22 = vpop.f32.mrb[28].mxu1 }
 0x2b8   : > { %v7454_v32 = vpop.f32.mrb[29].mxu1 }
 0x2b9   : > { %5605 = vmatpush1.bf16.msra.mxu1 %v5604_v19 }
 0x2ba   : > { %5606 = vmatprep.subr.bf16.mxu1 %v8218_v0 }
 0x2bd   : > { %5608 = vmatpush1.bf16.msra.mxu1 %v5607_v40 }
 0x2be   : > { %5609 = vmatprep.subr.bf16.mxu1 %v8218_v0 }
 0x2c1   : > { %5611 = vmatpush1.bf16.msra.mxu1 %v5610_v29 }
 0x2c2   : > { %5612 = vmatprep.subr.bf16.mxu1 %v8218_v0 }
 0x2c5   : > { %5614 = vmatpush1.bf16.msra.mxu1 %v5613_v15 }
 0x2c6   : > { %5615 = vmatprep.subr.bf16.mxu1 %v8218_v0 }
 0x2c9   : > { %5617 = vmatpush1.bf16.msra.mxu1 %v5616_v36 }
 0x2ca   : > { %5618 = vmatprep.subr.bf16.mxu1 %v8218_v0 }
 0x2cd   : > { %5620 = vmatpush1.bf16.msra.mxu1 %v5619_v52 }
 0x2ce   : > { %5621 = vmatprep.subr.bf16.mxu1 %v8218_v0 }
 0x2d1   : > { %5623 = vmatpush1.bf16.msra.mxu1 %v5622_v26 }
 0x2d2   : > { %5624 = vmatprep.subr.bf16.mxu1 %v8218_v0 }
 0x2e7   : > { %v7457_v12 = vpop.f32.mrb[30].mxu1 }
 0x2e8   : > { %v7459_v4 = vpop.f32.mrb[31].mxu1 }
 0x301   : > { %v2202_v56 = vpop.f32.mrb[0].mxu0 }
 0x302   : > { %v5768_v58 = vadd.f32 %v7464_v13, %v2202_v56  ;;  %v2204_v16 = vpop.f32.mrb[1].mxu0 }
 0x304   : > { %v2428_v19 = vadd.f32 %v5768_v58, %v7352_v24 }
 0x305   : > { %v2207_v37 = vpop.f32.mrb[2].mxu0 }
 0x306   : > { %v2586_v20 = vmax.f32 %v2428_v19, 0.0  ;;  %v5769_v40 = vadd.f32 %v7464_v13, %v2207_v37  ;;  %v2209_v14 = vpop.f32.mrb[3].mxu0 }
 0x308   : > { %2619 = vst [vmem:[#allocation3 + $0x19] sm:$0xff] %v2586_v20  ;;  %v2433_v23 = vadd.f32 %v5769_v40, %v7349_v27  ;;  %3741 = vmatprep.mubr.f32.mxu1 %v2586_v20 }
 0x309   : > { %v2212_v29 = vpop.f32.mrb[4].mxu0 }
 0x30a   : > { %v2587_v30 = vmax.f32 %v2433_v23, 0.0  ;;  %v5770_v34 = vadd.f32 %v7464_v13, %v2212_v29  ;;  %v2214_v15 = vpop.f32.mrb[5].mxu0 }
 0x30c   : > { %2620 = vst [vmem:[#allocation3 + $0x21] sm:$0xff] %v2587_v30  ;;  %v2438_v24 = vadd.f32 %v5770_v34, %v7368_v41 }
 0x30d   : > { %v2217_v3 = vpop.f32.mrb[6].mxu0 }
 0x30e   : > { %v2588_v33 = vmax.f32 %v2438_v24, 0.0  ;;  %v5771_v36 = vadd.f32 %v7464_v13, %v2217_v3  ;;  %v2219_v38 = vpop.f32.mrb[7].mxu0 }
 0x30f   : > { %v7475_v42 = vld [vmem:[#allocation3 + $0x18] sm:$0xff] }
 0x310   : > { %2621 = vst [vmem:[#allocation3 + $0x31] sm:$0xff] %v2588_v33  ;;  %v2443_v52 = vadd.f32 %v5771_v36, %v7366_v5  ;;  %3742 = vmatmul.mubr.f32.gmra.mrb[36].mxu1 %v7475_v42 }
 0x311   : > { %v2222_v27 = vpop.f32.mrb[8].mxu0  ;;  %3746 = vmatprep.mubr.f32.mxu1 %v2587_v30 }
 0x312   : > { %v2589_v56 = vmax.f32 %v2443_v52, 0.0  ;;  %v5772_v58 = vadd.f32 %v7464_v13, %v2222_v27  ;;  %v2224_v16 = vpop.f32.mrb[9].mxu0 }
 0x313   : > { %v7480_v45 = vld [vmem:[#allocation3 + $0x20] sm:$0xff] }
 0x314   : > { %2622 = vst [vmem:[#allocation3 + $0x39] sm:$0xff] %v2589_v56  ;;  %v2448_v41 = vadd.f32 %v5772_v58, %v7381_v55  ;;  %3747 = vmatmul.mubr.f32.gmra.mrb[38].mxu1 %v7480_v45 }
 0x315   : > { %v2227_v31 = vpop.f32.mrb[10].mxu0  ;;  %3751 = vmatprep.mubr.f32.mxu1 %v2588_v33 }
 0x316   : > { %v2590_v26 = vmax.f32 %v2448_v41, 0.0  ;;  %v5773_v5 = vadd.f32 %v7464_v13, %v2227_v31  ;;  %v2229_v19 = vpop.f32.mrb[11].mxu0 }
 0x317   : > { %v7485_v37 = vld [vmem:[#allocation3 + $0x30] sm:$0xff] }
 0x318   : > { %2623 = vst [vmem:[#allocation3 + $0x49] sm:$0xff] %v2590_v26  ;;  %v2453_v20 = vadd.f32 %v5773_v5, %v7379_v2  ;;  %3752 = vmatmul.mubr.f32.gmra.mrb[40].mxu1 %v7485_v37 }
 0x319   : > { %v2232_v40 = vpop.f32.mrb[12].mxu0  ;;  %3756 = vmatprep.mubr.f32.mxu1 %v2589_v56 }
 0x31a   : > { %v2591_v14 = vmax.f32 %v2453_v20, 0.0  ;;  %v5774_v55 = vadd.f32 %v7464_v13, %v2232_v40  ;;  %v2234_v23 = vpop.f32.mrb[13].mxu0 }
 0x31b   : > { %v7490_v29 = vld [vmem:[#allocation3 + $0x32] sm:$0xff]  ;;  %v7494_v34 = vld [vmem:[#allocation3 + $0x3a] sm:$0xff] }
 0x31c   : > { %v7492_v30 = vld [vmem:[#allocation3 + $0x38] sm:$0xff]  ;;  %2624 = vst [vmem:[#allocation3 + $0x51] sm:$0xff] %v2591_v14  ;;  %v2458_v15 = vadd.f32 %v5774_v55, %v7394_v50  ;;  %5256 = vmatprep.mubr.f32.mxu0 %v7490_v29 }
 0x31d   : > { %3757 = vmatmul.mubr.f32.gmra.mrb[42].mxu1 %v7492_v30  ;;  %v2237_v2 = vpop.f32.mrb[14].mxu0  ;;  %5257 = vmatmul.mubr.f32.vlgmr.msra.gmra.mrb[64].mxu0 %v7494_v34 }
 0x31e   : > { %3761 = vmatprep.mubr.f32.mxu1 %v2590_v26  ;;  %v2592_v24 = vmax.f32 %v2458_v15, 0.0  ;;  %v5775_v3 = vadd.f32 %v7464_v13, %v2237_v2  ;;  %v2239_v33 = vpop.f32.mrb[15].mxu0 }
 0x31f   : > { %v7501_v36 = vld [vmem:[#allocation3 + $0x48] sm:$0xff] }
 0x320   : > { %2625 = vst [vmem:[#allocation3 + $0x61] sm:$0xff] %v2592_v24  ;;  %v2463_v38 = vadd.f32 %v5775_v3, %v7392_v21 }
 0x321   : > { %3762 = vmatmul.mubr.f32.gmra.mrb[44].mxu1 %v7501_v36  ;;  %v2242_v50 = vpop.f32.mrb[16].mxu0 }
 0x322   : > { %3766 = vmatprep.mubr.f32.mxu1 %v2591_v14  ;;  %v2593_v52 = vmax.f32 %v2463_v38, 0.0  ;;  %v5776_v27 = vadd.f32 %v7464_v13, %v2242_v50  ;;  %v2244_v56 = vpop.f32.mrb[17].mxu0 }
 0x323   : > { %v7506_v58 = vld [vmem:[#allocation3 + $0x4a] sm:$0xff]  ;;  %v7510_v41 = vld [vmem:[#allocation3 + $0x52] sm:$0xff] }
 0x324   : > { %v7508_v16 = vld [vmem:[#allocation3 + $0x50] sm:$0xff]  ;;  %2626 = vst [vmem:[#allocation3 + $0x69] sm:$0xff] %v2593_v52  ;;  %v2468_v31 = vadd.f32 %v5776_v27, %v7402_v1  ;;  %5259 = vmatprep.mubr.f32.mxu0 %v7506_v58 }
 0x325   : > { %3767 = vmatmul.mubr.f32.gmra.mrb[46].mxu1 %v7508_v16  ;;  %v2247_v21 = vpop.f32.mrb[18].mxu0  ;;  %5260 = vmatmul.mubr.f32.gmra.mrb[66].mxu0 %v7510_v41 }
 0x326   : > { %3771 = vmatprep.mubr.f32.mxu1 %v2592_v24  ;;  %v2594_v26 = vmax.f32 %v2468_v31, 0.0  ;;  %v5777_v5 = vadd.f32 %v7464_v13, %v2247_v21  ;;  %v2249_v19 = vpop.f32.mrb[19].mxu0 }
 0x327   : > { %v7517_v20 = vld [vmem:[#allocation3 + $0x60] sm:$0xff] }
 0x328   : > { %2627 = vst [vmem:[#allocation3 + $0x79] sm:$0xff] %v2594_v26  ;;  %v2473_v40 = vadd.f32 %v5777_v5, %v7399_v25 }
 0x329   : > { %3772 = vmatmul.mubr.f32.gmra.mrb[48].mxu1 %v7517_v20  ;;  %v2252_v1 = vpop.f32.mrb[20].mxu0 }
 0x32a   : > { %3776 = vmatprep.mubr.f32.mxu1 %v2593_v52  ;;  %v2595_v14 = vmax.f32 %v2473_v40, 0.0  ;;  %v5778_v55 = vadd.f32 %v7464_v13, %v2252_v1  ;;  %v2254_v23 = vpop.f32.mrb[21].mxu0 }
 0x32b   : > { %v7522_v15 = vld [vmem:[#allocation3 + $0x62] sm:$0xff]  ;;  %v7526_v24 = vld [vmem:[#allocation3 + $0x6a] sm:$0xff] }
 0x32c   : > { %v7524_v2 = vld [vmem:[#allocation3 + $0x68] sm:$0xff]  ;;  %2628 = vst [vmem:[#allocation3 + $0x81] sm:$0xff] %v2595_v14  ;;  %v2478_v3 = vadd.f32 %v5778_v55, %v7409_v18  ;;  %5262 = vmatprep.mubr.f32.mxu0 %v7522_v15 }
 0x32d   : > { %3777 = vmatmul.mubr.f32.gmra.mrb[50].mxu1 %v7524_v2  ;;  %v2257_v25 = vpop.f32.mrb[22].mxu0  ;;  %5263 = vmatmul.mubr.f32.gmra.mrb[68].mxu0 %v7526_v24 }
 0x32e   : > { %3781 = vmatprep.mubr.f32.mxu1 %v2594_v26  ;;  %v2596_v33 = vmax.f32 %v2478_v3, 0.0  ;;  %v5779_v38 = vadd.f32 %v7464_v13, %v2257_v25  ;;  %v2259_v50 = vpop.f32.mrb[23].mxu0 }
 0x32f   : > { %v7533_v52 = vld [vmem:[#allocation3 + $0x78] sm:$0xff] }
 0x330   : > { %2629 = vst [vmem:[#allocation3 + $0x91] sm:$0xff] %v2596_v33  ;;  %v2483_v27 = vadd.f32 %v5779_v38, %v7406_v39 }
 0x331   : > { %3782 = vmatmul.mubr.f32.gmra.mrb[52].mxu1 %v7533_v52  ;;  %v2262_v18 = vpop.f32.mrb[24].mxu0 }
 0x332   : > { %3786 = vmatprep.mubr.f32.mxu1 %v2595_v14  ;;  %v2597_v56 = vmax.f32 %v2483_v27, 0.0  ;;  %v5780_v31 = vadd.f32 %v7464_v13, %v2262_v18  ;;  %v2264_v21 = vpop.f32.mrb[25].mxu0 }
 0x333   : > { %v7538_v5 = vld [vmem:[#allocation3 + $0x7a] sm:$0xff]  ;;  %v7542_v19 = vld [vmem:[#allocation3 + $0x82] sm:$0xff] }
 0x334   : > { %v7540_v26 = vld [vmem:[#allocation3 + $0x80] sm:$0xff]  ;;  %2630 = vst [vmem:[#allocation3 + $0x99] sm:$0xff] %v2597_v56  ;;  %v2488_v40 = vadd.f32 %v5780_v31, %v7414_v6  ;;  %5265 = vmatprep.mubr.f32.mxu0 %v7538_v5 }
 0x335   : > { %3787 = vmatmul.mubr.f32.gmra.mrb[54].mxu1 %v7540_v26  ;;  %v2267_v39 = vpop.f32.mrb[26].mxu0  ;;  %5266 = vmatmul.mubr.f32.gmra.mrb[70].mxu0 %v7542_v19 }
 0x336   : > { %3791 = vmatprep.mubr.f32.mxu1 %v2596_v33  ;;  %v2598_v1 = vmax.f32 %v2488_v40, 0.0  ;;  %v5781_v14 = vadd.f32 %v7464_v13, %v2267_v39  ;;  %v2269_v55 = vpop.f32.mrb[27].mxu0 }
 0x337   : > { %v7549_v23 = vld [vmem:[#allocation3 + $0x90] sm:$0xff] }
 0x338   : > { %2631 = vst [vmem:[#allocation3 + $0xa9] sm:$0xff] %v2598_v1  ;;  %v2493_v3 = vadd.f32 %v5781_v14, %v7412_v9 }
 0x339   : > { %3792 = vmatmul.mubr.f32.gmra.mrb[56].mxu1 %v7549_v23  ;;  %v2272_v6 = vpop.f32.mrb[28].mxu0 }
 0x33a   : > { %3796 = vmatprep.mubr.f32.mxu1 %v2597_v56  ;;  %v2599_v25 = vmax.f32 %v2493_v3, 0.0  ;;  %v5782_v38 = vadd.f32 %v7464_v13, %v2272_v6  ;;  %v2274_v50 = vpop.f32.mrb[29].mxu0 }
 0x33b   : > { %v7554_v27 = vld [vmem:[#allocation3 + $0x92] sm:$0xff]  ;;  %v7558_v18 = vld [vmem:[#allocation3 + $0x9a] sm:$0xff] }
 0x33c   : > { %v7556_v33 = vld [vmem:[#allocation3 + $0x98] sm:$0xff]  ;;  %2632 = vst [vmem:[#allocation3 + $0xb1] sm:$0xff] %v2599_v25  ;;  %v2498_v31 = vadd.f32 %v5782_v38, %v7419_v7  ;;  %5268 = vmatprep.mubr.f32.mxu0 %v7554_v27 }
 0x33d   : > { %3797 = vmatmul.mubr.f32.gmra.mrb[58].mxu1 %v7556_v33  ;;  %v2277_v9 = vpop.f32.mrb[30].mxu0  ;;  %5269 = vmatmul.mubr.f32.gmra.mrb[72].mxu0 %v7558_v18 }
 0x33e   : > { %3801 = vmatprep.mubr.f32.mxu1 %v2598_v1  ;;  %v2600_v56 = vmax.f32 %v2498_v31, 0.0  ;;  %v5783_v21 = vadd.f32 %v7464_v13, %v2277_v9  ;;  %v2279_v40 = vpop.f32.mrb[31].mxu0 }
 0x33f   : > { %v7565_v39 = vld [vmem:[#allocation3 + $0xa8] sm:$0xff] }
 0x340   : > { %2633 = vst [vmem:[#allocation3 + $0xc1] sm:$0xff] %v2600_v56  ;;  %v2503_v14 = vadd.f32 %v5783_v21, %v7417_v43 }
 0x341   : > { %3802 = vmatmul.mubr.f32.gmra.mrb[60].mxu1 %v7565_v39  ;;  %v2282_v7 = vpop.f32.mrb[32].mxu0 }
 0x342   : > { %3806 = vmatprep.mubr.f32.mxu1 %v2599_v25  ;;  %v2601_v55 = vmax.f32 %v2503_v14, 0.0  ;;  %v5784_v3 = vadd.f32 %v7464_v13, %v2282_v7  ;;  %v2284_v6 = vpop.f32.mrb[33].mxu0 }
 0x343   : > { %v7570_v38 = vld [vmem:[#allocation3 + $0xaa] sm:$0xff]  ;;  %v7574_v50 = vld [vmem:[#allocation3 + $0xb2] sm:$0xff] }
 0x344   : > { %v7572_v1 = vld [vmem:[#allocation3 + $0xb0] sm:$0xff]  ;;  %2634 = vst [vmem:[#allocation3 + $0xc9] sm:$0xff] %v2601_v55  ;;  %v2508_v31 = vadd.f32 %v5784_v3, %v7424_v49  ;;  %5271 = vmatprep.mubr.f32.mxu0 %v7570_v38 }
 0x345   : > { %3807 = vmatmul.mubr.f32.gmra.mrb[62].mxu1 %v7572_v1  ;;  %v2287_v43 = vpop.f32.mrb[34].mxu0  ;;  %5272 = vmatmul.mubr.f32.gmra.mrb[74].mxu0 %v7574_v50 }
 0x346   : > { %3811 = vmatprep.mubr.f32.mxu1 %v2600_v56  ;;  %v2602_v25 = vmax.f32 %v2508_v31, 0.0  ;;  %v5785_v9 = vadd.f32 %v7464_v13, %v2287_v43  ;;  %v2289_v21 = vpop.f32.mrb[35].mxu0 }
 0x347   : > { %v7581_v40 = vld [vmem:[#allocation3 + $0xc0] sm:$0xff] }
 0x348   : > { %2635 = vst [vmem:[#allocation3 + $0xd9] sm:$0xff] %v2602_v25  ;;  %v2513_v14 = vadd.f32 %v5785_v9, %v7422_v47 }
 0x349   : > { %3812 = vmatmul.mubr.f32.gmra.mrb[64].mxu1 %v7581_v40  ;;  %v2292_v49 = vpop.f32.mrb[36].mxu0 }
 0x34a   : > { %3816 = vmatprep.mubr.f32.mxu1 %v2601_v55  ;;  %v2603_v7 = vmax.f32 %v2513_v14, 0.0  ;;  %v5786_v3 = vadd.f32 %v7464_v13, %v2292_v49  ;;  %v2294_v6 = vpop.f32.mrb[37].mxu0 }
 0x34b   : > { %v7586_v0 = vld [vmem:[#allocation3 + $0xc2] sm:$0xff]  ;;  %v7590_v31 = vld [vmem:[#allocation3 + $0xca] sm:$0xff] }
 0x34c   : > { %v7588_v56 = vld [vmem:[#allocation3 + $0xc8] sm:$0xff]  ;;  %2636 = vst [vmem:[#allocation3 + $0xe1] sm:$0xff] %v2603_v7  ;;  %v2518_v43 = vadd.f32 %v5786_v3, %v7429_v60  ;;  %5274 = vmatprep.mubr.f32.mxu0 %v7586_v0 }
 0x34d   : > { %3817 = vmatmul.mubr.f32.gmra.mrb[66].mxu1 %v7588_v56  ;;  %v2297_v47 = vpop.f32.mrb[38].mxu0  ;;  %5275 = vmatmul.mubr.f32.gmra.mrb[76].mxu0 %v7590_v31 }
 0x34e   : > { %3821 = vmatprep.mubr.f32.mxu1 %v2602_v25  ;;  %v2604_v55 = vmax.f32 %v2518_v43, 0.0  ;;  %v5787_v9 = vadd.f32 %v7464_v13, %v2297_v47  ;;  %v2299_v21 = vpop.f32.mrb[39].mxu0 }
 0x34f   : > { %v7597_v14 = vld [vmem:[#allocation3 + $0xd8] sm:$0xff] }
 0x350   : > { %2637 = vst [vmem:[#allocation3 + $0xf1] sm:$0xff] %v2604_v55  ;;  %v2523_v49 = vadd.f32 %v5787_v9, %v7427_v10 }
 0x351   : > { %3822 = vmatmul.mubr.f32.gmra.mrb[68].mxu1 %v7597_v14  ;;  %v2302_v60 = vpop.f32.mrb[40].mxu0 }
 0x352   : > { %3826 = vmatprep.mubr.f32.mxu1 %v2603_v7  ;;  %v2605_v3 = vmax.f32 %v2523_v49, 0.0  ;;  %v5788_v6 = vadd.f32 %v7464_v13, %v2302_v60  ;;  %v2304_v44 = vpop.f32.mrb[41].mxu0 }
 0x353   : > { %v7602_v8 = vld [vmem:[#allocation3 + $0xda] sm:$0xff]  ;;  %v7606_v43 = vld [vmem:[#allocation3 + $0xe2] sm:$0xff] }
 0x354   : > { %v7604_v25 = vld [vmem:[#allocation3 + $0xe0] sm:$0xff]  ;;  %2638 = vst [vmem:[#allocation3 + $0xf9] sm:$0xff] %v2605_v3  ;;  %v2528_v47 = vadd.f32 %v5788_v6, %v7434_v54  ;;  %5277 = vmatprep.mubr.f32.mxu0 %v7602_v8 }
 0x355   : > { %3827 = vmatmul.mubr.f32.gmra.mrb[70].mxu1 %v7604_v25  ;;  %v2307_v10 = vpop.f32.mrb[42].mxu0  ;;  %5278 = vmatmul.mubr.f32.gmra.mrb[78].mxu0 %v7606_v43 }
 0x356   : > { %3831 = vmatprep.mubr.f32.mxu1 %v2604_v55  ;;  %v2606_v7 = vmax.f32 %v2528_v47, 0.0  ;;  %v5789_v44 = vadd.f32 %v7464_v13, %v2307_v10  ;;  %v2309_v9 = vpop.f32.mrb[43].mxu0 }
 0x357   : > { %v7613_v21 = vld [vmem:[#allocation3 + $0xf0] sm:$0xff] }
 0x358   : > { %2639 = vst [vmem:[#allocation3 + $0x109] sm:$0xff] %v2606_v7  ;;  %v2533_v49 = vadd.f32 %v5789_v44, %v7432_v61 }
 0x359   : > { %3832 = vmatmul.mubr.f32.gmra.mrb[72].mxu1 %v7613_v21  ;;  %v2312_v54 = vpop.f32.mrb[44].mxu0 }
 0x35a   : > { %3836 = vmatprep.mubr.f32.mxu1 %v2605_v3  ;;  %v2607_v60 = vmax.f32 %v2533_v49, 0.0  ;;  %v5790_v6 = vadd.f32 %v7464_v13, %v2312_v54  ;;  %v2314_v46 = vpop.f32.mrb[45].mxu0 }
 0x35b   : > { %v7618_v51 = vld [vmem:[#allocation3 + $0xf2] sm:$0xff]  ;;  %v7622_v47 = vld [vmem:[#allocation3 + $0xfa] sm:$0xff] }
 0x35c   : > { %v7620_v55 = vld [vmem:[#allocation3 + $0xf8] sm:$0xff]  ;;  %2640 = vst [vmem:[#allocation3 + $0x111] sm:$0xff] %v2607_v60  ;;  %v2538_v10 = vadd.f32 %v5790_v6, %v7439_v59  ;;  %5280 = vmatprep.mubr.f32.mxu0 %v7618_v51 }
 0x35d   : > { %3837 = vmatmul.mubr.f32.gmra.mrb[74].mxu1 %v7620_v55  ;;  %v2317_v61 = vpop.f32.mrb[46].mxu0  ;;  %5281 = vmatmul.mubr.f32.gmra.mrb[80].mxu0 %v7622_v47 }
 0x35e   : > { %3841 = vmatprep.mubr.f32.mxu1 %v2606_v7  ;;  %v2608_v3 = vmax.f32 %v2538_v10, 0.0  ;;  %v5791_v46 = vadd.f32 %v7464_v13, %v2317_v61  ;;  %v2319_v44 = vpop.f32.mrb[47].mxu0 }
 0x35f   : > { %v7629_v9 = vld [vmem:[#allocation3 + $0x108] sm:$0xff] }
 0x360   : > { %2641 = vst [vmem:[#allocation3 + $0x121] sm:$0xff] %v2608_v3  ;;  %v2543_v49 = vadd.f32 %v5791_v46, %v7437_v17 }
 0x361   : > { %3842 = vmatmul.mubr.f32.gmra.mrb[76].mxu1 %v7629_v9  ;;  %v2322_v59 = vpop.f32.mrb[48].mxu0 }
 0x362   : > { %3846 = vmatprep.mubr.f32.mxu1 %v2607_v60  ;;  %v2609_v54 = vmax.f32 %v2543_v49, 0.0  ;;  %v5792_v6 = vadd.f32 %v7464_v13, %v2322_v59  ;;  %v2324_v28 = vpop.f32.mrb[49].mxu0 }
 0x363   : > { %v7634_v35 = vld [vmem:[#allocation3 + $0x10a] sm:$0xff]  ;;  %v7638_v10 = vld [vmem:[#allocation3 + $0x112] sm:$0xff] }
 0x364   : > { %v7636_v7 = vld [vmem:[#allocation3 + $0x110] sm:$0xff]  ;;  %2642 = vst [vmem:[#allocation3 + $0x129] sm:$0xff] %v2609_v54  ;;  %v2548_v61 = vadd.f32 %v5792_v6, %v7444_v48  ;;  %5283 = vmatprep.mubr.f32.mxu0 %v7634_v35 }
 0x365   : > { %3847 = vmatmul.mubr.f32.gmra.mrb[78].mxu1 %v7636_v7  ;;  %v2327_v17 = vpop.f32.mrb[50].mxu0  ;;  %5284 = vmatmul.mubr.f32.gmra.mrb[82].mxu0 %v7638_v10 }
 0x366   : > { %3851 = vmatprep.mubr.f32.mxu1 %v2608_v3  ;;  %v7644_v60 = vmax.f32 %v2548_v61, 0.0  ;;  %v5793_v28 = vadd.f32 %v7464_v13, %v2327_v17  ;;  %v2329_v46 = vpop.f32.mrb[51].mxu0 }
 0x367   : > { %v7647_v44 = vld [vmem:[#allocation3 + $0x120] sm:$0xff] }
 0x368   : > { %8268 = vst [vmem:[#allocation23_spill] sm:$0xff] %v7644_v60  ;;  %2643 = vst [vmem:[#allocation3 + $0x139] sm:$0xff] %v7644_v60  ;;  %v2553_v49 = vadd.f32 %v5793_v28, %v7442_v53 }
 0x369   : > { %3852 = vmatmul.mubr.f32.gmra.mrb[80].mxu1 %v7647_v44  ;;  %v2332_v48 = vpop.f32.mrb[52].mxu0 }
 0x36a   : > { %3856 = vmatprep.mubr.f32.mxu1 %v2609_v54  ;;  %v7652_v59 = vmax.f32 %v2553_v49, 0.0  ;;  %v5794_v6 = vadd.f32 %v7464_v13, %v2332_v48  ;;  %v2334_v3 = vpop.f32.mrb[53].mxu0 }
 0x36b   : > { %v7655_v61 = vld [vmem:[#allocation3 + $0x122] sm:$0xff]  ;;  %v7659_v17 = vld [vmem:[#allocation3 + $0x12a] sm:$0xff] }
 0x36c   : > { %8269 = vst [vmem:[#allocation24_spill] sm:$0xff] %v7652_v59  ;;  %v7657_v62 = vld [vmem:[#allocation3 + $0x128] sm:$0xff]  ;;  %2644 = vst [vmem:[#allocation3 + $0x141] sm:$0xff] %v7652_v59  ;;  %v2558_v46 = vadd.f32 %v5794_v6, %v7449_v57  ;;  %5286 = vmatprep.mubr.f32.mxu0 %v7655_v61 }
 0x36d   : > { %3857 = vmatmul.mubr.f32.gmra.mrb[82].mxu1 %v7657_v62  ;;  %v2337_v53 = vpop.f32.mrb[54].mxu0  ;;  %5287 = vmatmul.mubr.f32.gmra.mrb[84].mxu0 %v7659_v17 }
 0x36e   : > { %3861 = vmatprep.mubr.f32.mxu1 %v7644_v60  ;;  %v7667_v54 = vmax.f32 %v2558_v46, 0.0  ;;  %v5795_v28 = vadd.f32 %v7464_v13, %v2337_v53  ;;  %v2339_v49 = vpop.f32.mrb[55].mxu0 }
 0x36f   : > { %v7670_v48 = vld [vmem:[#allocation3 + $0x138] sm:$0xff] }
 0x370   : > { %8270 = vst [vmem:[#allocation25_spill] sm:$0xff] %v7667_v54  ;;  %2645 = vst [vmem:[#allocation3 + $0x151] sm:$0xff] %v7667_v54  ;;  %v2563_v57 = vadd.f32 %v5795_v28, %v7447_v11 }
 0x371   : > { %3862 = vmatmul.mubr.f32.gmra.mrb[84].mxu1 %v7670_v48  ;;  %v2342_v6 = vpop.f32.mrb[56].mxu0 }
 0x372   : > { %3866 = vmatprep.mubr.f32.mxu1 %v7652_v59  ;;  %v7676_v3 = vmax.f32 %v2563_v57, 0.0  ;;  %v5796_v60 = vadd.f32 %v7464_v13, %v2342_v6  ;;  %v2344_v46 = vpop.f32.mrb[57].mxu0 }
 0x373   : > { %v7679_v63 = vld [vmem:[#allocation3 + $0x13a] sm:$0xff]  ;;  %v7683_v49 = vld [vmem:[#allocation3 + $0x142] sm:$0xff] }
 0x374   : > { %8271 = vst [vmem:[#allocation26_spill] sm:$0xff] %v7676_v3  ;;  %8272 = vst [vmem:[#allocation27_spill] sm:$0xff] %v7679_v63  ;;  %v7681_v53 = vld [vmem:[#allocation3 + $0x140] sm:$0xff]  ;;  %v2568_v11 = vadd.f32 %v5796_v60, %v7454_v32  ;;  %5289 = vmatprep.mubr.f32.mxu0 %v7679_v63 }
 0x375   : > { %8273 = vst [vmem:[#allocation28_spill] sm:$0xff] %v7683_v49  ;;  %2646 = vst [vmem:[#allocation3 + $0x159] sm:$0xff] %v7676_v3  ;;  %3867 = vmatmul.mubr.f32.gmra.mrb[86].mxu1 %v7681_v53  ;;  %v2347_v28 = vpop.f32.mrb[58].mxu0  ;;  %5290 = vmatmul.mubr.f32.gmra.mrb[86].mxu0 %v7683_v49 }
 0x376   : > { %3871 = vmatprep.mubr.f32.mxu1 %v7667_v54  ;;  %v7691_v57 = vmax.f32 %v2568_v11, 0.0  ;;  %v5797_v6 = vadd.f32 %v7464_v13, %v2347_v28  ;;  %v2349_v46 = vpop.f32.mrb[59].mxu0 }
 0x377   : > { %v7694_v59 = vld [vmem:[#allocation3 + $0x150] sm:$0xff] }
 0x378   : > { %8274 = vst [vmem:[#allocation29_spill] sm:$0xff] %v7691_v57  ;;  %2647 = vst [vmem:[#allocation3 + $0x169] sm:$0xff] %v7691_v57  ;;  %v2573_v32 = vadd.f32 %v5797_v6, %v7452_v22 }
 0x379   : > { %3872 = vmatmul.mubr.f32.gmra.mrb[88].mxu1 %v7694_v59  ;;  %v2352_v60 = vpop.f32.mrb[60].mxu0 }
 0x37a   : > { %3876 = vmatprep.mubr.f32.mxu1 %v7676_v3  ;;  %v7700_v63 = vmax.f32 %v2573_v32, 0.0  ;;  %v5798_v54 = vadd.f32 %v7464_v13, %v2352_v60  ;;  %v2354_v11 = vpop.f32.mrb[61].mxu0 }
 0x37b   : > { %v3581_v11 = vld [vmem:[#allocation10 + $0x208] sm:$0xff] }
 0x37c   : > { %8275 = vst [vmem:[#allocation30_spill] sm:$0xff] %v7700_v63  ;;  %v7703_v49 = vld [vmem:[#allocation3 + $0x158] sm:$0xff]  ;;  %2648 = vst [vmem:[#allocation3 + $0x171] sm:$0xff] %v7700_v63  ;;  %v7707_v28 = vadd.f32 %v5798_v54, %v7459_v4  ;;  %v3580_v54 = vld [vmem:[#allocation10 + $0x200] sm:$0xff] }
 0x37d   : > { %3877 = vmatmul.mubr.f32.gmra.mrb[90].mxu1 %v7703_v49  ;;  %v2357_v22 = vpop.f32.mrb[62].mxu0 }
 0x37e   : > { %8276 = vst [vmem:[#allocation31_spill] sm:$0xff] %v7707_v28  ;;  %3881 = vmatprep.mubr.f32.mxu1 %v7691_v57  ;;  %v8245_v6 = vmax.f32 %v7707_v28, 0.0  ;;  %v5799_v46 = vadd.f32 %v7464_v13, %v2357_v22  ;;  %v2359_v32 = vpop.f32.mrb[63].mxu0  ;;  %v2779_v13 = vld [vmem:[#allocation3 + $0x2] sm:$0xff]  ;;  %v8278_v28 = vmov 0.0|0.0  }
 0x37f   : > { %v7713_v3 = vld [vmem:[#allocation3 + $0x168] sm:$0xff]  ;;  %v3582_v22 = vld [vmem:[#allocation10 + $0x210] sm:$0xff] }
 0x380   : > { %8277 = vst [vmem:[#allocation32_spill] sm:$0xff] %v7713_v3  ;;  %2649 = vst [vmem:[#allocation3 + $0x181] sm:$0xff] %v8245_v6  ;;  %v7718_v60 = vadd.f32 %v5799_v46, %v7457_v12  ;;  %v5625_v12 = vpack.c.bf16 %v3581_v11, %v3580_v54  ;;  %v3583_v46 = vld [vmem:[#allocation10 + $0x218] sm:$0xff]  ;;  %v7733_v11 = vld [vmem:[#allocation3 + $0x1a] sm:$0xff] }
 0x381   : > { %3882 = vmatmul.mubr.f32.gmra.mrb[92].mxu1 %v7713_v3  ;;  %v2780_v32 = vld [vmem:[#allocation3 + $0xa] sm:$0xff]  ;;  %v5628_v6 = vpack.c.bf16 %v3583_v46, %v3582_v22  ;;  %v3585_v3 = vld [vmem:[#allocation10 + $0x228] sm:$0xff]  ;;  %v7738_v22 = vld [vmem:[#allocation3 + $0x22] sm:$0xff] }
 0x382   : > { %3886 = vmatprep.mubr.f32.mxu1 %v7700_v63  ;;  %v8249_v4 = vmax.f32 %v7718_v60, 0.0  ;;  %v3584_v63 = vld [vmem:[#allocation10 + $0x220] sm:$0xff]  ;;  %v3587_v54 = vld [vmem:[#allocation10 + $0x238] sm:$0xff]  ;;  %v3594_v46 = vld [vmem:[#allocation10 + $0x270] sm:$0xff] }
 0x383   : > { %v7723_v57 = vld [vmem:[#allocation3 + $0x170] sm:$0xff] }
 0x384   : > { %2650 = vst [vmem:[#allocation3 + $0x189] sm:$0xff] %v8249_v4  ;;  %v5631_v4 = vpack.c.bf16 %v3585_v3, %v3584_v63  ;;  %v3591_v3 = vld [vmem:[#allocation10 + $0x258] sm:$0xff] }
 0x385   : > { %3887 = vmatmul.mubr.f32.gmra.mrb[94].mxu1 %v7723_v57 }
 0x386   : > { %3956 = vmatprep.mubr.f32.mxu1 %v7475_v42  ;;  %v3586_v42 = vld [vmem:[#allocation10 + $0x230] sm:$0xff] }
 0x389   : > { %3957 = vmatmul.mubr.f32.vlgmr.msra.gmra.mrb[32].mxu1 %v2779_v13  ;;  %v3588_v13 = vld [vmem:[#allocation10 + $0x240] sm:$0xff] }
 0x38a   : > { %3961 = vmatprep.mubr.f32.mxu1 %v7480_v45  ;;  %5626 = vmatpush1.bf16.msra.mxu1 %v5625_v12  ;;  %v5634_v45 = vpack.c.bf16 %v3587_v54, %v3586_v42  ;;  %v3589_v12 = vld [vmem:[#allocation10 + $0x248] sm:$0xff]  ;;  %v3599_v54 = vld [vmem:[#allocation10 + $0x298] sm:$0xff] }
 0x38b   : > { %5627 = vmatprep.subr.bf16.mxu1 %v8278_v28  ;;  %v5637_v63 = vpack.c.bf16 %v3589_v12, %v3588_v13  ;;  %v3597_v42 = vld [vmem:[#allocation10 + $0x288] sm:$0xff]  ;;  %v3603_v13 = vld [vmem:[#allocation10 + $0x2b8] sm:$0xff] }
 0x38c   : > { %v3605_v12 = vld [vmem:[#allocation10 + $0x2c8] sm:$0xff] }
 0x38d   : > { %3962 = vmatmul.mubr.f32.gmra.mrb[34].mxu1 %v2780_v32  ;;  %v3595_v32 = vld [vmem:[#allocation10 + $0x278] sm:$0xff] }
 0x38e   : > { %3966 = vmatprep.mubr.f32.mxu1 %v7485_v37  ;;  %5629 = vmatpush1.bf16.msra.mxu1 %v5628_v6  ;;  %v3590_v37 = vld [vmem:[#allocation10 + $0x250] sm:$0xff]  ;;  %v3592_v6 = vld [vmem:[#allocation10 + $0x260] sm:$0xff] }
 0x38f   : > { %5630 = vmatprep.subr.bf16.mxu1 %v8278_v28 }
 0x391   : > { %3967 = vmatmul.mubr.f32.gmra.mrb[36].mxu1 %v7733_v11 }
 0x392   : > { %3971 = vmatprep.mubr.f32.mxu1 %v7492_v30  ;;  %5632 = vmatpush1.bf16.msra.mxu1 %v5631_v4  ;;  %v5640_v30 = vpack.c.bf16 %v3591_v3, %v3590_v37  ;;  %v3593_v4 = vld [vmem:[#allocation10 + $0x268] sm:$0xff]  ;;  %v3611_v3 = vld [vmem:[#allocation10 + $0x2f8] sm:$0xff] }
 0x393   : > { %5633 = vmatprep.subr.bf16.mxu1 %v8278_v28  ;;  %v3609_v37 = vld [vmem:[#allocation10 + $0x2e8] sm:$0xff] }
 0x395   : > { %3972 = vmatmul.mubr.f32.gmra.mrb[38].mxu1 %v7738_v22 }
 0x396   : > { %3976 = vmatprep.mubr.f32.mxu1 %v7501_v36  ;;  %5635 = vmatpush1.bf16.msra.mxu1 %v5634_v45  ;;  %v5643_v36 = vpack.c.bf16 %v3593_v4, %v3592_v6  ;;  %v3601_v45 = vld [vmem:[#allocation10 + $0x2a8] sm:$0xff] }
 0x397   : > { %5636 = vmatprep.subr.bf16.mxu1 %v8278_v28 }
 0x399   : > { %3977 = vmatmul.mubr.f32.gmra.mrb[40].mxu1 %v7490_v29  ;;  %v5646_v29 = vpack.c.bf16 %v3595_v32, %v3594_v46  ;;  %v3617_v46 = vld [vmem:[#allocation10 + $0x328] sm:$0xff]  ;;  %v2908_v32 = vld [vmem:[#allocation3 + $0x21] sm:$0xff] }
 0x39a   : > { %3981 = vmatprep.mubr.f32.mxu1 %v7508_v16  ;;  %5638 = vmatpush1.bf16.msra.mxu1 %v5637_v63  ;;  %v3596_v16 = vld [vmem:[#allocation10 + $0x280] sm:$0xff]  ;;  %v3607_v63 = vld [vmem:[#allocation10 + $0x2d8] sm:$0xff] }
 0x39b   : > { %5639 = vmatprep.subr.bf16.mxu1 %v8278_v28 }
 0x39d   : > { %3982 = vmatmul.mubr.f32.gmra.mrb[42].mxu1 %v7494_v34  ;;  %v5649_v34 = vpack.c.bf16 %v3597_v42, %v3596_v16  ;;  %v3618_v16 = vld [vmem:[#allocation10 + $0x330] sm:$0xff]  ;;  %v3619_v42 = vld [vmem:[#allocation10 + $0x338] sm:$0xff] }
 0x39e   : > { %3986 = vmatprep.mubr.f32.mxu1 %v7517_v20  ;;  %5641 = vmatpush1.bf16.msra.mxu1 %v5640_v30  ;;  %v3598_v20 = vld [vmem:[#allocation10 + $0x290] sm:$0xff] }
 0x39f   : > { %5642 = vmatprep.subr.bf16.mxu1 %v8278_v28 }
 0x3a1   : > { %3987 = vmatmul.mubr.f32.gmra.mrb[44].mxu1 %v7506_v58  ;;  %v5652_v58 = vpack.c.bf16 %v3599_v54, %v3598_v20 }
 0x3a2   : > { %3991 = vmatprep.mubr.f32.mxu1 %v7524_v2  ;;  %5644 = vmatpush1.bf16.msra.mxu1 %v5643_v36  ;;  %v3600_v2 = vld [vmem:[#allocation10 + $0x2a0] sm:$0xff] }
 0x3a3   : > { %5645 = vmatprep.subr.bf16.mxu1 %v8278_v28  ;;  %v3616_v36 = vld [vmem:[#allocation10 + $0x320] sm:$0xff] }
 0x3a5   : > { %3992 = vmatmul.mubr.f32.gmra.mrb[46].mxu1 %v7510_v41  ;;  %v5655_v41 = vpack.c.bf16 %v3601_v45, %v3600_v2  ;;  %v3620_v2 = vld [vmem:[#allocation10 + $0x340] sm:$0xff]  ;;  %v3621_v45 = vld [vmem:[#allocation10 + $0x348] sm:$0xff] }
 0x3a6   : > { %3996 = vmatprep.mubr.f32.mxu1 %v7533_v52  ;;  %5647 = vmatpush1.bf16.msra.mxu1 %v5646_v29  ;;  %v3602_v52 = vld [vmem:[#allocation10 + $0x2b0] sm:$0xff]  ;;  %v5679_v29 = vpack.c.bf16 %v3617_v46, %v3616_v36  ;;  %v7874_v36 = vld [vmem:[#allocation3 + $0x69] sm:$0xff] }
 0x3a7   : > { %5648 = vmatprep.subr.bf16.mxu1 %v8278_v28  ;;  %v2979_v46 = vld [vmem:[#allocation3 + $0x7a] sm:$0xff] }
 0x3a9   : > { %3997 = vmatmul.mubr.f32.gmra.mrb[48].mxu1 %v7522_v15  ;;  %v5658_v15 = vpack.c.bf16 %v3603_v13, %v3602_v52  ;;  %v2975_v52 = vld [vmem:[#allocation3 + $0x4a] sm:$0xff]  ;;  %v5685_v13 = vpack.c.bf16 %v3621_v45, %v3620_v2 }
 0x3aa   : > { %4001 = vmatprep.mubr.f32.mxu1 %v7540_v26  ;;  %5650 = vmatpush1.bf16.msra.mxu1 %v5649_v34  ;;  %v3604_v26 = vld [vmem:[#allocation10 + $0x2c0] sm:$0xff] }
 0x3ab   : > { %5651 = vmatprep.subr.bf16.mxu1 %v8278_v28  ;;  %v7842_v34 = vld [vmem:[#allocation3 + $0x31] sm:$0xff] }
 0x3ac   : > { %v3632_v45 = vld [vmem:[#allocation10 + $0x3a0] sm:$0xff] }
 0x3ad   : > { %4002 = vmatmul.mubr.f32.gmra.mrb[50].mxu1 %v7526_v24  ;;  %v5661_v24 = vpack.c.bf16 %v3605_v12, %v3604_v26  ;;  %v3623_v26 = vld [vmem:[#allocation10 + $0x358] sm:$0xff] }
 0x3ae   : > { %4006 = vmatprep.mubr.f32.mxu1 %v7549_v23  ;;  %5653 = vmatpush1.bf16.msra.mxu1 %v5652_v58  ;;  %v3606_v23 = vld [vmem:[#allocation10 + $0x2d0] sm:$0xff]  ;;  %v5682_v58 = vpack.c.bf16 %v3619_v42, %v3618_v16  ;;  %v7854_v12 = vld [vmem:[#allocation3 + $0x49] sm:$0xff] }
 0x3af   : > { %5654 = vmatprep.subr.bf16.mxu1 %v8278_v28  ;;  %v7878_v16 = vld [vmem:[#allocation3 + $0x79] sm:$0xff] }
 0x3b1   : > { %4007 = vmatmul.mubr.f32.gmra.mrb[52].mxu1 %v7538_v5  ;;  %v5664_v5 = vpack.c.bf16 %v3607_v63, %v3606_v23  ;;  %v2976_v23 = vld [vmem:[#allocation3 + $0x52] sm:$0xff] }
 0x3b2   : > { %4011 = vmatprep.mubr.f32.mxu1 %v7556_v33  ;;  %5656 = vmatpush1.bf16.msra.mxu1 %v5655_v41  ;;  %v3608_v33 = vld [vmem:[#allocation10 + $0x2e0] sm:$0xff]  ;;  %v7850_v41 = vld [vmem:[#allocation3 + $0x39] sm:$0xff] }
 0x3b3   : > { %5657 = vmatprep.subr.bf16.mxu1 %v8278_v28 }
 0x3b5   : > { %4012 = vmatmul.mubr.f32.gmra.mrb[54].mxu1 %v7542_v19  ;;  %v5667_v19 = vpack.c.bf16 %v3609_v37, %v3608_v33  ;;  %v3624_v33 = vld [vmem:[#allocation10 + $0x360] sm:$0xff]  ;;  %v3625_v37 = vld [vmem:[#allocation10 + $0x368] sm:$0xff] }
 0x3b6   : > { %4016 = vmatprep.mubr.f32.mxu1 %v7565_v39  ;;  %5659 = vmatpush1.bf16.msra.mxu1 %v5658_v15  ;;  %v3610_v39 = vld [vmem:[#allocation10 + $0x2f0] sm:$0xff] }
 0x3b7   : > { %5660 = vmatprep.subr.bf16.mxu1 %v8278_v28  ;;  %v3622_v15 = vld [vmem:[#allocation10 + $0x350] sm:$0xff] }
 0x3b9   : > { %4017 = vmatmul.mubr.f32.gmra.mrb[56].mxu1 %v7554_v27  ;;  %v5670_v27 = vpack.c.bf16 %v3611_v3, %v3610_v39  ;;  %v2977_v39 = vld [vmem:[#allocation3 + $0x62] sm:$0xff]  ;;  %v5691_v3 = vpack.c.bf16 %v3625_v37, %v3624_v33  ;;  %v7890_v33 = vld [vmem:[#allocation3 + $0x91] sm:$0xff] }
 0x3ba   : > { %4021 = vmatprep.mubr.f32.mxu1 %v7572_v1  ;;  %5662 = vmatpush1.bf16.msra.mxu1 %v5661_v24  ;;  %v8281_v1 = vld [vmem:[#allocation32_spill] sm:$0xff] }
 0x3bb   : > { %5663 = vmatprep.subr.bf16.mxu1 %v8278_v28 }
 0x3bd   : > { %4022 = vmatmul.mubr.f32.gmra.mrb[58].mxu1 %v7558_v18  ;;  %v8279_v18 = vld [vmem:[#allocation27_spill] sm:$0xff] }
 0x3be   : > { %4026 = vmatprep.mubr.f32.mxu1 %v7581_v40  ;;  %5665 = vmatpush1.bf16.msra.mxu1 %v5664_v5  ;;  %v5688_v5 = vpack.c.bf16 %v3623_v26, %v3622_v15  ;;  %v2981_v15 = vld [vmem:[#allocation3 + $0x92] sm:$0xff] }
 0x3bf   : > { %5666 = vmatprep.subr.bf16.mxu1 %v8278_v28 }
 0x3c1   : > { %4027 = vmatmul.mubr.f32.gmra.mrb[60].mxu1 %v7570_v38 }
 0x3c2   : > { %4031 = vmatprep.mubr.f32.mxu1 %v7588_v56  ;;  %5668 = vmatpush1.bf16.msra.mxu1 %v5667_v19  ;;  %v7862_v19 = vld [vmem:[#allocation3 + $0x51] sm:$0xff] }
 0x3c3   : > { %5669 = vmatprep.subr.bf16.mxu1 %v8278_v28 }
 0x3c5   : > { %4032 = vmatmul.mubr.f32.gmra.mrb[62].mxu1 %v7574_v50  ;;  %v7807_v50 = vld [vmem:[#allocation3 + $0x152] sm:$0xff] }
 0x3c6   : > { %4036 = vmatprep.mubr.f32.mxu1 %v7597_v14  ;;  %5671 = vmatpush1.bf16.msra.mxu1 %v5670_v27  ;;  %v7818_v14 = vld [vmem:[#allocation3 + $0x180] sm:$0xff] }
 0x3c7   : > { %5672 = vmatprep.subr.bf16.mxu1 %v8278_v28  ;;  %v3626_v27 = vld [vmem:[#allocation10 + $0x370] sm:$0xff] }
 0x3c9   : > { %4037 = vmatmul.mubr.f32.gmra.mrb[64].mxu1 %v7586_v0 }
 0x3ca   : > { %4041 = vmatprep.mubr.f32.mxu1 %v7604_v25  ;;  %v7821_v25 = vld [vmem:[#allocation3 + $0x16a] sm:$0xff] }
 0x3cd   : > { %4042 = vmatmul.mubr.f32.gmra.mrb[66].mxu1 %v7590_v31  ;;  %v7815_v31 = vld [vmem:[#allocation3 + $0x15a] sm:$0xff] }
 0x3ce   : > { %4046 = vmatprep.mubr.f32.mxu1 %v7613_v21 }
 0x3d1   : > { %4047 = vmatmul.mubr.f32.gmra.mrb[68].mxu1 %v7602_v8 }
 0x3d2   : > { %4051 = vmatprep.mubr.f32.mxu1 %v7620_v55  ;;  %v7826_v55 = vld [vmem:[#allocation3 + $0x188] sm:$0xff] }
 0x3d5   : > { %4052 = vmatmul.mubr.f32.gmra.mrb[70].mxu1 %v7606_v43 }
 0x3d6   : > { %4056 = vmatprep.mubr.f32.mxu1 %v7629_v9 }
 0x3d9   : > { %4057 = vmatmul.mubr.f32.gmra.mrb[72].mxu1 %v7618_v51 }
 0x3da   : > { %4061 = vmatprep.mubr.f32.mxu1 %v7636_v7  ;;  %v3612_v7 = vld [vmem:[#allocation10 + $0x300] sm:$0xff] }
 0x3dd   : > { %4062 = vmatmul.mubr.f32.gmra.mrb[74].mxu1 %v7622_v47 }
 0x3de   : > { %4066 = vmatprep.mubr.f32.mxu1 %v7647_v44  ;;  %v3613_v44 = vld [vmem:[#allocation10 + $0x308] sm:$0xff] }
 0x3e1   : > { %4067 = vmatmul.mubr.f32.gmra.mrb[76].mxu1 %v7634_v35 }
 0x3e2   : > { %4071 = vmatprep.mubr.f32.mxu1 %v7657_v62  ;;  %v8280_v62 = vld [vmem:[#allocation28_spill] sm:$0xff] }
 0x3e5   : > { %4072 = vmatmul.mubr.f32.gmra.mrb[78].mxu1 %v7638_v10 }
 0x3e6   : > { %4076 = vmatprep.mubr.f32.mxu1 %v7670_v48  ;;  %v5673_v48 = vpack.c.bf16 %v3613_v44, %v3612_v7  ;;  %v7866_v7 = vld [vmem:[#allocation3 + $0x61] sm:$0xff] }
 0x3e9   : > { %4077 = vmatmul.mubr.f32.gmra.mrb[80].mxu1 %v7655_v61 }
 0x3ea   : > { %4081 = vmatprep.mubr.f32.mxu1 %v7681_v53  ;;  %v3614_v53 = vld [vmem:[#allocation10 + $0x310] sm:$0xff] }
 0x3ed   : > { %4082 = vmatmul.mubr.f32.gmra.mrb[82].mxu1 %v7659_v17 }
 0x3ee   : > { %4086 = vmatprep.mubr.f32.mxu1 %v7694_v59  ;;  %v7831_v59 = vld [vmem:[#allocation3 + $0x172] sm:$0xff] }
 0x3f0   : > { %v7799_v0 = vpop.f32.mrb[64].mxu0 }
 0x3f1   : > { %4087 = vmatmul.mubr.f32.gmra.mrb[84].mxu1 %v8279_v18  ;;  %v7802_v38 = vpop.f32.mrb[65].mxu0 }
 0x3f2   : > { %4091 = vmatprep.mubr.f32.mxu1 %v7703_v49  ;;  %v3615_v49 = vld [vmem:[#allocation10 + $0x318] sm:$0xff] }
 0x3f3   : > { %v5676_v4 = vpack.c.bf16 %v3615_v49, %v3614_v53 }
 0x3f5   : > { %4092 = vmatmul.mubr.f32.gmra.mrb[86].mxu1 %v8280_v62 }
 0x3f6   : > { %4096 = vmatprep.mubr.f32.mxu1 %v8281_v1  ;;  %v3627_v1 = vld [vmem:[#allocation10 + $0x378] sm:$0xff] }
 0x3f7   : > { %v5694_v49 = vpack.c.bf16 %v3627_v1, %v3626_v27  ;;  %v3636_v1 = vld [vmem:[#allocation10 + $0x3c0] sm:$0xff] }
 0x3f8   : > { %v7809_v40 = vpop.f32.mrb[66].mxu0 }
 0x3f9   : > { %4097 = vmatmul.mubr.f32.gmra.mrb[88].mxu1 %v7807_v50  ;;  %v7812_v56 = vpop.f32.mrb[67].mxu0 }
 0x3fa   : > { %4101 = vmatprep.mubr.f32.mxu1 %v7723_v57  ;;  %v2907_v57 = vld [vmem:[#allocation3 + $0x19] sm:$0xff] }
 0x3fd   : > { %4102 = vmatmul.mubr.f32.gmra.mrb[90].mxu1 %v7815_v31 }
 0x3fe   : > { %4106 = vmatprep.mubr.f32.mxu1 %v7818_v14 }
 0x400   : > { %v7823_v21 = vpop.f32.mrb[68].mxu0 }
 0x401   : > { %4107 = vmatmul.mubr.f32.gmra.mrb[92].mxu1 %v7821_v25  ;;  %v7828_v9 = vpop.f32.mrb[69].mxu0 }
 0x402   : > { %4111 = vmatprep.mubr.f32.mxu1 %v7826_v55 }
 0x405   : > { %4112 = vmatmul.mubr.f32.gmra.mrb[94].mxu1 %v7831_v59 }
 0x406   : > { %4181 = vmatprep.mubr.f32.mxu1 %v7733_v11  ;;  %v2973_v11 = vld [vmem:[#allocation3 + $0x32] sm:$0xff] }
 0x408   : > { %v7835_v30 = vpop.f32.mrb[70].mxu0 }
 0x409   : > { %4182 = vmatmul.mubr.f32.vlgmr.msra.gmra.mrb[32].mxu1 %v2907_v57  ;;  %v7837_v6 = vpop.f32.mrb[71].mxu0  ;;  %v3628_v57 = vld [vmem:[#allocation10 + $0x380] sm:$0xff] }
 0x40a   : > { %4186 = vmatprep.mubr.f32.mxu1 %v7738_v22  ;;  %5674 = vmatpush1.bf16.msra.mxu1 %v5673_v48  ;;  %v2974_v22 = vld [vmem:[#allocation3 + $0x3a] sm:$0xff]  ;;  %v2978_v48 = vld [vmem:[#allocation3 + $0x6a] sm:$0xff] }
 0x40b   : > { %5675 = vmatprep.subr.bf16.mxu1 %v8278_v28 }
 0x40d   : > { %4187 = vmatmul.mubr.f32.gmra.mrb[34].mxu1 %v2908_v32 }
 0x40e   : > { %4191 = vmatprep.mubr.f32.mxu1 %v2973_v11  ;;  %5677 = vmatpush1.bf16.msra.mxu1 %v5676_v4  ;;  %v3629_v4 = vld [vmem:[#allocation10 + $0x388] sm:$0xff]  ;;  %v3630_v11 = vld [vmem:[#allocation10 + $0x390] sm:$0xff] }
 0x40f   : > { %5678 = vmatprep.subr.bf16.mxu1 %v8278_v28  ;;  %v5697_v32 = vpack.c.bf16 %v3629_v4, %v3628_v57  ;;  %v2983_v57 = vld [vmem:[#allocation3 + $0xaa] sm:$0xff] }
 0x410   : > { %v7844_v20 = vpop.f32.mrb[72].mxu0 }
 0x411   : > { %4192 = vmatmul.mubr.f32.gmra.mrb[36].mxu1 %v7842_v34  ;;  %v7847_v54 = vpop.f32.mrb[73].mxu0 }
 0x412   : > { %4196 = vmatprep.mubr.f32.mxu1 %v2974_v22  ;;  %5680 = vmatpush1.bf16.msra.mxu1 %v5679_v29  ;;  %v3631_v29 = vld [vmem:[#allocation10 + $0x398] sm:$0xff] }
 0x413   : > { %5681 = vmatprep.subr.bf16.mxu1 %v8278_v28  ;;  %v2980_v22 = vld [vmem:[#allocation3 + $0x82] sm:$0xff]  ;;  %v5700_v2 = vpack.c.bf16 %v3631_v29, %v3630_v11 }
 0x414   : > { %v7902_v11 = vld [vmem:[#allocation3 + $0xa9] sm:$0xff] }
 0x415   : > { %4197 = vmatmul.mubr.f32.gmra.mrb[38].mxu1 %v7850_v41 }
 0x416   : > { %4201 = vmatprep.mubr.f32.mxu1 %v2975_v52  ;;  %5683 = vmatpush1.bf16.msra.mxu1 %v5682_v58  ;;  %v3633_v52 = vld [vmem:[#allocation10 + $0x3a8] sm:$0xff] }
 0x417   : > { %5684 = vmatprep.subr.bf16.mxu1 %v8278_v28  ;;  %v5703_v26 = vpack.c.bf16 %v3633_v52, %v3632_v45  ;;  %v3640_v52 = vld [vmem:[#allocation10 + $0x3e0] sm:$0xff] }
 0x418   : > { %v7856_v24 = vpop.f32.mrb[74].mxu0 }
 0x419   : > { %4202 = vmatmul.mubr.f32.gmra.mrb[40].mxu1 %v7854_v12  ;;  %v7859_v63 = vpop.f32.mrb[75].mxu0 }
 0x41a   : > { %4206 = vmatprep.mubr.f32.mxu1 %v2976_v23  ;;  %5686 = vmatpush1.bf16.msra.mxu1 %v5685_v13  ;;  %v7886_v13 = vld [vmem:[#allocation3 + $0x81] sm:$0xff] }
 0x41b   : > { %5687 = vmatprep.subr.bf16.mxu1 %v8278_v28  ;;  %v3634_v23 = vld [vmem:[#allocation10 + $0x3b0] sm:$0xff] }
 0x41d   : > { %4207 = vmatmul.mubr.f32.gmra.mrb[42].mxu1 %v7862_v19 }
 0x41e   : > { %4211 = vmatprep.mubr.f32.mxu1 %v2977_v39  ;;  %5689 = vmatpush1.bf16.msra.mxu1 %v5688_v5  ;;  %v3635_v5 = vld [vmem:[#allocation10 + $0x3b8] sm:$0xff]  ;;  %v2982_v39 = vld [vmem:[#allocation3 + $0x9a] sm:$0xff] }
 0x41f   : > { %5690 = vmatprep.subr.bf16.mxu1 %v8278_v28  ;;  %v5706_v27 = vpack.c.bf16 %v3635_v5, %v3634_v23  ;;  %v2985_v23 = vld [vmem:[#allocation3 + $0xc2] sm:$0xff] }
 0x420   : > { %v7868_v44 = vpop.f32.mrb[76].mxu0 }
 0x421   : > { %4212 = vmatmul.mubr.f32.gmra.mrb[44].mxu1 %v7866_v7  ;;  %v7871_v53 = vpop.f32.mrb[77].mxu0 }
 0x422   : > { %4216 = vmatprep.mubr.f32.mxu1 %v2978_v48  ;;  %5692 = vmatpush1.bf16.msra.mxu1 %v5691_v3  ;;  %v3637_v48 = vld [vmem:[#allocation10 + $0x3c8] sm:$0xff] }
 0x423   : > { %5693 = vmatprep.subr.bf16.mxu1 %v8278_v28  ;;  %v5709_v4 = vpack.c.bf16 %v3637_v48, %v3636_v1  ;;  %v7914_v1 = vld [vmem:[#allocation3 + $0xc1] sm:$0xff] }
 0x425   : > { %4217 = vmatmul.mubr.f32.gmra.mrb[46].mxu1 %v7874_v36 }
 0x426   : > { %4221 = vmatprep.mubr.f32.mxu1 %v2979_v46  ;;  %5695 = vmatpush1.bf16.msra.mxu1 %v5694_v49  ;;  %v7898_v49 = vld [vmem:[#allocation3 + $0x99] sm:$0xff] }
 0x427   : > { %5696 = vmatprep.subr.bf16.mxu1 %v8278_v28  ;;  %v3638_v46 = vld [vmem:[#allocation10 + $0x3d0] sm:$0xff] }
 0x428   : > { %v7880_v42 = vpop.f32.mrb[78].mxu0 }
 0x429   : > { %4222 = vmatmul.mubr.f32.gmra.mrb[48].mxu1 %v7878_v16  ;;  %v7883_v58 = vpop.f32.mrb[79].mxu0 }
 0x42a   : > { %4226 = vmatprep.mubr.f32.mxu1 %v2980_v22  ;;  %5698 = vmatpush1.bf16.msra.mxu1 %v5697_v32  ;;  %v3639_v32 = vld [vmem:[#allocation10 + $0x3d8] sm:$0xff]  ;;  %v2984_v22 = vld [vmem:[#allocation3 + $0xb2] sm:$0xff] }
 0x42b   : > { %5699 = vmatprep.subr.bf16.mxu1 %v8278_v28  ;;  %v5712_v45 = vpack.c.bf16 %v3639_v32, %v3638_v46  ;;  %v7922_v32 = vld [vmem:[#allocation3 + $0xc9] sm:$0xff] }
 0x42d   : > { %4227 = vmatmul.mubr.f32.gmra.mrb[50].mxu1 %v7886_v13 }
 0x42e   : > { %4231 = vmatprep.mubr.f32.mxu1 %v2981_v15  ;;  %5701 = vmatpush1.bf16.msra.mxu1 %v5700_v2  ;;  %v3641_v15 = vld [vmem:[#allocation10 + $0x3e8] sm:$0xff] }
 0x42f   : > { %5702 = vmatprep.subr.bf16.mxu1 %v8278_v28  ;;  %v5715_v5 = vpack.c.bf16 %v3641_v15, %v3640_v52 }
 0x430   : > { %v7892_v37 = vpop.f32.mrb[80].mxu0 }
 0x431   : > { %4232 = vmatmul.mubr.f32.gmra.mrb[52].mxu1 %v7890_v33  ;;  %v7895_v3 = vpop.f32.mrb[81].mxu0 }
 0x432   : > { %4236 = vmatprep.mubr.f32.mxu1 %v2982_v39  ;;  %5704 = vmatpush1.bf16.msra.mxu1 %v5703_v26  ;;  %v7910_v26 = vld [vmem:[#allocation3 + $0xb1] sm:$0xff]  ;;  %v3642_v39 = vld [vmem:[#allocation10 + $0x3f0] sm:$0xff] }
 0x433   : > { %5705 = vmatprep.subr.bf16.mxu1 %v8278_v28 }
 0x435   : > { %4237 = vmatmul.mubr.f32.gmra.mrb[54].mxu1 %v7898_v49 }
 0x436   : > { %4241 = vmatprep.mubr.f32.mxu1 %v2983_v57  ;;  %5707 = vmatpush1.bf16.msra.mxu1 %v5706_v27  ;;  %v3643_v27 = vld [vmem:[#allocation10 + $0x3f8] sm:$0xff] }
 0x437   : > { %5708 = vmatprep.subr.bf16.mxu1 %v8278_v28  ;;  %v2986_v57 = vld [vmem:[#allocation3 + $0xca] sm:$0xff]  ;;  %v5718_v46 = vpack.c.bf16 %v3643_v27, %v3642_v39  ;;  %v7974_v27 = vld [vmem:[#allocation3 + $0x182] sm:$0xff] }
 0x438   : > { %v7904_v29 = vpop.f32.mrb[82].mxu0  ;;  %v8286_v39 = vld [vmem:[#allocation26_spill] sm:$0xff] }
 0x439   : > { %4242 = vmatmul.mubr.f32.gmra.mrb[56].mxu1 %v7902_v11  ;;  %v7907_v2 = vpop.f32.mrb[83].mxu0 }
 0x43a   : > { %4246 = vmatprep.mubr.f32.mxu1 %v2984_v22  ;;  %5710 = vmatpush1.bf16.msra.mxu1 %v5709_v4  ;;  %v8282_v22 = vld [vmem:[#allocation15_spill] sm:$0xff] }
 0x43b   : > { %5711 = vmatprep.subr.bf16.mxu1 %v8278_v28 }
 0x43d   : > { %4247 = vmatmul.mubr.f32.gmra.mrb[58].mxu1 %v7910_v26 }
 0x43e   : > { %4251 = vmatprep.mubr.f32.mxu1 %v2985_v23  ;;  %5713 = vmatpush1.bf16.msra.mxu1 %v5712_v45  ;;  %v7927_v45 = vld [vmem:[#allocation3 + $0xd9] sm:$0xff] }
 0x43f   : > { %5714 = vmatprep.subr.bf16.mxu1 %v8278_v28  ;;  %v7943_v23 = vld [vmem:[#allocation3 + $0xf9] sm:$0xff] }
 0x440   : > { %v7916_v48 = vpop.f32.mrb[84].mxu0 }
 0x441   : > { %4252 = vmatmul.mubr.f32.gmra.mrb[60].mxu1 %v7914_v1  ;;  %v7919_v4 = vpop.f32.mrb[85].mxu0 }
 0x442   : > { %4256 = vmatprep.mubr.f32.mxu1 %v2986_v57  ;;  %5716 = vmatpush1.bf16.msra.mxu1 %v5715_v5  ;;  %v7947_v5 = vld [vmem:[#allocation3 + $0x109] sm:$0xff] }
 0x443   : > { %5717 = vmatprep.subr.bf16.mxu1 %v8278_v28  ;;  %v7935_v28 = vld [vmem:[#allocation3 + $0xe1] sm:$0xff] }
 0x445   : > { %4257 = vmatmul.mubr.f32.gmra.mrb[62].mxu1 %v7922_v32 }
 0x446   : > { %4261 = vmatprep.mubr.f32.mxu1 %v7602_v8  ;;  %5719 = vmatpush1.bf16.msra.mxu1 %v5718_v46  ;;  %v7939_v8 = vld [vmem:[#allocation3 + $0xf1] sm:$0xff] }
 0x447   : > { %5752 = vmatprep.subr.bf16.mxu1 %v8282_v22  ;;  %v7979_v46 = vld [vmem:[#allocation3 + $0x18a] sm:$0xff] }
 0x448   : > { %v7929_v52 = vpop.f32.mrb[86].mxu0 }
 0x449   : > { %4262 = vmatmul.mubr.f32.gmra.mrb[64].mxu1 %v7927_v45  ;;  %v7932_v15 = vpop.f32.mrb[87].mxu0 }
 0x44a   : > { %4266 = vmatprep.mubr.f32.mxu1 %v7606_v43  ;;  %v7951_v43 = vld [vmem:[#allocation3 + $0x111] sm:$0xff] }
 0x44d   : > { %4267 = vmatmul.mubr.f32.gmra.mrb[66].mxu1 %v7935_v28 }
 0x44e   : > { %4271 = vmatprep.mubr.f32.mxu1 %v7618_v51  ;;  %v7955_v51 = vld [vmem:[#allocation3 + $0x121] sm:$0xff] }
 0x451   : > { %4272 = vmatmul.mubr.f32.gmra.mrb[68].mxu1 %v7939_v8 }
 0x452   : > { %4276 = vmatprep.mubr.f32.mxu1 %v7622_v47  ;;  %v7959_v47 = vld [vmem:[#allocation3 + $0x129] sm:$0xff] }
 0x455   : > { %4277 = vmatmul.mubr.f32.gmra.mrb[70].mxu1 %v7943_v23 }
 0x456   : > { %4281 = vmatprep.mubr.f32.mxu1 %v7634_v35  ;;  %v8283_v35 = vld [vmem:[#allocation23_spill] sm:$0xff] }
 0x459   : > { %4282 = vmatmul.mubr.f32.gmra.mrb[72].mxu1 %v7947_v5 }
 0x45a   : > { %4286 = vmatprep.mubr.f32.mxu1 %v7638_v10  ;;  %v8284_v10 = vld [vmem:[#allocation24_spill] sm:$0xff] }
 0x45d   : > { %4287 = vmatmul.mubr.f32.gmra.mrb[74].mxu1 %v7951_v43 }
 0x45e   : > { %4291 = vmatprep.mubr.f32.mxu1 %v7655_v61  ;;  %v8285_v61 = vld [vmem:[#allocation25_spill] sm:$0xff] }
 0x461   : > { %4292 = vmatmul.mubr.f32.gmra.mrb[76].mxu1 %v7955_v51 }
 0x462   : > { %4296 = vmatprep.mubr.f32.mxu1 %v7659_v17  ;;  %v8287_v17 = vld [vmem:[#allocation29_spill] sm:$0xff] }
 0x465   : > { %4297 = vmatmul.mubr.f32.gmra.mrb[78].mxu1 %v7959_v47 }
 0x466   : > { %4301 = vmatprep.mubr.f32.mxu1 %v8279_v18  ;;  %v8288_v18 = vld [vmem:[#allocation30_spill] sm:$0xff] }
 0x469   : > { %4302 = vmatmul.mubr.f32.gmra.mrb[80].mxu1 %v8283_v35  ;;  %v8291_v35 = vmax.f32 %v7718_v60, 0.0  ;;  %v3038_v60 = vld [vmem:[#allocation3 + $0x48] sm:$0xff] }
 0x46a   : > { %4306 = vmatprep.mubr.f32.mxu1 %v8280_v62  ;;  %v8289_v62 = vld [vmem:[#allocation31_spill] sm:$0xff] }
 0x46b   : > { %v8290_v57 = vmax.f32 %v8289_v62, 0.0  ;;  %v8297_v62 = vld [vmem:[#allocation21_spill] sm:$0xff] }
 0x46d   : > { %4307 = vmatmul.mubr.f32.gmra.mrb[82].mxu1 %v8284_v10  ;;  %v3036_v10 = vld [vmem:[#allocation3 + $0x30] sm:$0xff] }
 0x46e   : > { %4311 = vmatprep.mubr.f32.mxu1 %v7807_v50 }
 0x471   : > { %4312 = vmatmul.mubr.f32.gmra.mrb[84].mxu1 %v8285_v61  ;;  %v8292_v61 = vld [vmem:[#allocation16_spill] sm:$0xff] }
 0x472   : > { %4316 = vmatprep.mubr.f32.mxu1 %v7815_v31 }
 0x475   : > { %4317 = vmatmul.mubr.f32.gmra.mrb[86].mxu1 %v8286_v39  ;;  %v3037_v39 = vld [vmem:[#allocation3 + $0x38] sm:$0xff] }
 0x476   : > { %4321 = vmatprep.mubr.f32.mxu1 %v7821_v25 }
 0x479   : > { %4322 = vmatmul.mubr.f32.gmra.mrb[88].mxu1 %v8287_v17  ;;  %v8293_v17 = vld [vmem:[#allocation17_spill] sm:$0xff] }
 0x47a   : > { %4326 = vmatprep.mubr.f32.mxu1 %v7831_v59 }
 0x47d   : > { %4327 = vmatmul.mubr.f32.gmra.mrb[90].mxu1 %v8288_v18  ;;  %v8296_v18 = vld [vmem:[#allocation20_spill] sm:$0xff] }
 0x47e   : > { %4331 = vmatprep.mubr.f32.mxu1 %v7974_v27 }
 0x481   : > { %4332 = vmatmul.mubr.f32.gmra.mrb[92].mxu1 %v8290_v57  ;;  %v8298_v57 = vld [vmem:[#allocation22_spill] sm:$0xff] }
 0x482   : > { %4336 = vmatprep.mubr.f32.mxu1 %v7979_v46 }
 0x485   : > { %4337 = vmatmul.mubr.f32.gmra.mrb[94].mxu1 %v8291_v35  ;;  %v3044_v35 = vld [vmem:[#allocation3 + $0x90] sm:$0xff] }
 0x486   : > { %4406 = vmatprep.mubr.f32.mxu1 %v7842_v34  ;;  %v8294_v34 = vld [vmem:[#allocation18_spill] sm:$0xff] }
 0x489   : > { %4407 = vmatmul.mubr.f32.vlgmr.msra.gmra.mrb[32].mxu1 %v3036_v10  ;;  %v3046_v10 = vld [vmem:[#allocation3 + $0xa8] sm:$0xff] }
 0x48a   : > { %4411 = vmatprep.mubr.f32.mxu1 %v7850_v41  ;;  %5760 = vmatpush3.bf16.msra.mxu1 %v8282_v22  ;;  %v3039_v41 = vld [vmem:[#allocation3 + $0x50] sm:$0xff] }
 0x48b   : > { %5753 = vmatprep.subr.bf16.mxu1 %v8292_v61  ;;  %v8295_v22 = vld [vmem:[#allocation19_spill] sm:$0xff] }
 0x48d   : > { %4412 = vmatmul.mubr.f32.gmra.mrb[34].mxu1 %v3037_v39  ;;  %v3122_v39 = vld [vmem:[#allocation3 + $0x139] sm:$0xff] }
 0x48e   : > { %4416 = vmatprep.mubr.f32.mxu1 %v7854_v12  ;;  %5761 = vmatpush3.bf16.msra.mxu1 %v8292_v61  ;;  %v3040_v12 = vld [vmem:[#allocation3 + $0x60] sm:$0xff] }
 0x48f   : > { %5754 = vmatprep.subr.bf16.mxu1 %v8293_v17  ;;  %v3048_v61 = vld [vmem:[#allocation3 + $0xc0] sm:$0xff] }
 0x491   : > { %4417 = vmatmul.mubr.f32.gmra.mrb[36].mxu1 %v3038_v60  ;;  %v3124_v60 = vld [vmem:[#allocation3 + $0x151] sm:$0xff] }
 0x492   : > { %4421 = vmatprep.mubr.f32.mxu1 %v7862_v19  ;;  %5762 = vmatpush3.bf16.msra.mxu1 %v8293_v17  ;;  %v3041_v19 = vld [vmem:[#allocation3 + $0x68] sm:$0xff] }
 0x493   : > { %5755 = vmatprep.subr.bf16.mxu1 %v8294_v34  ;;  %v3123_v17 = vld [vmem:[#allocation3 + $0x141] sm:$0xff] }
 0x495   : > { %4422 = vmatmul.mubr.f32.gmra.mrb[38].mxu1 %v3039_v41  ;;  %v3126_v41 = vld [vmem:[#allocation3 + $0x169] sm:$0xff] }
 0x496   : > { %4426 = vmatprep.mubr.f32.mxu1 %v7866_v7  ;;  %5763 = vmatpush3.bf16.msra.mxu1 %v8294_v34  ;;  %v3042_v7 = vld [vmem:[#allocation3 + $0x78] sm:$0xff] }
 0x497   : > { %5756 = vmatprep.subr.bf16.mxu1 %v8295_v22  ;;  %v3125_v34 = vld [vmem:[#allocation3 + $0x159] sm:$0xff] }
 0x499   : > { %4427 = vmatmul.mubr.f32.gmra.mrb[40].mxu1 %v3040_v12  ;;  %v3063_v12 = vld [vmem:[#allocation3 + $0x170] sm:$0xff] }
 0x49a   : > { %4431 = vmatprep.mubr.f32.mxu1 %v7874_v36  ;;  %5764 = vmatpush3.bf16.msra.mxu1 %v8295_v22  ;;  %v3043_v36 = vld [vmem:[#allocation3 + $0x80] sm:$0xff]  ;;  %v3127_v22 = vld [vmem:[#allocation3 + $0x171] sm:$0xff] }
 0x49b   : > { %5757 = vmatprep.subr.bf16.mxu1 %v8296_v18 }
 0x49d   : > { %4432 = vmatmul.mubr.f32.gmra.mrb[42].mxu1 %v3041_v19  ;;  %v3129_v19 = vld [vmem:[#allocation3 + $0x189] sm:$0xff] }
 0x49e   : > { %4436 = vmatprep.mubr.f32.mxu1 %v7878_v16  ;;  %5765 = vmatpush3.bf16.msra.mxu1 %v8296_v18  ;;  %v3045_v16 = vld [vmem:[#allocation3 + $0x98] sm:$0xff]  ;;  %v3128_v18 = vld [vmem:[#allocation3 + $0x181] sm:$0xff] }
 0x49f   : > { %5758 = vmatprep.subr.bf16.mxu1 %v8297_v62 }
 0x4a1   : > { %4437 = vmatmul.mubr.f32.gmra.mrb[44].mxu1 %v3042_v7  ;;  %v3131_v7 = vld [vmem:[#allocation3 + $0x1a1] sm:$0xff] }
 0x4a2   : > { %4441 = vmatprep.mubr.f32.mxu1 %v7886_v13  ;;  %5766 = vmatpush3.bf16.msra.mxu1 %v8297_v62  ;;  %v3047_v13 = vld [vmem:[#allocation3 + $0xb0] sm:$0xff]  ;;  %v3130_v62 = vld [vmem:[#allocation3 + $0x199] sm:$0xff] }
 0x4a3   : > { %5759 = vmatprep.subr.bf16.mxu1 %v8298_v57 }
 0x4a5   : > { %4442 = vmatmul.mubr.f32.gmra.mrb[46].mxu1 %v3043_v36 }
 0x4a6   : > { %4446 = vmatprep.mubr.f32.mxu1 %v7890_v33  ;;  %5767 = vmatpush3.bf16.msra.mxu1 %v8298_v57  ;;  %v3049_v33 = vld [vmem:[#allocation3 + $0xc8] sm:$0xff]  ;;  %v6322_v57 = vld [vmem:[#allocation2] sm:$0xff] }
 0x4a9   : > { %4447 = vmatmul.mubr.f32.gmra.mrb[48].mxu1 %v3044_v35 }
 0x4aa   : > { %4451 = vmatprep.mubr.f32.mxu1 %v7898_v49  ;;  %v3050_v49 = vld [vmem:[#allocation3 + $0xd8] sm:$0xff] }
 0x4ad   : > { %4452 = vmatmul.mubr.f32.gmra.mrb[50].mxu1 %v3045_v16 }
 0x4ae   : > { %4456 = vmatprep.mubr.f32.mxu1 %v7902_v11  ;;  %v3051_v11 = vld [vmem:[#allocation3 + $0xe0] sm:$0xff] }
 0x4b1   : > { %4457 = vmatmul.mubr.f32.gmra.mrb[52].mxu1 %v3046_v10 }
 0x4b2   : > { %4461 = vmatprep.mubr.f32.mxu1 %v7910_v26  ;;  %v3052_v26 = vld [vmem:[#allocation3 + $0xf0] sm:$0xff] }
 0x4b5   : > { %4462 = vmatmul.mubr.f32.gmra.mrb[54].mxu1 %v3047_v13  ;;  %v4793_v13 = vld [vmem:[%s6708_s12 + $0x8] sm:$0xff] }
 0x4b6   : > { %4466 = vmatprep.mubr.f32.mxu1 %v7914_v1  ;;  %v3053_v1 = vld [vmem:[#allocation3 + $0xf8] sm:$0xff] }
 0x4b9   : > { %4467 = vmatmul.mubr.f32.gmra.mrb[56].mxu1 %v3048_v61 }
 0x4ba   : > { %4471 = vmatprep.mubr.f32.mxu1 %v7922_v32  ;;  %v3054_v32 = vld [vmem:[#allocation3 + $0x108] sm:$0xff] }
 0x4bd   : > { %4472 = vmatmul.mubr.f32.gmra.mrb[58].mxu1 %v3049_v33 }
 0x4be   : > { %4476 = vmatprep.mubr.f32.mxu1 %v7927_v45  ;;  %v3055_v45 = vld [vmem:[#allocation3 + $0x110] sm:$0xff] }
 0x4c1   : > { %4477 = vmatmul.mubr.f32.gmra.mrb[60].mxu1 %v3050_v49 }
 0x4c2   : > { %4481 = vmatprep.mubr.f32.mxu1 %v7935_v28  ;;  %v3056_v28 = vld [vmem:[#allocation3 + $0x120] sm:$0xff] }
 0x4c5   : > { %4482 = vmatmul.mubr.f32.gmra.mrb[62].mxu1 %v3051_v11 }
 0x4c6   : > { %4486 = vmatprep.mubr.f32.mxu1 %v7939_v8  ;;  %v3057_v8 = vld [vmem:[#allocation3 + $0x128] sm:$0xff] }
 0x4c9   : > { %4487 = vmatmul.mubr.f32.gmra.mrb[64].mxu1 %v3052_v26 }
 0x4ca   : > { %4491 = vmatprep.mubr.f32.mxu1 %v7943_v23  ;;  %v3058_v23 = vld [vmem:[#allocation3 + $0x138] sm:$0xff] }
 0x4cd   : > { %4492 = vmatmul.mubr.f32.gmra.mrb[66].mxu1 %v3053_v1  ;;  %v4794_v1 = vld [vmem:[%s6708_s12 + $0x10] sm:$0xff] }
 0x4ce   : > { %4496 = vmatprep.mubr.f32.mxu1 %v7947_v5  ;;  %v3059_v5 = vld [vmem:[#allocation3 + $0x140] sm:$0xff] }
 0x4d1   : > { %4497 = vmatmul.mubr.f32.gmra.mrb[68].mxu1 %v3054_v32 }
 0x4d2   : > { %4501 = vmatprep.mubr.f32.mxu1 %v7951_v43  ;;  %v3060_v43 = vld [vmem:[#allocation3 + $0x150] sm:$0xff] }
 0x4d5   : > { %4502 = vmatmul.mubr.f32.gmra.mrb[70].mxu1 %v3055_v45 }
 0x4d6   : > { %4506 = vmatprep.mubr.f32.mxu1 %v7955_v51  ;;  %v3061_v51 = vld [vmem:[#allocation3 + $0x158] sm:$0xff] }
 0x4d9   : > { %4507 = vmatmul.mubr.f32.gmra.mrb[72].mxu1 %v3056_v28 }
 0x4da   : > { %4511 = vmatprep.mubr.f32.mxu1 %v7959_v47  ;;  %v3062_v47 = vld [vmem:[#allocation3 + $0x168] sm:$0xff] }
 0x4dd   : > { %4512 = vmatmul.mubr.f32.gmra.mrb[74].mxu1 %v3057_v8 }
 0x4de   : > { %4516 = vmatprep.mubr.f32.mxu1 %v3122_v39 }
 0x4e1   : > { %4517 = vmatmul.mubr.f32.gmra.mrb[76].mxu1 %v3058_v23  ;;  %v4795_v23 = vld [vmem:[%s6708_s12 + $0x18] sm:$0xff] }
 0x4e2   : > { %4521 = vmatprep.mubr.f32.mxu1 %v3123_v17 }
 0x4e5   : > { %4522 = vmatmul.mubr.f32.gmra.mrb[78].mxu1 %v3059_v5 }
 0x4e6   : > { %4526 = vmatprep.mubr.f32.mxu1 %v3124_v60 }
 0x4e9   : > { %4527 = vmatmul.mubr.f32.gmra.mrb[80].mxu1 %v3060_v43 }
 0x4ea   : > { %4531 = vmatprep.mubr.f32.mxu1 %v3125_v34 }
 0x4ed   : > { %4532 = vmatmul.mubr.f32.gmra.mrb[82].mxu1 %v3061_v51 }
 0x4ee   : > { %4536 = vmatprep.mubr.f32.mxu1 %v3126_v41 }
 0x4f1   : > { %4537 = vmatmul.mubr.f32.gmra.mrb[84].mxu1 %v3062_v47 }
 0x4f2   : > { %4541 = vmatprep.mubr.f32.mxu1 %v3127_v22 }
 0x4f5   : > { %4542 = vmatmul.mubr.f32.gmra.mrb[86].mxu1 %v3063_v12 }
 0x4f6   : > { %4546 = vmatprep.mubr.f32.mxu1 %v3128_v18 }
 0x4f9   : > { %4547 = vmatmul.mubr.f32.gmra.mrb[88].mxu1 %v7818_v14  ;;  %v3194_v14 = vld [vmem:[#allocation3 + $0x19a] sm:$0xff] }
 0x4fa   : > { %4551 = vmatprep.mubr.f32.mxu1 %v3129_v19 }
 0x4fd   : > { %4552 = vmatmul.mubr.f32.gmra.mrb[90].mxu1 %v7826_v55  ;;  %v3195_v55 = vld [vmem:[#allocation3 + $0x1a2] sm:$0xff] }
 0x4fe   : > { %4556 = vmatprep.mubr.f32.mxu1 %v3130_v62 }
 0x501   : > { %4557 = vmatmul.mubr.f32.gmra.mrb[92].mxu1 %v6322_v57 }
 0x502   : > { %4561 = vmatprep.mubr.f32.mxu1 %v3131_v7 }
 0x505   : > { %4562 = vmatmul.mubr.f32.gmra.mrb[94].mxu1 %v6322_v57 }
 0x506   : > { %5292 = vmatprep.mubr.f32.mxu1 %v7807_v50  ;;  %v8032_v50 = vld [vmem:[%s8213_s4] ss:$0 sm:$0xff] }
 0x509   : > { %5293 = vmatmul.mubr.f32.vlgmr.msra.gmra.mrb[96].mxu1 %v7815_v31 }
 0x50a   : > { %5295 = vmatprep.mubr.f32.mxu1 %v7821_v25 }
 0x50d   : > { %5296 = vmatmul.mubr.f32.gmra.mrb[98].mxu1 %v7831_v59  ;;  %v4792_v59 = vld [vmem:[%s6708_s12] sm:$0xff] }
 0x50e   : > { %5298 = vmatprep.mubr.f32.mxu1 %v7974_v27 }
 0x511   : > { %5299 = vmatmul.mubr.f32.gmra.mrb[100].mxu1 %v7979_v46 }
 0x512   : > { %5301 = vmatprep.mubr.f32.mxu1 %v3194_v14 }
 0x515   : > { %5302 = vmatmul.mubr.f32.gmra.mrb[102].mxu1 %v3195_v55 }
 0x55c   : > { %v4408_v31 = vpop.f32.mrb[32].mxu1 }
 0x55d   : > { %v5800_v25 = vadd.f32 %v8032_v50, %v4408_v31  ;;  %v4410_v36 = vpop.f32.mrb[33].mxu1 }
 0x55f   : > { %v4634_v27 = vadd.f32 %v5800_v25, %v7802_v38 }
 0x560   : > { %v4413_v35 = vpop.f32.mrb[34].mxu1 }
 0x561   : > { %v4824_v16 = vadd.f32 %v4792_v59, %v4634_v27  ;;  %v5801_v46 = vadd.f32 %v8032_v50, %v4413_v35  ;;  %v4415_v10 = vpop.f32.mrb[35].mxu1 }
 0x563   : > { %v4856_v61 = vmax.f32 %v4824_v16, 0.0  ;;  %v4639_v33 = vadd.f32 %v5801_v46, %v7799_v0 }
 0x564   : > { %v4418_v49 = vpop.f32.mrb[36].mxu1 }
 0x565   : > { %4888 = vst [vmem:[%s8042_s10] sm:$0xff] %v4856_v61  ;;  %v4825_v11 = vadd.f32 %v4793_v13, %v4639_v33  ;;  %v5802_v38 = vadd.f32 %v8032_v50, %v4418_v49  ;;  %v4420_v26 = vpop.f32.mrb[37].mxu1 }
 0x567   : > { %v4857_v32 = vmax.f32 %v4825_v11, 0.0  ;;  %v4644_v45 = vadd.f32 %v5802_v38, %v7812_v56  ;;  %v4796_v56 = vld [vmem:[%s6708_s12 + $0x20] sm:$0xff] }
 0x568   : > { %v4423_v28 = vpop.f32.mrb[38].mxu1 }
 0x569   : > { %4889 = vst [vmem:[%s8042_s10 + $0x8] sm:$0xff] %v4857_v32  ;;  %v4826_v0 = vadd.f32 %v4794_v1, %v4644_v45  ;;  %v5803_v8 = vadd.f32 %v8032_v50, %v4423_v28  ;;  %v4425_v39 = vpop.f32.mrb[39].mxu1 }
 0x56b   : > { %v4858_v17 = vmax.f32 %v4826_v0, 0.0  ;;  %v4649_v5 = vadd.f32 %v5803_v8, %v7809_v40  ;;  %v4797_v40 = vld [vmem:[%s6708_s12 + $0x28] sm:$0xff] }
 0x56c   : > { %v4428_v60 = vpop.f32.mrb[40].mxu1 }
 0x56d   : > { %4890 = vst [vmem:[%s8042_s10 + $0x10] sm:$0xff] %v4858_v17  ;;  %v4827_v43 = vadd.f32 %v4795_v23, %v4649_v5  ;;  %v5804_v34 = vadd.f32 %v8032_v50, %v4428_v60  ;;  %v4430_v51 = vpop.f32.mrb[41].mxu1 }
 0x56f   : > { %v4859_v41 = vmax.f32 %v4827_v43, 0.0  ;;  %v4654_v47 = vadd.f32 %v5804_v34, %v7828_v9  ;;  %v4798_v9 = vld [vmem:[%s6708_s12 + $0x30] sm:$0xff] }
 0x570   : > { %v4433_v22 = vpop.f32.mrb[42].mxu1 }
 0x571   : > { %4891 = vst [vmem:[%s8042_s10 + $0x18] sm:$0xff] %v4859_v41  ;;  %v4828_v12 = vadd.f32 %v4796_v56, %v4654_v47  ;;  %v5805_v18 = vadd.f32 %v8032_v50, %v4433_v22  ;;  %v4435_v19 = vpop.f32.mrb[43].mxu1 }
 0x573   : > { %v4860_v62 = vmax.f32 %v4828_v12, 0.0  ;;  %v4659_v7 = vadd.f32 %v5805_v18, %v7823_v21  ;;  %v4799_v21 = vld [vmem:[%s6708_s12 + $0x38] sm:$0xff] }
 0x574   : > { %v4438_v57 = vpop.f32.mrb[44].mxu1 }
 0x575   : > { %4892 = vst [vmem:[%s8042_s10 + $0x20] sm:$0xff] %v4860_v62  ;;  %v4829_v14 = vadd.f32 %v4797_v40, %v4659_v7  ;;  %v5806_v55 = vadd.f32 %v8032_v50, %v4438_v57  ;;  %v4440_v31 = vpop.f32.mrb[45].mxu1 }
 0x577   : > { %v4861_v25 = vmax.f32 %v4829_v14, 0.0  ;;  %v4664_v36 = vadd.f32 %v5806_v55, %v7837_v6  ;;  %v4800_v6 = vld [vmem:[%s6708_s12 + $0x40] sm:$0xff] }
 0x578   : > { %v4443_v59 = vpop.f32.mrb[46].mxu1 }
 0x579   : > { %4893 = vst [vmem:[%s8042_s10 + $0x28] sm:$0xff] %v4861_v25  ;;  %v4830_v27 = vadd.f32 %v4798_v9, %v4664_v36  ;;  %v5807_v35 = vadd.f32 %v8032_v50, %v4443_v59  ;;  %v4445_v16 = vpop.f32.mrb[47].mxu1 }
 0x57b   : > { %v4862_v46 = vmax.f32 %v4830_v27, 0.0  ;;  %v4669_v10 = vadd.f32 %v5807_v35, %v7835_v30  ;;  %v4801_v30 = vld [vmem:[%s6708_s12 + $0x48] sm:$0xff] }
 0x57c   : > { %v4448_v13 = vpop.f32.mrb[48].mxu1 }
 0x57d   : > { %4894 = vst [vmem:[%s8042_s10 + $0x30] sm:$0xff] %v4862_v46  ;;  %v4831_v61 = vadd.f32 %v4799_v21, %v4669_v10  ;;  %v5808_v33 = vadd.f32 %v8032_v50, %v4448_v13  ;;  %v4450_v49 = vpop.f32.mrb[49].mxu1 }
 0x57f   : > { %v4863_v11 = vmax.f32 %v4831_v61, 0.0  ;;  %v4674_v38 = vadd.f32 %v5808_v33, %v7847_v54  ;;  %v4802_v54 = vld [vmem:[%s6708_s12 + $0x50] sm:$0xff] }
 0x580   : > { %v4453_v26 = vpop.f32.mrb[50].mxu1 }
 0x581   : > { %4895 = vst [vmem:[%s8042_s10 + $0x38] sm:$0xff] %v4863_v11  ;;  %v4832_v1 = vadd.f32 %v4800_v6, %v4674_v38  ;;  %v5809_v32 = vadd.f32 %v8032_v50, %v4453_v26  ;;  %v4455_v45 = vpop.f32.mrb[51].mxu1 }
 0x583   : > { %v4864_v28 = vmax.f32 %v4832_v1, 0.0  ;;  %v4679_v0 = vadd.f32 %v5809_v32, %v7844_v20  ;;  %v4803_v20 = vld [vmem:[%s6708_s12 + $0x58] sm:$0xff] }
 0x584   : > { %v4458_v8 = vpop.f32.mrb[52].mxu1 }
 0x585   : > { %4896 = vst [vmem:[%s8042_s10 + $0x40] sm:$0xff] %v4864_v28  ;;  %v4833_v39 = vadd.f32 %v4801_v30, %v4679_v0  ;;  %v5810_v23 = vadd.f32 %v8032_v50, %v4458_v8  ;;  %v4460_v17 = vpop.f32.mrb[53].mxu1 }
 0x587   : > { %v4865_v5 = vmax.f32 %v4833_v39, 0.0  ;;  %v4684_v60 = vadd.f32 %v5810_v23, %v7859_v63  ;;  %v4804_v63 = vld [vmem:[%s6708_s12 + $0x60] sm:$0xff] }
 0x588   : > { %v4463_v43 = vpop.f32.mrb[54].mxu1 }
 0x589   : > { %4897 = vst [vmem:[%s8042_s10 + $0x48] sm:$0xff] %v4865_v5  ;;  %v4834_v34 = vadd.f32 %v4802_v54, %v4684_v60  ;;  %v5811_v51 = vadd.f32 %v8032_v50, %v4463_v43  ;;  %v4465_v56 = vpop.f32.mrb[55].mxu1 }
 0x58b   : > { %v4866_v41 = vmax.f32 %v4834_v34, 0.0  ;;  %v4689_v47 = vadd.f32 %v5811_v51, %v7856_v24  ;;  %v4805_v24 = vld [vmem:[%s6708_s12 + $0x68] sm:$0xff] }
 0x58c   : > { %v4468_v22 = vpop.f32.mrb[56].mxu1 }
 0x58d   : > { %4898 = vst [vmem:[%s8042_s10 + $0x50] sm:$0xff] %v4866_v41  ;;  %v4835_v12 = vadd.f32 %v4803_v20, %v4689_v47  ;;  %v5812_v18 = vadd.f32 %v8032_v50, %v4468_v22  ;;  %v4470_v19 = vpop.f32.mrb[57].mxu1 }
 0x58f   : > { %v4867_v40 = vmax.f32 %v4835_v12, 0.0  ;;  %v4694_v62 = vadd.f32 %v5812_v18, %v7871_v53  ;;  %v4806_v53 = vld [vmem:[%s6708_s12 + $0x70] sm:$0xff] }
 0x590   : > { %v4473_v7 = vpop.f32.mrb[58].mxu1 }
 0x591   : > { %4899 = vst [vmem:[%s8042_s10 + $0x58] sm:$0xff] %v4867_v40  ;;  %v4836_v57 = vadd.f32 %v4804_v63, %v4694_v62  ;;  %v5813_v14 = vadd.f32 %v8032_v50, %v4473_v7  ;;  %v4475_v55 = vpop.f32.mrb[59].mxu1 }
 0x593   : > { %v4868_v31 = vmax.f32 %v4836_v57, 0.0  ;;  %v4699_v9 = vadd.f32 %v5813_v14, %v7868_v44  ;;  %v4807_v44 = vld [vmem:[%s6708_s12 + $0x78] sm:$0xff] }
 0x594   : > { %v4478_v25 = vpop.f32.mrb[60].mxu1 }
 0x595   : > { %4900 = vst [vmem:[%s8042_s10 + $0x60] sm:$0xff] %v4868_v31  ;;  %v4837_v36 = vadd.f32 %v4805_v24, %v4699_v9  ;;  %v5814_v59 = vadd.f32 %v8032_v50, %v4478_v25  ;;  %v4480_v27 = vpop.f32.mrb[61].mxu1 }
 0x597   : > { %v4869_v35 = vmax.f32 %v4837_v36, 0.0  ;;  %v4704_v16 = vadd.f32 %v5814_v59, %v7883_v58  ;;  %v4808_v58 = vld [vmem:[%s6708_s12 + $0x80] sm:$0xff] }
 0x598   : > { %v4483_v21 = vpop.f32.mrb[62].mxu1 }
 0x599   : > { %4901 = vst [vmem:[%s8042_s10 + $0x68] sm:$0xff] %v4869_v35  ;;  %v4838_v46 = vadd.f32 %v4806_v53, %v4704_v16  ;;  %v5815_v10 = vadd.f32 %v8032_v50, %v4483_v21  ;;  %v4485_v13 = vpop.f32.mrb[63].mxu1  ;;  %v4815_v21 = vld [vmem:[%s6708_s12 + $0xb8] sm:$0xff] }
 0x59b   : > { %v4870_v61 = vmax.f32 %v4838_v46, 0.0  ;;  %v4709_v33 = vadd.f32 %v5815_v10, %v7880_v42  ;;  %v4809_v42 = vld [vmem:[%s6708_s12 + $0x88] sm:$0xff] }
 0x59c   : > { %v4488_v49 = vpop.f32.mrb[64].mxu1 }
 0x59d   : > { %4902 = vst [vmem:[%s8042_s10 + $0x70] sm:$0xff] %v4870_v61  ;;  %v4839_v6 = vadd.f32 %v4807_v44, %v4709_v33  ;;  %v5816_v11 = vadd.f32 %v8032_v50, %v4488_v49  ;;  %v4490_v38 = vpop.f32.mrb[65].mxu1 }
 0x59f   : > { %v4871_v26 = vmax.f32 %v4839_v6, 0.0  ;;  %v4714_v1 = vadd.f32 %v5816_v11, %v7895_v3  ;;  %v4810_v3 = vld [vmem:[%s6708_s12 + $0x90] sm:$0xff] }
 0x5a0   : > { %v4493_v32 = vpop.f32.mrb[66].mxu1 }
 0x5a1   : > { %4903 = vst [vmem:[%s8042_s10 + $0x78] sm:$0xff] %v4871_v26  ;;  %v4840_v45 = vadd.f32 %v4808_v58, %v4714_v1  ;;  %v5817_v30 = vadd.f32 %v8032_v50, %v4493_v32  ;;  %v4495_v28 = vpop.f32.mrb[67].mxu1 }
 0x5a3   : > { %v4872_v0 = vmax.f32 %v4840_v45, 0.0  ;;  %v4719_v8 = vadd.f32 %v5817_v30, %v7892_v37  ;;  %v4811_v37 = vld [vmem:[%s6708_s12 + $0x98] sm:$0xff] }
 0x5a4   : > { %v4498_v39 = vpop.f32.mrb[68].mxu1 }
 0x5a5   : > { %4904 = vst [vmem:[%s8042_s10 + $0x80] sm:$0xff] %v4872_v0  ;;  %v4841_v23 = vadd.f32 %v4809_v42, %v4719_v8  ;;  %v5818_v17 = vadd.f32 %v8032_v50, %v4498_v39  ;;  %v4500_v54 = vpop.f32.mrb[69].mxu1  ;;  %v4817_v39 = vld [vmem:[%s6708_s12 + $0xc8] sm:$0xff] }
 0x5a6   : > { %v4816_v54 = vld [vmem:[%s6708_s12 + $0xc0] sm:$0xff] }
 0x5a7   : > { %v4873_v5 = vmax.f32 %v4841_v23, 0.0  ;;  %v4724_v60 = vadd.f32 %v5818_v17, %v7907_v2  ;;  %v4812_v2 = vld [vmem:[%s6708_s12 + $0xa0] sm:$0xff] }
 0x5a8   : > { %v4503_v43 = vpop.f32.mrb[70].mxu1 }
 0x5a9   : > { %4905 = vst [vmem:[%s8042_s10 + $0x88] sm:$0xff] %v4873_v5  ;;  %v4842_v34 = vadd.f32 %v4810_v3, %v4724_v60  ;;  %v5819_v51 = vadd.f32 %v8032_v50, %v4503_v43  ;;  %v4505_v56 = vpop.f32.mrb[71].mxu1 }
 0x5aa   : > { %v4819_v56 = vld [vmem:[%s6708_s12 + $0xd8] sm:$0xff] }
 0x5ab   : > { %v4874_v20 = vmax.f32 %v4842_v34, 0.0  ;;  %v4729_v41 = vadd.f32 %v5819_v51, %v7904_v29  ;;  %v4813_v29 = vld [vmem:[%s6708_s12 + $0xa8] sm:$0xff] }
 0x5ac   : > { %v4508_v47 = vpop.f32.mrb[72].mxu1 }
 0x5ad   : > { %4906 = vst [vmem:[%s8042_s10 + $0x90] sm:$0xff] %v4874_v20  ;;  %v4843_v22 = vadd.f32 %v4811_v37, %v4729_v41  ;;  %v5820_v12 = vadd.f32 %v8032_v50, %v4508_v47  ;;  %v4510_v18 = vpop.f32.mrb[73].mxu1  ;;  %v4818_v47 = vld [vmem:[%s6708_s12 + $0xd0] sm:$0xff] }
 0x5af   : > { %v4875_v19 = vmax.f32 %v4843_v22, 0.0  ;;  %v4734_v63 = vadd.f32 %v5820_v12, %v7919_v4  ;;  %v4814_v4 = vld [vmem:[%s6708_s12 + $0xb0] sm:$0xff] }
 0x5b0   : > { %v4513_v40 = vpop.f32.mrb[74].mxu1 }
 0x5b1   : > { %4907 = vst [vmem:[%s8042_s10 + $0x98] sm:$0xff] %v4875_v19  ;;  %v4844_v62 = vadd.f32 %v4812_v2, %v4734_v63  ;;  %v5821_v7 = vadd.f32 %v8032_v50, %v4513_v40  ;;  %v4515_v57 = vpop.f32.mrb[75].mxu1 }
 0x5b3   : > { %v4876_v14 = vmax.f32 %v4844_v62, 0.0  ;;  %v4739_v55 = vadd.f32 %v5821_v7, %v7916_v48  ;;  %v4821_v62 = vld [vmem:[%s6708_s12 + $0xe8] sm:$0xff] }
 0x5b4   : > { %v4518_v24 = vpop.f32.mrb[76].mxu1 }
 0x5b5   : > { %4908 = vst [vmem:[%s8042_s10 + $0xa0] sm:$0xff] %v4876_v14  ;;  %v4845_v31 = vadd.f32 %v4813_v29, %v4739_v55  ;;  %v5822_v9 = vadd.f32 %v8032_v50, %v4518_v24  ;;  %v4520_v25 = vpop.f32.mrb[77].mxu1  ;;  %v4820_v14 = vld [vmem:[%s6708_s12 + $0xe0] sm:$0xff] }
 0x5b7   : > { %v4877_v36 = vmax.f32 %v4845_v31, 0.0  ;;  %v4744_v59 = vadd.f32 %v5822_v9, %v7932_v15 }
 0x5b8   : > { %v4523_v27 = vpop.f32.mrb[78].mxu1 }
 0x5b9   : > { %4909 = vst [vmem:[%s8042_s10 + $0xa8] sm:$0xff] %v4877_v36  ;;  %v4846_v53 = vadd.f32 %v4814_v4, %v4744_v59  ;;  %v5823_v35 = vadd.f32 %v8032_v50, %v4523_v27  ;;  %v4525_v16 = vpop.f32.mrb[79].mxu1  ;;  %v4823_v59 = vld [vmem:[%s6708_s12 + $0xf8] sm:$0xff] }
 0x5ba   : > { %v4822_v16 = vld [vmem:[%s6708_s12 + $0xf0] sm:$0xff] }
 0x5bb   : > { %v4878_v48 = vmax.f32 %v4846_v53, 0.0  ;;  %v4749_v46 = vadd.f32 %v5823_v35, %v7929_v52 }
 0x5bc   : > { %v4528_v10 = vpop.f32.mrb[80].mxu1 }
 0x5bd   : > { %4910 = vst [vmem:[%s8042_s10 + $0xb0] sm:$0xff] %v4878_v48  ;;  %v4847_v13 = vadd.f32 %v4815_v21, %v4749_v46  ;;  %v4530_v44 = vpop.f32.mrb[81].mxu1  ;;  %v5824_v0 = vadd.f32 %v8032_v50, %v4528_v10 }
 0x5bf   : > { %v4879_v61 = vmax.f32 %v4847_v13, 0.0 }
 0x5c0   : > { %v4533_v33 = vpop.f32.mrb[82].mxu1 }
 0x5c1   : > { %4911 = vst [vmem:[%s8042_s10 + $0xb8] sm:$0xff] %v4879_v61  ;;  %v4535_v49 = vpop.f32.mrb[83].mxu1  ;;  %v5825_v42 = vadd.f32 %v8032_v50, %v4533_v33 }
 0x5c4   : > { %v4538_v15 = vpop.f32.mrb[84].mxu1 }
 0x5c5   : > { %v4540_v6 = vpop.f32.mrb[85].mxu1  ;;  %v5826_v43 = vadd.f32 %v8032_v50, %v4538_v15 }
 0x5c8   : > { %v4543_v11 = vpop.f32.mrb[86].mxu1 }
 0x5c9   : > { %v4545_v38 = vpop.f32.mrb[87].mxu1  ;;  %v5827_v5 = vadd.f32 %v8032_v50, %v4543_v11 }
 0x5cc   : > { %v4548_v58 = vpop.f32.mrb[88].mxu1 }
 0x5cd   : > { %v4550_v26 = vpop.f32.mrb[89].mxu1  ;;  %v5828_v19 = vadd.f32 %v8032_v50, %v4548_v58 }
 0x5d0   : > { %v4553_v1 = vpop.f32.mrb[90].mxu1 }
 0x5d1   : > { %v4555_v32 = vpop.f32.mrb[91].mxu1  ;;  %v5829_v18 = vadd.f32 %v8032_v50, %v4553_v1 }
 0x5d4   : > { %v4558_v45 = vpop.f32.mrb[92].mxu1 }
 0x5d5   : > { %v4560_v52 = vpop.f32.mrb[93].mxu1  ;;  %v5830_v25 = vadd.f32 %v8032_v50, %v4558_v45 }
 0x5d8   : > { %v4563_v30 = vpop.f32.mrb[94].mxu1 }
 0x5d9   : > { %v4565_v28 = vpop.f32.mrb[95].mxu1  ;;  %v5831_v31 = vadd.f32 %v8032_v50, %v4563_v30 }
 0x5dc   : > { %v5294_v8 = vpop.f32.mrb[96].mxu1 }
 0x5dd   : > { %v4759_v23 = vadd.f32 %v5825_v42, %v5294_v8  ;;  %v4753_v17 = vpop.f32.mrb[97].mxu1 }
 0x5de   : > { %v4754_v3 = vadd.f32 %v5824_v0, %v4753_v17 }
 0x5df   : > { %v4849_v60 = vadd.f32 %v4817_v39, %v4759_v23 }
 0x5e0   : > { %v4848_v34 = vadd.f32 %v4816_v54, %v4754_v3  ;;  %v5297_v51 = vpop.f32.mrb[98].mxu1 }
 0x5e1   : > { %v4881_v37 = vmax.f32 %v4849_v60, 0.0  ;;  %v4769_v20 = vadd.f32 %v5827_v5, %v5297_v51  ;;  %v4763_v41 = vpop.f32.mrb[99].mxu1 }
 0x5e2   : > { %v4880_v22 = vmax.f32 %v4848_v34, 0.0  ;;  %v4764_v12 = vadd.f32 %v5826_v43, %v4763_v41 }
 0x5e3   : > { %4913 = vst [vmem:[%s8042_s10 + $0xc8] sm:$0xff] %v4881_v37  ;;  %v4851_v2 = vadd.f32 %v4819_v56, %v4769_v20 }
 0x5e4   : > { %4912 = vst [vmem:[%s8042_s10 + $0xc0] sm:$0xff] %v4880_v22  ;;  %v4850_v63 = vadd.f32 %v4818_v47, %v4764_v12  ;;  %v5300_v40 = vpop.f32.mrb[100].mxu1 }
 0x5e5   : > { %v4883_v7 = vmax.f32 %v4851_v2, 0.0  ;;  %v4779_v57 = vadd.f32 %v5829_v18, %v5300_v40  ;;  %v4773_v29 = vpop.f32.mrb[101].mxu1 }
 0x5e6   : > { %v4882_v55 = vmax.f32 %v4850_v63, 0.0  ;;  %v4774_v24 = vadd.f32 %v5828_v19, %v4773_v29 }
 0x5e7   : > { %4915 = vst [vmem:[%s8042_s10 + $0xd8] sm:$0xff] %v4883_v7  ;;  %v4853_v9 = vadd.f32 %v4821_v62, %v4779_v57 }
 0x5e8   : > { %4914 = vst [vmem:[%s8042_s10 + $0xd0] sm:$0xff] %v4882_v55  ;;  %v4852_v4 = vadd.f32 %v4820_v14, %v4774_v24  ;;  %v5303_v36 = vpop.f32.mrb[102].mxu1 }
 0x5e9   : > { %v4885_v27 = vmax.f32 %v4853_v9, 0.0  ;;  %v4789_v53 = vadd.f32 %v5831_v31, %v5303_v36  ;;  %v4783_v35 = vpop.f32.mrb[103].mxu1 }
 0x5ea   : > { %v4884_v21 = vmax.f32 %v4852_v4, 0.0  ;;  %v4784_v48 = vadd.f32 %v5830_v25, %v4783_v35 }
 0x5eb   : > { %4917 = vst [vmem:[%s8042_s10 + $0xe8] sm:$0xff] %v4885_v27  ;;  %v4855_v46 = vadd.f32 %v4823_v59, %v4789_v53 }
 0x5ec   : > { %4916 = vst [vmem:[%s8042_s10 + $0xe0] sm:$0xff] %v4884_v21  ;;  %v4854_v50 = vadd.f32 %v4822_v16, %v4784_v48 }
 0x5ed   : > { %v4887_v10 = vmax.f32 %v4855_v46, 0.0 }
 0x5ee   : > { %v4886_v13 = vmax.f32 %v4854_v50, 0.0 }
 0x5ef   : > { %4919 = vst [vmem:[%s8042_s10 + $0xf8] sm:$0xff] %v4887_v10 }
 0x5f0   : > { %4918 = vst [vmem:[%s8042_s10 + $0xf0] sm:$0xff] %v4886_v13 }
 0x5f1   : > { %6422 = shalt.err (!%p6419_p1)
}
 0x5f2   : > { %s6423_s12 = scalar_lea.hbm %s8161_s11, 4096  ;;  %s6427_s15 = scalar_lea.hbm %s8214_s5, 8192 }
 0x5f3   : > { %p6424_p13 = scmp.ne.s32.totalorder %s8161_s11, %s6423_s12  ;;  %p6428_p4 = scmp.lt.u32.totalorder %s8161_s11, %s8214_s5 }
 0x5f4   : > { %p6429_p5 = scmp.lt.u32.totalorder %s6427_s15, %s6423_s12  ;;  %p6431_p11 = scmp.lt.u32.totalorder %s6423_s12, %s8161_s11 }
 0x5f5   : > { %p6425_p6 = pnand %p6424_p13, %p8299_p0 }
 0x5f6   : > { %p6430_p8 = por %p6429_p5, %p6428_p4 }
 0x5f7   : > { %p6426_p10 = pneg %p6425_p6 }
 0x5f8   : > { %p6432_p2 = por %p6431_p11, %p6430_p8 }
 0x5fa   : > { %p6433_p3 = pnand %p6432_p2, %p6426_p10 }
 0x5fc   : > { %6436 = shalt.err (!%p6433_p3)
}
 0x5fd   : > { %s6489_s28 = smov 128   ;;  %s6490_s9 = smov 8  }
 0x5fe   : > { %6226 = dma.vmem_to_hbm [thread:$0]  (%p8299_p0), %s8163_s13, 4096, %s8161_s11, %s4921_s22, %s6489_s28, %s6489_s28, %s6490_s9  }
 0x5ff PF: > { %s4949_s30 = sand.u32 1, %s6467_s18   ;;  %p8300_p7 = scmp.ne.s32.totalorder %s8251_s25, 0 }
 0x600   : > { %p8301_p9 = scmp.ge.s32.totalorder %s6479_s21, 2  ;;  %s4950_s17 = scalar_lea.sflag [#allocation7], %s4949_s30 }
 0x602   : > { %p6240_p12 = pnand %p8301_p9, %p8300_p7 }
 0x604   : > { %6462 = dma.done.wait (!%p6240_p12), %s4950_s17, 4096  }
 0x605   : > { %6464 = vsyncadd (!%p6240_p12), %s4950_s17, 4294963200  ;;  %p19_p1 = scmp.ge.s32.totalorder %s6637_s29, 4   ;;  %s8302_s18 = smov %s6471_s19 }
 0x606   : > { %s8303_s19 = smov %s6475_s20  ;;  %s8304_s20 = smov %s6653_s27 }
 0x607   : > { %s8305_s21 = smov %s6637_s29  ;;  %21 = sbr.rel (!%p19_p1) target bundleno = 6 (0x6), region = 97 }
 0x60e   :  { %4955 = vsyncpa [#allocation6], 1 }
 0x60f   :  { %4957 = vsyncpa [#allocation6 + $0x1], 1 }
 0x610   :  { %4958 = vsyncpa [#allocation9], 1 }
 0x611   :  { %4959 = vsyncpa [#allocation7], 1 }
 0x612   :  { %4961 = vsyncpa [#allocation7 + $0x1], 1 }

</bundles_post_ra>
